<compile_context>
chip_gen: v7x
topology: tpu7x:2x2x1
jax: 0.10.0
libtpu: 0.0.40
codegen_flags: <defaults>
</compile_context>

<pallas_src>
import jax
import jax.numpy as jnp
from jax import lax
from jax.experimental import pallas as pl
from jax.experimental.pallas import tpu as pltpu


def _round_up(v, m):
    return (v + m - 1) // m * m


# ----------------------------------------------------------------------------
# Generic tiled matmul + bias kernel (conv-as-matmul, fc, gx precompute)
# ----------------------------------------------------------------------------
def _matmul_bias_kernel(a_ref, b_ref, bias_ref, o_ref, acc_ref):
    """o = a @ b + bias, accumulated over the K grid axis in f32 VMEM scratch.

    b may be bf16 (weight-BW-bound matmuls); a stays f32 and the dot promotes,
    so accuracy loss is limited to the (documented) weight rounding.
    """
    k = pl.program_id(2)

    @pl.when(k == 0)
    def _():
        acc_ref[...] = jnp.zeros_like(acc_ref)

    acc_ref[...] += jnp.dot(a_ref[...], b_ref[...],
                            preferred_element_type=jnp.float32)

    @pl.when(k == pl.num_programs(2) - 1)
    def _():
        o_ref[...] = (acc_ref[...] + bias_ref[...]).astype(o_ref.dtype)


def matmul_bias(a, b, bias):
    """a: (M, K) f32, b: (K, N) f32/bf16, bias: (N,) f32 -> (M, N) f32.

    Tiles are chosen "balanced": K is padded to a multiple of 128 (lane-dense)
    and split into roughly-2048-wide chunks; M into roughly-512-row chunks; the
    N tile stays 128 so N=256/384 gives >=2 parallel blocks (v7x both cores).
    """
    M, K = a.shape
    K2, N = b.shape
    assert K == K2 and bias.shape == (N,)

    tn = 128
    Np = _round_up(N, tn)

    Mp0 = _round_up(M, 8)
    n_m = pl.cdiv(Mp0, 512)
    tm = _round_up(pl.cdiv(Mp0, n_m), 8)
    Mp = tm * n_m

    Kp0 = _round_up(K, 128)               # lane-dense K (e.g. conv's 9*C=18 -> 128)
    n_k = max(1, Kp0 // 2048)
    tk = _round_up(pl.cdiv(Kp0, n_k), 128)
    Kp = tk * n_k

    if (Mp, Kp) != (M, K):
        a = jnp.pad(a, ((0, Mp - M), (0, Kp - K)))
    if (Kp, Np) != (K, N):
        b = jnp.pad(b, ((0, Kp - K), (0, Np - N)))
    bias2 = (jnp.pad(bias, (0, Np - N)) if Np != N else bias).reshape(1, Np)

    out = pl.pallas_call(
        _matmul_bias_kernel,
        out_shape=jax.ShapeDtypeStruct((Mp, Np), jnp.float32),
        grid_spec=pltpu.PrefetchScalarGridSpec(
            num_scalar_prefetch=0,
            grid=(Mp // tm, Np // tn, Kp // tk),
            in_specs=[
                pl.BlockSpec((tm, tk), lambda i, j, k: (i, k)),
                pl.BlockSpec((tk, tn), lambda i, j, k: (k, j)),
                pl.BlockSpec((1, tn), lambda i, j, k: (0, j)),
            ],
            out_specs=pl.BlockSpec((tm, tn), lambda i, j, k: (i, j)),
            scratch_shapes=[pltpu.VMEM((tm, tn), jnp.float32)],
        ),
        compiler_params=pltpu.CompilerParams(
            dimension_semantics=("parallel", "parallel", "arbitrary")),
    )(a, b, bias2)

    if (Mp, Np) != (M, N):
        out = out[:M, :N]
    return out


# ----------------------------------------------------------------------------
# GRU recurrence kernel: one grid step == one (batch-split, time-chunk) block
# ----------------------------------------------------------------------------
def _gru_chunk_kernel(gx_ref, whh_ref, bhh_ref, out_ref, h_ref):
    """gx_ref : (Tc, Bblk, 3H) precomputed input projections (+ b_ih folded in), f32
       whh_ref: (H, 3H)        fused hidden weights [W_hr | W_hz | W_hn], bf16 resident
       bhh_ref: (1, 3H)        hidden biases [b_hr | b_hz | b_hn], f32
       out_ref: (Tc, Bblk, H)  output slab for this chunk (written back once)
       h_ref  : (Bblk, H) f32  VMEM scratch, hidden state carried across time chunks
    """
    c = pl.program_id(1)          # time-chunk axis (innermost, serial)

    @pl.when(c == 0)
    def _():
        h_ref[...] = jnp.zeros_like(h_ref)

    tc, bblk, g3 = gx_ref.shape
    hdim = whh_ref.shape[0]

    whh = whh_ref[...]                                      # resident (H, 3H) bf16
    # Hoist the bias broadcast out of the time loop (broadcast_in_dim is not CSE'd).
    bhh = jnp.broadcast_to(bhh_ref[...], (bblk, g3))

    def step(t, h):
        gx = gx_ref[t]                                      # (Bblk, 3H) f32
        # One fused bf16 MXU push per timestep (critical-path latency), f32 accumulation.
        gh = jnp.dot(h.astype(whh.dtype), whh,
                     preferred_element_type=jnp.float32) + bhh
        r = jax.nn.sigmoid(gx[:, :hdim] + gh[:, :hdim])
        z = jax.nn.sigmoid(gx[:, hdim:2 * hdim] + gh[:, hdim:2 * hdim])
        # b_hn stays inside r * (W_hn h + b_hn): it is carried in gh, not in gx.
        n = jnp.tanh(gx[:, 2 * hdim:] + r * gh[:, 2 * hdim:])
        h_new = (1.0 - z) * n + z * h
        out_ref[t] = h_new.astype(out_ref.dtype)            # unmasked (8,128) store
        return h_new

    # Partial unroll: lets the scheduler overlap stores / next-step loads with MXU/EUP latency.
    h_ref[...] = lax.fori_loop(0, tc, step, h_ref[...], unroll=min(tc, 8))


# ----------------------------------------------------------------------------
# One-time parameter preparation (off the hot path)
# ----------------------------------------------------------------------------
def prepare_params(w_conv, b_conv, w_fc, b_fc, w_ih, w_hh, b_ih, b_hh,
                   *, hp, wp, param_dtype=jnp.bfloat16):
    """Permute w_fc rows from PyTorch's NCHW flatten order to NHWC order (so the NHWC conv
    output feeds the FC directly), reshape the conv kernel to matmul form, and cast the
    weight-bandwidth-bound matrices to `param_dtype` (bf16 by default; pass jnp.float32 to
    keep exact PyTorch numerics)."""
    kh, kw, C, O = w_conv.shape
    n_fc = w_fc.shape[-1]
    w_fc_nhwc = (w_fc.reshape(O, hp, wp, n_fc)
                     .transpose(1, 2, 0, 3)
                     .reshape(hp * wp * O, n_fc))
    return (w_conv.reshape(kh * kw * C, O), b_conv,
            w_fc_nhwc.astype(param_dtype), b_fc,
            w_ih.astype(param_dtype), w_hh.astype(param_dtype),
            b_ih, b_hh)


# ----------------------------------------------------------------------------
# Full LocalMotionExtractor forward
# ----------------------------------------------------------------------------
@jax.jit
def local_motion_extractor_forward(x, w_conv_mat, b_conv, w_fc_nhwc, b_fc,
                                   w_ih, w_hh, b_ih, b_hh):
    """x: (B, m, h, w, 2) f32, params from prepare_params -> GRU output (B, m, 128) f32."""
    B, M, h, w, C = x.shape
    hp, wp = h - 2, w - 2
    O = w_conv_mat.shape[-1]
    H = w_hh.shape[0]

    # --- Conv2d(2 -> 256, 3x3, VALID) as im2col + tiled Pallas matmul -------
    # (K=18 is zero-padded to 128 inside matmul_bias so every A load is lane-dense.)
    xf = x.reshape(B * M, h, w, C)
    patches = jnp.concatenate(
        [xf[:, ky:ky + hp, kx:kx + wp, :] for ky in range(3) for kx in range(3)],
        axis=-1)                                                   # (N, hp, wp, 9*C)
    patches = patches.reshape(B * M * hp * wp, 9 * C)
    conv = matmul_bias(patches, w_conv_mat, b_conv)                # (N*hp*wp, O) f32

    # --- flatten + LazyLinear(256) -------------------------------------------
    # The PyTorch NCHW channel-major flatten is folded into w_fc_nhwc's row order,
    # so the NHWC conv output is used as-is (no activation transpose).
    feat = conv.reshape(B * M, hp * wp * O)
    x_gru = matmul_bias(feat, w_fc_nhwc, b_fc)                     # (B*M, 256) f32

    # --- GRU input projections hoisted out of the serial recurrence ----------
    # gx = x_gru @ [W_ir|W_iz|W_in]^T + b_ih (one time-parallel matmul for all steps)
    gx = matmul_bias(x_gru, w_ih, b_ih)                            # (B*M, 3H) f32

    # --- recurrence layout ----------------------------------------------------
    # Balanced time chunks (minimal padded timesteps); batch split in two when it is
    # large enough to feed both v7x TensorCores via a "parallel" grid axis.
    n_chunks = pl.cdiv(M, 64)
    Tc = pl.cdiv(M, n_chunks)
    Tp = Tc * n_chunks
    if B >= 16:
        Bp = _round_up(B, 16)
        nb, Bblk = 2, _round_up(B, 16) // 2
    else:
        Bp = max(8, _round_up(B, 8))
        nb, Bblk = 1, max(8, _round_up(B, 8))

    gx = gx.reshape(B, M, 3 * H).transpose(1, 0, 2)                # small derived tensor
    gx = jnp.pad(gx, ((0, Tp - M), (0, Bp - B), (0, 0)))

    out = pl.pallas_call(
        _gru_chunk_kernel,
        out_shape=jax.ShapeDtypeStruct((Tp, Bp, H), jnp.float32),
        grid_spec=pltpu.PrefetchScalarGridSpec(
            num_scalar_prefetch=0,
            grid=(nb, n_chunks),
            in_specs=[
                pl.BlockSpec((Tc, Bblk, 3 * H), lambda b, c: (c, b, 0)),
                pl.BlockSpec((H, 3 * H), lambda b, c: (0, 0)),     # resident weights
                pl.BlockSpec((1, 3 * H), lambda b, c: (0, 0)),     # resident bias
            ],
            out_specs=pl.BlockSpec((Tc, Bblk, H), lambda b, c: (c, b, 0)),
            scratch_shapes=[pltpu.VMEM((Bblk, H), jnp.float32)],
        ),
        compiler_params=pltpu.CompilerParams(
            # batch halves are independent ("parallel"); time chunks are a serial
            # recurrence ("arbitrary").
            dimension_semantics=("parallel", "arbitrary")),
    )(gx, w_hh, b_hh.reshape(1, 3 * H))

    return out[:M, :B, :].transpose(1, 0, 2)                       # (B, m, H)


# ----------------------------------------------------------------------------
# Pure-JAX reference.  param_dtype=float32 reproduces the PyTorch f32 module;
# param_dtype=bfloat16 mimics the kernel's documented weight rounding so the
# Pallas implementation itself can be checked tightly.
# ----------------------------------------------------------------------------
def _reference_forward(x, params, param_dtype=jnp.float32):
    (w_conv, b_conv, w_fc, b_fc, w_ih, w_hh, b_ih, b_hh) = params
    B, M, h, w, C = x.shape
    H = w_hh.shape[0]
    hi = lax.Precision.HIGHEST
    q = lambda a: a.astype(param_dtype).astype(jnp.float32)
    w_fc_q, w_ih_q, w_hh_q = q(w_fc), q(w_ih), q(w_hh)

    xf = x.reshape(B * M, h, w, C)
    conv = lax.conv_general_dilated(
        xf, w_conv, window_strides=(1, 1), padding="VALID",
        dimension_numbers=("NHWC", "HWIO", "NHWC"), precision=hi) + b_conv
    N, hp, wp, O = conv.shape
    feat = conv.transpose(0, 3, 1, 2).reshape(B, M, O * hp * wp)    # PyTorch NCHW flatten
    x_gru = jnp.einsum("bmf,fo->bmo", feat, w_fc_q, precision=hi) + b_fc

    def step(hdd, x_t):
        gx = jnp.dot(x_t, w_ih_q, precision=hi) + b_ih
        gh = jnp.dot(q(hdd), w_hh_q, precision=hi) + b_hh
        r = jax.nn.sigmoid(gx[:, :H] + gh[:, :H])
        z = jax.nn.sigmoid(gx[:, H:2 * H] + gh[:, H:2 * H])
        n = jnp.tanh(gx[:, 2 * H:] + r * gh[:, 2 * H:])
        h_new = (1.0 - z) * n + z * hdd
        return h_new, h_new

    h0 = jnp.zeros((B, H), jnp.float32)
    _, outs = lax.scan(step, h0, x_gru.transpose(1, 0, 2))
    return outs.transpose(1, 0, 2)


if __name__ == "__main__":
    # Small shapes consistent with the module: batch=2, seq m=8, spatial 8x8, channels=2.
    B, M, h, w, C = 2, 8, 8, 8, 2
    O_CONV, H_GRU, FC_OUT = 256, 128, 256
    hp, wp = h - 2, w - 2
    F = O_CONV * hp * wp

    key = jax.random.PRNGKey(0)
    ks = jax.random.split(key, 9)

    x = jax.random.normal(ks[0], (B, M, h, w, C), jnp.float32)

    cb = 1.0 / jnp.sqrt(jnp.float32(C * 9))
    w_conv = jax.random.uniform(ks[1], (3, 3, C, O_CONV), jnp.float32, -cb, cb)
    b_conv = jax.random.uniform(ks[2], (O_CONV,), jnp.float32, -cb, cb)

    fb = 1.0 / jnp.sqrt(jnp.float32(F))
    w_fc = jax.random.uniform(ks[3], (F, FC_OUT), jnp.float32, -fb, fb)   # rows in NCHW order
    b_fc = jax.random.uniform(ks[4], (FC_OUT,), jnp.float32, -fb, fb)

    gb = 1.0 / jnp.sqrt(jnp.float32(H_GRU))
    # Fused GRU weights, gate order (r, z, n), stored pre-transposed for right-multiply.
    w_ih = jax.random.uniform(ks[5], (FC_OUT, 3 * H_GRU), jnp.float32, -gb, gb)
    w_hh = jax.random.uniform(ks[6], (H_GRU, 3 * H_GRU), jnp.float32, -gb, gb)
    b_ih = jax.random.uniform(ks[7], (3 * H_GRU,), jnp.float32, -gb, gb)
    b_hh = jax.random.uniform(ks[8], (3 * H_GRU,), jnp.float32, -gb, gb)

    params = (w_conv, b_conv, w_fc, b_fc, w_ih, w_hh, b_ih, b_hh)

    # One-time, off-the-hot-path weight prep (NCHW->NHWC fold into w_fc, bf16 weights).
    PARAM_DTYPE = jnp.bfloat16
    prepped = prepare_params(*params, hp=hp, wp=wp, param_dtype=PARAM_DTYPE)

    out = local_motion_extractor_forward(x, *prepped)
    out = jax.block_until_ready(out)
    assert out.shape == (B, M, H_GRU), out.shape

    # Tight check of the Pallas kernels against a reference with identical (bf16-rounded) weights.
    ref_q = _reference_forward(x, params, param_dtype=PARAM_DTYPE)
    err_q = float(jnp.max(jnp.abs(out - ref_q)))
    assert jnp.allclose(out, ref_q, rtol=1e-3, atol=1e-3), f"kernel mismatch: {err_q}"

    # Loose check against the exact f32 PyTorch-equivalent reference (bf16 weight rounding only).
    ref_f32 = _reference_forward(x, params, param_dtype=jnp.float32)
    err_f32 = float(jnp.max(jnp.abs(out - ref_f32)))
    assert jnp.allclose(out, ref_f32, rtol=5e-2, atol=5e-2), f"f32 deviation too large: {err_f32}"

    print("KERNEL_OK")
</pallas_src>

<mosaic_0001>
module attributes {stable_mosaic.version = 11 : i64} {
  func.func @_matmul_bias_kernel(%arg0: i32, %arg1: i32, %arg2: i32, %arg3: memref<288x128xf32, #tpu.memory_space<vmem>>, %arg4: memref<128x128xf32, #tpu.memory_space<vmem>>, %arg5: memref<1x128xf32, #tpu.memory_space<vmem>>, %arg6: memref<288x128xf32, #tpu.memory_space<vmem>>, %arg7: memref<288x128xf32, #tpu.memory_space<vmem>>) attributes {dimension_semantics = [#tpu.dimension_semantics<parallel>, #tpu.dimension_semantics<parallel>, #tpu.dimension_semantics<arbitrary>], iteration_bounds = array<i64: 2, 2, 1>, scalar_prefetch = 0 : i64, scratch_operands = 1 : i64, tpu.core_type = #tpu.core_type<tc>, window_params = [{transform_indices = @transform_0, window_bounds = array<i64: 288, 128>}, {transform_indices = @transform_1, window_bounds = array<i64: 128, 128>}, {transform_indices = @transform_2, window_bounds = array<i64: 1, 128>}, {transform_indices = @transform_3, window_bounds = array<i64: 288, 128>}]} {
    %c0_i32 = arith.constant 0 : i32
    %0 = arith.cmpi eq, %arg2, %c0_i32 : i32
    %1 = arith.extui %0 : i1 to i32
    %c0_i32_0 = arith.constant 0 : i32
    %2 = arith.cmpi ne, %1, %c0_i32_0 : i32
    scf.if %2 {
      %cst_10 = arith.constant 0.000000e+00 : f32
      %12 = vector.broadcast %cst_10 : f32 to vector<288x128xf32>
      %c0_11 = arith.constant 0 : index
      %c0_12 = arith.constant 0 : index
      %13 = vector.load %arg7[%c0_11, %c0_12] : memref<288x128xf32, #tpu.memory_space<vmem>>, vector<288x128xf32>
      tpu.vector_store %arg7[%c0_11, %c0_12], %12 {strides = array<i32>} : memref<288x128xf32, #tpu.memory_space<vmem>>, vector<288x128xf32>,
    } else {
    }
    %c0 = arith.constant 0 : index
    %c0_1 = arith.constant 0 : index
    %3 = vector.load %arg7[%c0, %c0_1] : memref<288x128xf32, #tpu.memory_space<vmem>>, vector<288x128xf32>
    %c0_2 = arith.constant 0 : index
    %c0_3 = arith.constant 0 : index
    %4 = vector.load %arg3[%c0_2, %c0_3] : memref<288x128xf32, #tpu.memory_space<vmem>>, vector<288x128xf32>
    %c0_4 = arith.constant 0 : index
    %c0_5 = arith.constant 0 : index
    %5 = vector.load %arg4[%c0_4, %c0_5] : memref<128x128xf32, #tpu.memory_space<vmem>>, vector<128x128xf32>
    %cst = arith.constant dense<0.000000e+00> : vector<288x128xf32>
    %6 = tpu.matmul %4, %5, %cst {dimension_numbers = #tpu.dot_dimension_numbers<[1], [0], [0], [1], [0, 0, 1, 1], [], []>} : vector<288x128xf32>, vector<128x128xf32>, vector<288x128xf32> -> vector<288x128xf32>
    %7 = arith.addf %3, %6 : vector<288x128xf32>
    %c0_6 = arith.constant 0 : index
    %c0_7 = arith.constant 0 : index
    %8 = vector.load %arg7[%c0_6, %c0_7] : memref<288x128xf32, #tpu.memory_space<vmem>>, vector<288x128xf32>
    tpu.vector_store %arg7[%c0_6, %c0_7], %7 {strides = array<i32>} : memref<288x128xf32, #tpu.memory_space<vmem>>, vector<288x128xf32>,
    %c0_i32_8 = arith.constant 0 : i32
    %9 = arith.cmpi eq, %arg2, %c0_i32_8 : i32
    %10 = arith.extui %9 : i1 to i32
    %c0_i32_9 = arith.constant 0 : i32
    %11 = arith.cmpi ne, %10, %c0_i32_9 : i32
    scf.if %11 {
      %c0_10 = arith.constant 0 : index
      %c0_11 = arith.constant 0 : index
      %12 = vector.load %arg7[%c0_10, %c0_11] : memref<288x128xf32, #tpu.memory_space<vmem>>, vector<288x128xf32>
      %c0_12 = arith.constant 0 : index
      %c0_13 = arith.constant 0 : index
      %13 = vector.load %arg5[%c0_12, %c0_13] : memref<1x128xf32, #tpu.memory_space<vmem>>, vector<1x128xf32>
      %14 = vector.broadcast %13 : vector<1x128xf32> to vector<288x128xf32>
      %15 = arith.addf %12, %14 : vector<288x128xf32>
      %c0_14 = arith.constant 0 : index
      %c0_15 = arith.constant 0 : index
      %16 = vector.load %arg6[%c0_14, %c0_15] : memref<288x128xf32, #tpu.memory_space<vmem>>, vector<288x128xf32>
      tpu.vector_store %arg6[%c0_14, %c0_15], %15 {strides = array<i32>} : memref<288x128xf32, #tpu.memory_space<vmem>>, vector<288x128xf32>,
    } else {
    }
    return
  }
  func.func @transform_0(%arg0: i32, %arg1: i32, %arg2: i32) -> (i32, i32) {
    %c0_i32 = arith.constant 0 : i32
    return %arg0, %arg2 : i32, i32
  }
  func.func @transform_1(%arg0: i32, %arg1: i32, %arg2: i32) -> (i32, i32) {
    %c0_i32 = arith.constant 0 : i32
    return %arg2, %arg1 : i32, i32
  }
  func.func @transform_2(%arg0: i32, %arg1: i32, %arg2: i32) -> (i32, i32) {
    %c0_i32 = arith.constant 0 : i32
    %c0_i32_0 = arith.constant 0 : i32
    return %c0_i32, %arg1 : i32, i32
  }
  func.func @transform_3(%arg0: i32, %arg1: i32, %arg2: i32) -> (i32, i32) {
    %c0_i32 = arith.constant 0 : i32
    return %arg0, %arg1 : i32, i32
  }
}

module attributes {stable_mosaic.version = 11 : i64} {
  func.func @_matmul_bias_kernel(%arg0: i32, %arg1: i32, %arg2: i32, %arg3: memref<16x2304xf32, #tpu.memory_space<vmem>>, %arg4: memref<2304x128xbf16, #tpu.memory_space<vmem>>, %arg5: memref<1x128xf32, #tpu.memory_space<vmem>>, %arg6: memref<16x128xf32, #tpu.memory_space<vmem>>, %arg7: memref<16x128xf32, #tpu.memory_space<vmem>>) attributes {dimension_semantics = [#tpu.dimension_semantics<parallel>, #tpu.dimension_semantics<parallel>, #tpu.dimension_semantics<arbitrary>], iteration_bounds = array<i64: 1, 2, 4>, scalar_prefetch = 0 : i64, scratch_operands = 1 : i64, tpu.core_type = #tpu.core_type<tc>, window_params = [{transform_indices = @transform_0, window_bounds = array<i64: 16, 2304>}, {transform_indices = @transform_1, window_bounds = array<i64: 2304, 128>}, {transform_indices = @transform_2, window_bounds = array<i64: 1, 128>}, {transform_indices = @transform_3, window_bounds = array<i64: 16, 128>}]} {
    %c0_i32 = arith.constant 0 : i32
    %0 = arith.cmpi eq, %arg2, %c0_i32 : i32
    %1 = arith.extui %0 : i1 to i32
    %c0_i32_0 = arith.constant 0 : i32
    %2 = arith.cmpi ne, %1, %c0_i32_0 : i32
    scf.if %2 {
      %cst_9 = arith.constant 0.000000e+00 : f32
      %12 = vector.broadcast %cst_9 : f32 to vector<16x128xf32>
      %c0_10 = arith.constant 0 : index
      %c0_11 = arith.constant 0 : index
      %13 = vector.load %arg7[%c0_10, %c0_11] : memref<16x128xf32, #tpu.memory_space<vmem>>, vector<16x128xf32>
      tpu.vector_store %arg7[%c0_10, %c0_11], %12 {strides = array<i32>} : memref<16x128xf32, #tpu.memory_space<vmem>>, vector<16x128xf32>,
    } else {
    }
    %c0 = arith.constant 0 : index
    %c0_1 = arith.constant 0 : index
    %3 = vector.load %arg7[%c0, %c0_1] : memref<16x128xf32, #tpu.memory_space<vmem>>, vector<16x128xf32>
    %c0_2 = arith.constant 0 : index
    %c0_3 = arith.constant 0 : index
    %4 = vector.load %arg3[%c0_2, %c0_3] : memref<16x2304xf32, #tpu.memory_space<vmem>>, vector<16x2304xf32>
    %c0_4 = arith.constant 0 : index
    %c0_5 = arith.constant 0 : index
    %5 = vector.load %arg4[%c0_4, %c0_5] : memref<2304x128xbf16, #tpu.memory_space<vmem>>, vector<2304x128xbf16>
    %cst = arith.constant dense<0.000000e+00> : vector<16x128xf32>
    %6 = tpu.matmul %4, %5, %cst {dimension_numbers = #tpu.dot_dimension_numbers<[1], [0], [0], [1], [0, 0, 1, 1], [], []>} : vector<16x2304xf32>, vector<2304x128xbf16>, vector<16x128xf32> -> vector<16x128xf32>
    %7 = arith.addf %3, %6 : vector<16x128xf32>
    %c0_6 = arith.constant 0 : index
    %c0_7 = arith.constant 0 : index
    %8 = vector.load %arg7[%c0_6, %c0_7] : memref<16x128xf32, #tpu.memory_space<vmem>>, vector<16x128xf32>
    tpu.vector_store %arg7[%c0_6, %c0_7], %7 {strides = array<i32>} : memref<16x128xf32, #tpu.memory_space<vmem>>, vector<16x128xf32>,
    %c3_i32 = arith.constant 3 : i32
    %9 = arith.cmpi eq, %arg2, %c3_i32 : i32
    %10 = arith.extui %9 : i1 to i32
    %c0_i32_8 = arith.constant 0 : i32
    %11 = arith.cmpi ne, %10, %c0_i32_8 : i32
    scf.if %11 {
      %c0_9 = arith.constant 0 : index
      %c0_10 = arith.constant 0 : index
      %12 = vector.load %arg7[%c0_9, %c0_10] : memref<16x128xf32, #tpu.memory_space<vmem>>, vector<16x128xf32>
      %c0_11 = arith.constant 0 : index
      %c0_12 = arith.constant 0 : index
      %13 = vector.load %arg5[%c0_11, %c0_12] : memref<1x128xf32, #tpu.memory_space<vmem>>, vector<1x128xf32>
      %14 = vector.broadcast %13 : vector<1x128xf32> to vector<16x128xf32>
      %15 = arith.addf %12, %14 : vector<16x128xf32>
      %c0_13 = arith.constant 0 : index
      %c0_14 = arith.constant 0 : index
      %16 = vector.load %arg6[%c0_13, %c0_14] : memref<16x128xf32, #tpu.memory_space<vmem>>, vector<16x128xf32>
      tpu.vector_store %arg6[%c0_13, %c0_14], %15 {strides = array<i32>} : memref<16x128xf32, #tpu.memory_space<vmem>>, vector<16x128xf32>,
    } else {
    }
    return
  }
  func.func @transform_0(%arg0: i32, %arg1: i32, %arg2: i32) -> (i32, i32) {
    %c0_i32 = arith.constant 0 : i32
    return %arg0, %arg2 : i32, i32
  }
  func.func @transform_1(%arg0: i32, %arg1: i32, %arg2: i32) -> (i32, i32) {
    %c0_i32 = arith.constant 0 : i32
    return %arg2, %arg1 : i32, i32
  }
  func.func @transform_2(%arg0: i32, %arg1: i32, %arg2: i32) -> (i32, i32) {
    %c0_i32 = arith.constant 0 : i32
    %c0_i32_0 = arith.constant 0 : i32
    return %c0_i32, %arg1 : i32, i32
  }
  func.func @transform_3(%arg0: i32, %arg1: i32, %arg2: i32) -> (i32, i32) {
    %c0_i32 = arith.constant 0 : i32
    return %arg0, %arg1 : i32, i32
  }
}

module attributes {stable_mosaic.version = 11 : i64} {
  func.func @_matmul_bias_kernel(%arg0: i32, %arg1: i32, %arg2: i32, %arg3: memref<16x256xf32, #tpu.memory_space<vmem>>, %arg4: memref<256x128xbf16, #tpu.memory_space<vmem>>, %arg5: memref<1x128xf32, #tpu.memory_space<vmem>>, %arg6: memref<16x128xf32, #tpu.memory_space<vmem>>, %arg7: memref<16x128xf32, #tpu.memory_space<vmem>>) attributes {dimension_semantics = [#tpu.dimension_semantics<parallel>, #tpu.dimension_semantics<parallel>, #tpu.dimension_semantics<arbitrary>], iteration_bounds = array<i64: 1, 3, 1>, scalar_prefetch = 0 : i64, scratch_operands = 1 : i64, tpu.core_type = #tpu.core_type<tc>, window_params = [{transform_indices = @transform_0, window_bounds = array<i64: 16, 256>}, {transform_indices = @transform_1, window_bounds = array<i64: 256, 128>}, {transform_indices = @transform_2, window_bounds = array<i64: 1, 128>}, {transform_indices = @transform_3, window_bounds = array<i64: 16, 128>}]} {
    %c0_i32 = arith.constant 0 : i32
    %0 = arith.cmpi eq, %arg2, %c0_i32 : i32
    %1 = arith.extui %0 : i1 to i32
    %c0_i32_0 = arith.constant 0 : i32
    %2 = arith.cmpi ne, %1, %c0_i32_0 : i32
    scf.if %2 {
      %cst_10 = arith.constant 0.000000e+00 : f32
      %12 = vector.broadcast %cst_10 : f32 to vector<16x128xf32>
      %c0_11 = arith.constant 0 : index
      %c0_12 = arith.constant 0 : index
      %13 = vector.load %arg7[%c0_11, %c0_12] : memref<16x128xf32, #tpu.memory_space<vmem>>, vector<16x128xf32>
      tpu.vector_store %arg7[%c0_11, %c0_12], %12 {strides = array<i32>} : memref<16x128xf32, #tpu.memory_space<vmem>>, vector<16x128xf32>,
    } else {
    }
    %c0 = arith.constant 0 : index
    %c0_1 = arith.constant 0 : index
    %3 = vector.load %arg7[%c0, %c0_1] : memref<16x128xf32, #tpu.memory_space<vmem>>, vector<16x128xf32>
    %c0_2 = arith.constant 0 : index
    %c0_3 = arith.constant 0 : index
    %4 = vector.load %arg3[%c0_2, %c0_3] : memref<16x256xf32, #tpu.memory_space<vmem>>, vector<16x256xf32>
    %c0_4 = arith.constant 0 : index
    %c0_5 = arith.constant 0 : index
    %5 = vector.load %arg4[%c0_4, %c0_5] : memref<256x128xbf16, #tpu.memory_space<vmem>>, vector<256x128xbf16>
    %cst = arith.constant dense<0.000000e+00> : vector<16x128xf32>
    %6 = tpu.matmul %4, %5, %cst {dimension_numbers = #tpu.dot_dimension_numbers<[1], [0], [0], [1], [0, 0, 1, 1], [], []>} : vector<16x256xf32>, vector<256x128xbf16>, vector<16x128xf32> -> vector<16x128xf32>
    %7 = arith.addf %3, %6 : vector<16x128xf32>
    %c0_6 = arith.constant 0 : index
    %c0_7 = arith.constant 0 : index
    %8 = vector.load %arg7[%c0_6, %c0_7] : memref<16x128xf32, #tpu.memory_space<vmem>>, vector<16x128xf32>
    tpu.vector_store %arg7[%c0_6, %c0_7], %7 {strides = array<i32>} : memref<16x128xf32, #tpu.memory_space<vmem>>, vector<16x128xf32>,
    %c0_i32_8 = arith.constant 0 : i32
    %9 = arith.cmpi eq, %arg2, %c0_i32_8 : i32
    %10 = arith.extui %9 : i1 to i32
    %c0_i32_9 = arith.constant 0 : i32
    %11 = arith.cmpi ne, %10, %c0_i32_9 : i32
    scf.if %11 {
      %c0_10 = arith.constant 0 : index
      %c0_11 = arith.constant 0 : index
      %12 = vector.load %arg7[%c0_10, %c0_11] : memref<16x128xf32, #tpu.memory_space<vmem>>, vector<16x128xf32>
      %c0_12 = arith.constant 0 : index
      %c0_13 = arith.constant 0 : index
      %13 = vector.load %arg5[%c0_12, %c0_13] : memref<1x128xf32, #tpu.memory_space<vmem>>, vector<1x128xf32>
      %14 = vector.broadcast %13 : vector<1x128xf32> to vector<16x128xf32>
      %15 = arith.addf %12, %14 : vector<16x128xf32>
      %c0_14 = arith.constant 0 : index
      %c0_15 = arith.constant 0 : index
      %16 = vector.load %arg6[%c0_14, %c0_15] : memref<16x128xf32, #tpu.memory_space<vmem>>, vector<16x128xf32>
      tpu.vector_store %arg6[%c0_14, %c0_15], %15 {strides = array<i32>} : memref<16x128xf32, #tpu.memory_space<vmem>>, vector<16x128xf32>,
    } else {
    }
    return
  }
  func.func @transform_0(%arg0: i32, %arg1: i32, %arg2: i32) -> (i32, i32) {
    %c0_i32 = arith.constant 0 : i32
    return %arg0, %arg2 : i32, i32
  }
  func.func @transform_1(%arg0: i32, %arg1: i32, %arg2: i32) -> (i32, i32) {
    %c0_i32 = arith.constant 0 : i32
    return %arg2, %arg1 : i32, i32
  }
  func.func @transform_2(%arg0: i32, %arg1: i32, %arg2: i32) -> (i32, i32) {
    %c0_i32 = arith.constant 0 : i32
    %c0_i32_0 = arith.constant 0 : i32
    return %c0_i32, %arg1 : i32, i32
  }
  func.func @transform_3(%arg0: i32, %arg1: i32, %arg2: i32) -> (i32, i32) {
    %c0_i32 = arith.constant 0 : i32
    return %arg0, %arg1 : i32, i32
  }
}

module attributes {stable_mosaic.version = 11 : i64} {
  func.func @_gru_chunk_kernel(%arg0: i32, %arg1: i32, %arg2: memref<8x8x384xf32, #tpu.memory_space<vmem>>, %arg3: memref<128x384xbf16, #tpu.memory_space<vmem>>, %arg4: memref<1x384xf32, #tpu.memory_space<vmem>>, %arg5: memref<8x8x128xf32, #tpu.memory_space<vmem>>, %arg6: memref<8x128xf32, #tpu.memory_space<vmem>>) attributes {dimension_semantics = [#tpu.dimension_semantics<parallel>, #tpu.dimension_semantics<arbitrary>], iteration_bounds = array<i64: 1, 1>, scalar_prefetch = 0 : i64, scratch_operands = 1 : i64, tpu.core_type = #tpu.core_type<tc>, window_params = [{transform_indices = @transform_0, window_bounds = array<i64: 8, 8, 384>}, {pipeline_mode = #tpu.pipeline_mode<synchronous>, transform_indices = @transform_1, window_bounds = array<i64: 128, 384>}, {pipeline_mode = #tpu.pipeline_mode<synchronous>, transform_indices = @transform_2, window_bounds = array<i64: 1, 384>}, {transform_indices = @transform_3, window_bounds = array<i64: 8, 8, 128>}]} {
    %c0_i32 = arith.constant 0 : i32
    %0 = arith.cmpi eq, %arg1, %c0_i32 : i32
    %1 = arith.extui %0 : i1 to i32
    %c0_i32_0 = arith.constant 0 : i32
    %2 = arith.cmpi ne, %1, %c0_i32_0 : i32
    scf.if %2 {
      %cst_72 = arith.constant 0.000000e+00 : f32
      %297 = vector.broadcast %cst_72 : f32 to vector<8x128xf32>
      %c0_73 = arith.constant 0 : index
      %c0_74 = arith.constant 0 : index
      %298 = vector.load %arg6[%c0_73, %c0_74] : memref<8x128xf32, #tpu.memory_space<vmem>>, vector<8x128xf32>
      tpu.vector_store %arg6[%c0_73, %c0_74], %297 {strides = array<i32>} : memref<8x128xf32, #tpu.memory_space<vmem>>, vector<8x128xf32>,
    } else {
    }
    %c0 = arith.constant 0 : index
    %c0_1 = arith.constant 0 : index
    %3 = vector.load %arg3[%c0, %c0_1] : memref<128x384xbf16, #tpu.memory_space<vmem>>, vector<128x384xbf16>
    %c0_2 = arith.constant 0 : index
    %c0_3 = arith.constant 0 : index
    %4 = vector.load %arg4[%c0_2, %c0_3] : memref<1x384xf32, #tpu.memory_space<vmem>>, vector<1x384xf32>
    %5 = vector.shape_cast %4 : vector<1x384xf32> to vector<1x384xf32>
    %6 = vector.broadcast %5 : vector<1x384xf32> to vector<8x384xf32>
    %c0_4 = arith.constant 0 : index
    %c0_5 = arith.constant 0 : index
    %7 = vector.load %arg6[%c0_4, %c0_5] : memref<8x128xf32, #tpu.memory_space<vmem>>, vector<8x128xf32>
    %c0_i32_6 = arith.constant 0 : i32
    %8 = arith.index_cast %c0_i32_6 : i32 to index
    %c0_7 = arith.constant 0 : index
    %c0_8 = arith.constant 0 : index
    %9 = vector.load %arg2[%8, %c0_7, %c0_8] : memref<8x8x384xf32, #tpu.memory_space<vmem>>, vector<1x8x384xf32>
    %10 = vector.shape_cast %9 : vector<1x8x384xf32> to vector<8x384xf32>
    %11 = arith.truncf %7 : vector<8x128xf32> to vector<8x128xbf16>
    %cst = arith.constant dense<0.000000e+00> : vector<8x384xf32>
    %12 = tpu.matmul %11, %3, %cst {dimension_numbers = #tpu.dot_dimension_numbers<[1], [0], [0], [1], [0, 0, 1, 1], [], []>} : vector<8x128xbf16>, vector<128x384xbf16>, vector<8x384xf32> -> vector<8x384xf32>
    %13 = arith.addf %12, %6 : vector<8x384xf32>
    %14 = vector.extract_strided_slice %10 {offsets = [0, 0], sizes = [8, 128], strides = [1, 1]} : vector<8x384xf32> to vector<8x128xf32>
    %15 = vector.extract_strided_slice %13 {offsets = [0, 0], sizes = [8, 128], strides = [1, 1]} : vector<8x384xf32> to vector<8x128xf32>
    %16 = arith.addf %14, %15 : vector<8x128xf32>
    %17 = arith.negf %16 : vector<8x128xf32>
    %18 = math.exp %17 : vector<8x128xf32>
    %cst_9 = arith.constant 1.000000e+00 : f32
    %19 = vector.broadcast %cst_9 : f32 to vector<8x128xf32>
    %20 = arith.addf %19, %18 : vector<8x128xf32>
    %21 = arith.divf %19, %20 : vector<8x128xf32>
    %22 = vector.extract_strided_slice %10 {offsets = [0, 128], sizes = [8, 128], strides = [1, 1]} : vector<8x384xf32> to vector<8x128xf32>
    %23 = vector.extract_strided_slice %13 {offsets = [0, 128], sizes = [8, 128], strides = [1, 1]} : vector<8x384xf32> to vector<8x128xf32>
    %24 = arith.addf %22, %23 : vector<8x128xf32>
    %25 = arith.negf %24 : vector<8x128xf32>
    %26 = math.exp %25 : vector<8x128xf32>
    %cst_10 = arith.constant 1.000000e+00 : f32
    %27 = vector.broadcast %cst_10 : f32 to vector<8x128xf32>
    %28 = arith.addf %27, %26 : vector<8x128xf32>
    %29 = arith.divf %27, %28 : vector<8x128xf32>
    %30 = vector.extract_strided_slice %10 {offsets = [0, 256], sizes = [8, 128], strides = [1, 1]} : vector<8x384xf32> to vector<8x128xf32>
    %31 = vector.extract_strided_slice %13 {offsets = [0, 256], sizes = [8, 128], strides = [1, 1]} : vector<8x384xf32> to vector<8x128xf32>
    %32 = arith.mulf %21, %31 : vector<8x128xf32>
    %33 = arith.addf %30, %32 : vector<8x128xf32>
    %34 = math.tanh %33 : vector<8x128xf32>
    %cst_11 = arith.constant 1.000000e+00 : f32
    %35 = vector.broadcast %cst_11 : f32 to vector<8x128xf32>
    %36 = arith.subf %35, %29 : vector<8x128xf32>
    %37 = arith.mulf %36, %34 : vector<8x128xf32>
    %38 = arith.mulf %29, %7 : vector<8x128xf32>
    %39 = arith.addf %37, %38 : vector<8x128xf32>
    %40 = arith.index_cast %c0_i32_6 : i32 to index
    %c0_12 = arith.constant 0 : index
    %c0_13 = arith.constant 0 : index
    %41 = vector.load %arg5[%40, %c0_12, %c0_13] : memref<8x8x128xf32, #tpu.memory_space<vmem>>, vector<1x8x128xf32>
    %42 = vector.shape_cast %41 : vector<1x8x128xf32> to vector<8x128xf32>
    %43 = vector.shape_cast %39 : vector<8x128xf32> to vector<1x8x128xf32>
    tpu.vector_store %arg5[%40, %c0_12, %c0_13], %43 {strides = array<i32>} : memref<8x8x128xf32, #tpu.memory_space<vmem>>, vector<1x8x128xf32>,
    %c1_i32 = arith.constant 1 : i32
    %44 = arith.index_cast %c1_i32 : i32 to index
    %c0_14 = arith.constant 0 : index
    %c0_15 = arith.constant 0 : index
    %45 = vector.load %arg2[%44, %c0_14, %c0_15] : memref<8x8x384xf32, #tpu.memory_space<vmem>>, vector<1x8x384xf32>
    %46 = vector.shape_cast %45 : vector<1x8x384xf32> to vector<8x384xf32>
    %47 = arith.truncf %39 : vector<8x128xf32> to vector<8x128xbf16>
    %cst_16 = arith.constant dense<0.000000e+00> : vector<8x384xf32>
    %48 = tpu.matmul %47, %3, %cst_16 {dimension_numbers = #tpu.dot_dimension_numbers<[1], [0], [0], [1], [0, 0, 1, 1], [], []>} : vector<8x128xbf16>, vector<128x384xbf16>, vector<8x384xf32> -> vector<8x384xf32>
    %49 = arith.addf %48, %6 : vector<8x384xf32>
    %50 = vector.extract_strided_slice %46 {offsets = [0, 0], sizes = [8, 128], strides = [1, 1]} : vector<8x384xf32> to vector<8x128xf32>
    %51 = vector.extract_strided_slice %49 {offsets = [0, 0], sizes = [8, 128], strides = [1, 1]} : vector<8x384xf32> to vector<8x128xf32>
    %52 = arith.addf %50, %51 : vector<8x128xf32>
    %53 = arith.negf %52 : vector<8x128xf32>
    %54 = math.exp %53 : vector<8x128xf32>
    %cst_17 = arith.constant 1.000000e+00 : f32
    %55 = vector.broadcast %cst_17 : f32 to vector<8x128xf32>
    %56 = arith.addf %55, %54 : vector<8x128xf32>
    %57 = arith.divf %55, %56 : vector<8x128xf32>
    %58 = vector.extract_strided_slice %46 {offsets = [0, 128], sizes = [8, 128], strides = [1, 1]} : vector<8x384xf32> to vector<8x128xf32>
    %59 = vector.extract_strided_slice %49 {offsets = [0, 128], sizes = [8, 128], strides = [1, 1]} : vector<8x384xf32> to vector<8x128xf32>
    %60 = arith.addf %58, %59 : vector<8x128xf32>
    %61 = arith.negf %60 : vector<8x128xf32>
    %62 = math.exp %61 : vector<8x128xf32>
    %cst_18 = arith.constant 1.000000e+00 : f32
    %63 = vector.broadcast %cst_18 : f32 to vector<8x128xf32>
    %64 = arith.addf %63, %62 : vector<8x128xf32>
    %65 = arith.divf %63, %64 : vector<8x128xf32>
    %66 = vector.extract_strided_slice %46 {offsets = [0, 256], sizes = [8, 128], strides = [1, 1]} : vector<8x384xf32> to vector<8x128xf32>
    %67 = vector.extract_strided_slice %49 {offsets = [0, 256], sizes = [8, 128], strides = [1, 1]} : vector<8x384xf32> to vector<8x128xf32>
    %68 = arith.mulf %57, %67 : vector<8x128xf32>
    %69 = arith.addf %66, %68 : vector<8x128xf32>
    %70 = math.tanh %69 : vector<8x128xf32>
    %cst_19 = arith.constant 1.000000e+00 : f32
    %71 = vector.broadcast %cst_19 : f32 to vector<8x128xf32>
    %72 = arith.subf %71, %65 : vector<8x128xf32>
    %73 = arith.mulf %72, %70 : vector<8x128xf32>
    %74 = arith.mulf %65, %39 : vector<8x128xf32>
    %75 = arith.addf %73, %74 : vector<8x128xf32>
    %76 = arith.index_cast %c1_i32 : i32 to index
    %c0_20 = arith.constant 0 : index
    %c0_21 = arith.constant 0 : index
    %77 = vector.load %arg5[%76, %c0_20, %c0_21] : memref<8x8x128xf32, #tpu.memory_space<vmem>>, vector<1x8x128xf32>
    %78 = vector.shape_cast %77 : vector<1x8x128xf32> to vector<8x128xf32>
    %79 = vector.shape_cast %75 : vector<8x128xf32> to vector<1x8x128xf32>
    tpu.vector_store %arg5[%76, %c0_20, %c0_21], %79 {strides = array<i32>} : memref<8x8x128xf32, #tpu.memory_space<vmem>>, vector<1x8x128xf32>,
    %c2_i32 = arith.constant 2 : i32
    %80 = arith.index_cast %c2_i32 : i32 to index
    %c0_22 = arith.constant 0 : index
    %c0_23 = arith.constant 0 : index
    %81 = vector.load %arg2[%80, %c0_22, %c0_23] : memref<8x8x384xf32, #tpu.memory_space<vmem>>, vector<1x8x384xf32>
    %82 = vector.shape_cast %81 : vector<1x8x384xf32> to vector<8x384xf32>
    %83 = arith.truncf %75 : vector<8x128xf32> to vector<8x128xbf16>
    %cst_24 = arith.constant dense<0.000000e+00> : vector<8x384xf32>
    %84 = tpu.matmul %83, %3, %cst_24 {dimension_numbers = #tpu.dot_dimension_numbers<[1], [0], [0], [1], [0, 0, 1, 1], [], []>} : vector<8x128xbf16>, vector<128x384xbf16>, vector<8x384xf32> -> vector<8x384xf32>
    %85 = arith.addf %84, %6 : vector<8x384xf32>
    %86 = vector.extract_strided_slice %82 {offsets = [0, 0], sizes = [8, 128], strides = [1, 1]} : vector<8x384xf32> to vector<8x128xf32>
    %87 = vector.extract_strided_slice %85 {offsets = [0, 0], sizes = [8, 128], strides = [1, 1]} : vector<8x384xf32> to vector<8x128xf32>
    %88 = arith.addf %86, %87 : vector<8x128xf32>
    %89 = arith.negf %88 : vector<8x128xf32>
    %90 = math.exp %89 : vector<8x128xf32>
    %cst_25 = arith.constant 1.000000e+00 : f32
    %91 = vector.broadcast %cst_25 : f32 to vector<8x128xf32>
    %92 = arith.addf %91, %90 : vector<8x128xf32>
    %93 = arith.divf %91, %92 : vector<8x128xf32>
    %94 = vector.extract_strided_slice %82 {offsets = [0, 128], sizes = [8, 128], strides = [1, 1]} : vector<8x384xf32> to vector<8x128xf32>
    %95 = vector.extract_strided_slice %85 {offsets = [0, 128], sizes = [8, 128], strides = [1, 1]} : vector<8x384xf32> to vector<8x128xf32>
    %96 = arith.addf %94, %95 : vector<8x128xf32>
    %97 = arith.negf %96 : vector<8x128xf32>
    %98 = math.exp %97 : vector<8x128xf32>
    %cst_26 = arith.constant 1.000000e+00 : f32
    %99 = vector.broadcast %cst_26 : f32 to vector<8x128xf32>
    %100 = arith.addf %99, %98 : vector<8x128xf32>
    %101 = arith.divf %99, %100 : vector<8x128xf32>
    %102 = vector.extract_strided_slice %82 {offsets = [0, 256], sizes = [8, 128], strides = [1, 1]} : vector<8x384xf32> to vector<8x128xf32>
    %103 = vector.extract_strided_slice %85 {offsets = [0, 256], sizes = [8, 128], strides = [1, 1]} : vector<8x384xf32> to vector<8x128xf32>
    %104 = arith.mulf %93, %103 : vector<8x128xf32>
    %105 = arith.addf %102, %104 : vector<8x128xf32>
    %106 = math.tanh %105 : vector<8x128xf32>
    %cst_27 = arith.constant 1.000000e+00 : f32
    %107 = vector.broadcast %cst_27 : f32 to vector<8x128xf32>
    %108 = arith.subf %107, %101 : vector<8x128xf32>
    %109 = arith.mulf %108, %106 : vector<8x128xf32>
    %110 = arith.mulf %101, %75 : vector<8x128xf32>
    %111 = arith.addf %109, %110 : vector<8x128xf32>
    %112 = arith.index_cast %c2_i32 : i32 to index
    %c0_28 = arith.constant 0 : index
    %c0_29 = arith.constant 0 : index
    %113 = vector.load %arg5[%112, %c0_28, %c0_29] : memref<8x8x128xf32, #tpu.memory_space<vmem>>, vector<1x8x128xf32>
    %114 = vector.shape_cast %113 : vector<1x8x128xf32> to vector<8x128xf32>
    %115 = vector.shape_cast %111 : vector<8x128xf32> to vector<1x8x128xf32>
    tpu.vector_store %arg5[%112, %c0_28, %c0_29], %115 {strides = array<i32>} : memref<8x8x128xf32, #tpu.memory_space<vmem>>, vector<1x8x128xf32>,
    %c3_i32 = arith.constant 3 : i32
    %116 = arith.index_cast %c3_i32 : i32 to index
    %c0_30 = arith.constant 0 : index
    %c0_31 = arith.constant 0 : index
    %117 = vector.load %arg2[%116, %c0_30, %c0_31] : memref<8x8x384xf32, #tpu.memory_space<vmem>>, vector<1x8x384xf32>
    %118 = vector.shape_cast %117 : vector<1x8x384xf32> to vector<8x384xf32>
    %119 = arith.truncf %111 : vector<8x128xf32> to vector<8x128xbf16>
    %cst_32 = arith.constant dense<0.000000e+00> : vector<8x384xf32>
    %120 = tpu.matmul %119, %3, %cst_32 {dimension_numbers = #tpu.dot_dimension_numbers<[1], [0], [0], [1], [0, 0, 1, 1], [], []>} : vector<8x128xbf16>, vector<128x384xbf16>, vector<8x384xf32> -> vector<8x384xf32>
    %121 = arith.addf %120, %6 : vector<8x384xf32>
    %122 = vector.extract_strided_slice %118 {offsets = [0, 0], sizes = [8, 128], strides = [1, 1]} : vector<8x384xf32> to vector<8x128xf32>
    %123 = vector.extract_strided_slice %121 {offsets = [0, 0], sizes = [8, 128], strides = [1, 1]} : vector<8x384xf32> to vector<8x128xf32>
    %124 = arith.addf %122, %123 : vector<8x128xf32>
    %125 = arith.negf %124 : vector<8x128xf32>
    %126 = math.exp %125 : vector<8x128xf32>
    %cst_33 = arith.constant 1.000000e+00 : f32
    %127 = vector.broadcast %cst_33 : f32 to vector<8x128xf32>
    %128 = arith.addf %127, %126 : vector<8x128xf32>
    %129 = arith.divf %127, %128 : vector<8x128xf32>
    %130 = vector.extract_strided_slice %118 {offsets = [0, 128], sizes = [8, 128], strides = [1, 1]} : vector<8x384xf32> to vector<8x128xf32>
    %131 = vector.extract_strided_slice %121 {offsets = [0, 128], sizes = [8, 128], strides = [1, 1]} : vector<8x384xf32> to vector<8x128xf32>
    %132 = arith.addf %130, %131 : vector<8x128xf32>
    %133 = arith.negf %132 : vector<8x128xf32>
    %134 = math.exp %133 : vector<8x128xf32>
    %cst_34 = arith.constant 1.000000e+00 : f32
    %135 = vector.broadcast %cst_34 : f32 to vector<8x128xf32>
    %136 = arith.addf %135, %134 : vector<8x128xf32>
    %137 = arith.divf %135, %136 : vector<8x128xf32>
    %138 = vector.extract_strided_slice %118 {offsets = [0, 256], sizes = [8, 128], strides = [1, 1]} : vector<8x384xf32> to vector<8x128xf32>
    %139 = vector.extract_strided_slice %121 {offsets = [0, 256], sizes = [8, 128], strides = [1, 1]} : vector<8x384xf32> to vector<8x128xf32>
    %140 = arith.mulf %129, %139 : vector<8x128xf32>
    %141 = arith.addf %138, %140 : vector<8x128xf32>
    %142 = math.tanh %141 : vector<8x128xf32>
    %cst_35 = arith.constant 1.000000e+00 : f32
    %143 = vector.broadcast %cst_35 : f32 to vector<8x128xf32>
    %144 = arith.subf %143, %137 : vector<8x128xf32>
    %145 = arith.mulf %144, %142 : vector<8x128xf32>
    %146 = arith.mulf %137, %111 : vector<8x128xf32>
    %147 = arith.addf %145, %146 : vector<8x128xf32>
    %148 = arith.index_cast %c3_i32 : i32 to index
    %c0_36 = arith.constant 0 : index
    %c0_37 = arith.constant 0 : index
    %149 = vector.load %arg5[%148, %c0_36, %c0_37] : memref<8x8x128xf32, #tpu.memory_space<vmem>>, vector<1x8x128xf32>
    %150 = vector.shape_cast %149 : vector<1x8x128xf32> to vector<8x128xf32>
    %151 = vector.shape_cast %147 : vector<8x128xf32> to vector<1x8x128xf32>
    tpu.vector_store %arg5[%148, %c0_36, %c0_37], %151 {strides = array<i32>} : memref<8x8x128xf32, #tpu.memory_space<vmem>>, vector<1x8x128xf32>,
    %c4_i32 = arith.constant 4 : i32
    %152 = arith.index_cast %c4_i32 : i32 to index
    %c0_38 = arith.constant 0 : index
    %c0_39 = arith.constant 0 : index
    %153 = vector.load %arg2[%152, %c0_38, %c0_39] : memref<8x8x384xf32, #tpu.memory_space<vmem>>, vector<1x8x384xf32>
    %154 = vector.shape_cast %153 : vector<1x8x384xf32> to vector<8x384xf32>
    %155 = arith.truncf %147 : vector<8x128xf32> to vector<8x128xbf16>
    %cst_40 = arith.constant dense<0.000000e+00> : vector<8x384xf32>
    %156 = tpu.matmul %155, %3, %cst_40 {dimension_numbers = #tpu.dot_dimension_numbers<[1], [0], [0], [1], [0, 0, 1, 1], [], []>} : vector<8x128xbf16>, vector<128x384xbf16>, vector<8x384xf32> -> vector<8x384xf32>
    %157 = arith.addf %156, %6 : vector<8x384xf32>
    %158 = vector.extract_strided_slice %154 {offsets = [0, 0], sizes = [8, 128], strides = [1, 1]} : vector<8x384xf32> to vector<8x128xf32>
    %159 = vector.extract_strided_slice %157 {offsets = [0, 0], sizes = [8, 128], strides = [1, 1]} : vector<8x384xf32> to vector<8x128xf32>
    %160 = arith.addf %158, %159 : vector<8x128xf32>
    %161 = arith.negf %160 : vector<8x128xf32>
    %162 = math.exp %161 : vector<8x128xf32>
    %cst_41 = arith.constant 1.000000e+00 : f32
    %163 = vector.broadcast %cst_41 : f32 to vector<8x128xf32>
    %164 = arith.addf %163, %162 : vector<8x128xf32>
    %165 = arith.divf %163, %164 : vector<8x128xf32>
    %166 = vector.extract_strided_slice %154 {offsets = [0, 128], sizes = [8, 128], strides = [1, 1]} : vector<8x384xf32> to vector<8x128xf32>
    %167 = vector.extract_strided_slice %157 {offsets = [0, 128], sizes = [8, 128], strides = [1, 1]} : vector<8x384xf32> to vector<8x128xf32>
    %168 = arith.addf %166, %167 : vector<8x128xf32>
    %169 = arith.negf %168 : vector<8x128xf32>
    %170 = math.exp %169 : vector<8x128xf32>
    %cst_42 = arith.constant 1.000000e+00 : f32
    %171 = vector.broadcast %cst_42 : f32 to vector<8x128xf32>
    %172 = arith.addf %171, %170 : vector<8x128xf32>
    %173 = arith.divf %171, %172 : vector<8x128xf32>
    %174 = vector.extract_strided_slice %154 {offsets = [0, 256], sizes = [8, 128], strides = [1, 1]} : vector<8x384xf32> to vector<8x128xf32>
    %175 = vector.extract_strided_slice %157 {offsets = [0, 256], sizes = [8, 128], strides = [1, 1]} : vector<8x384xf32> to vector<8x128xf32>
    %176 = arith.mulf %165, %175 : vector<8x128xf32>
    %177 = arith.addf %174, %176 : vector<8x128xf32>
    %178 = math.tanh %177 : vector<8x128xf32>
    %cst_43 = arith.constant 1.000000e+00 : f32
    %179 = vector.broadcast %cst_43 : f32 to vector<8x128xf32>
    %180 = arith.subf %179, %173 : vector<8x128xf32>
    %181 = arith.mulf %180, %178 : vector<8x128xf32>
    %182 = arith.mulf %173, %147 : vector<8x128xf32>
    %183 = arith.addf %181, %182 : vector<8x128xf32>
    %184 = arith.index_cast %c4_i32 : i32 to index
    %c0_44 = arith.constant 0 : index
    %c0_45 = arith.constant 0 : index
    %185 = vector.load %arg5[%184, %c0_44, %c0_45] : memref<8x8x128xf32, #tpu.memory_space<vmem>>, vector<1x8x128xf32>
    %186 = vector.shape_cast %185 : vector<1x8x128xf32> to vector<8x128xf32>
    %187 = vector.shape_cast %183 : vector<8x128xf32> to vector<1x8x128xf32>
    tpu.vector_store %arg5[%184, %c0_44, %c0_45], %187 {strides = array<i32>} : memref<8x8x128xf32, #tpu.memory_space<vmem>>, vector<1x8x128xf32>,
    %c5_i32 = arith.constant 5 : i32
    %188 = arith.index_cast %c5_i32 : i32 to index
    %c0_46 = arith.constant 0 : index
    %c0_47 = arith.constant 0 : index
    %189 = vector.load %arg2[%188, %c0_46, %c0_47] : memref<8x8x384xf32, #tpu.memory_space<vmem>>, vector<1x8x384xf32>
    %190 = vector.shape_cast %189 : vector<1x8x384xf32> to vector<8x384xf32>
    %191 = arith.truncf %183 : vector<8x128xf32> to vector<8x128xbf16>
    %cst_48 = arith.constant dense<0.000000e+00> : vector<8x384xf32>
    %192 = tpu.matmul %191, %3, %cst_48 {dimension_numbers = #tpu.dot_dimension_numbers<[1], [0], [0], [1], [0, 0, 1, 1], [], []>} : vector<8x128xbf16>, vector<128x384xbf16>, vector<8x384xf32> -> vector<8x384xf32>
    %193 = arith.addf %192, %6 : vector<8x384xf32>
    %194 = vector.extract_strided_slice %190 {offsets = [0, 0], sizes = [8, 128], strides = [1, 1]} : vector<8x384xf32> to vector<8x128xf32>
    %195 = vector.extract_strided_slice %193 {offsets = [0, 0], sizes = [8, 128], strides = [1, 1]} : vector<8x384xf32> to vector<8x128xf32>
    %196 = arith.addf %194, %195 : vector<8x128xf32>
    %197 = arith.negf %196 : vector<8x128xf32>
    %198 = math.exp %197 : vector<8x128xf32>
    %cst_49 = arith.constant 1.000000e+00 : f32
    %199 = vector.broadcast %cst_49 : f32 to vector<8x128xf32>
    %200 = arith.addf %199, %198 : vector<8x128xf32>
    %201 = arith.divf %199, %200 : vector<8x128xf32>
    %202 = vector.extract_strided_slice %190 {offsets = [0, 128], sizes = [8, 128], strides = [1, 1]} : vector<8x384xf32> to vector<8x128xf32>
    %203 = vector.extract_strided_slice %193 {offsets = [0, 128], sizes = [8, 128], strides = [1, 1]} : vector<8x384xf32> to vector<8x128xf32>
    %204 = arith.addf %202, %203 : vector<8x128xf32>
    %205 = arith.negf %204 : vector<8x128xf32>
    %206 = math.exp %205 : vector<8x128xf32>
    %cst_50 = arith.constant 1.000000e+00 : f32
    %207 = vector.broadcast %cst_50 : f32 to vector<8x128xf32>
    %208 = arith.addf %207, %206 : vector<8x128xf32>
    %209 = arith.divf %207, %208 : vector<8x128xf32>
    %210 = vector.extract_strided_slice %190 {offsets = [0, 256], sizes = [8, 128], strides = [1, 1]} : vector<8x384xf32> to vector<8x128xf32>
    %211 = vector.extract_strided_slice %193 {offsets = [0, 256], sizes = [8, 128], strides = [1, 1]} : vector<8x384xf32> to vector<8x128xf32>
    %212 = arith.mulf %201, %211 : vector<8x128xf32>
    %213 = arith.addf %210, %212 : vector<8x128xf32>
    %214 = math.tanh %213 : vector<8x128xf32>
    %cst_51 = arith.constant 1.000000e+00 : f32
    %215 = vector.broadcast %cst_51 : f32 to vector<8x128xf32>
    %216 = arith.subf %215, %209 : vector<8x128xf32>
    %217 = arith.mulf %216, %214 : vector<8x128xf32>
    %218 = arith.mulf %209, %183 : vector<8x128xf32>
    %219 = arith.addf %217, %218 : vector<8x128xf32>
    %220 = arith.index_cast %c5_i32 : i32 to index
    %c0_52 = arith.constant 0 : index
    %c0_53 = arith.constant 0 : index
    %221 = vector.load %arg5[%220, %c0_52, %c0_53] : memref<8x8x128xf32, #tpu.memory_space<vmem>>, vector<1x8x128xf32>
    %222 = vector.shape_cast %221 : vector<1x8x128xf32> to vector<8x128xf32>
    %223 = vector.shape_cast %219 : vector<8x128xf32> to vector<1x8x128xf32>
    tpu.vector_store %arg5[%220, %c0_52, %c0_53], %223 {strides = array<i32>} : memref<8x8x128xf32, #tpu.memory_space<vmem>>, vector<1x8x128xf32>,
    %c6_i32 = arith.constant 6 : i32
    %224 = arith.index_cast %c6_i32 : i32 to index
    %c0_54 = arith.constant 0 : index
    %c0_55 = arith.constant 0 : index
    %225 = vector.load %arg2[%224, %c0_54, %c0_55] : memref<8x8x384xf32, #tpu.memory_space<vmem>>, vector<1x8x384xf32>
    %226 = vector.shape_cast %225 : vector<1x8x384xf32> to vector<8x384xf32>
    %227 = arith.truncf %219 : vector<8x128xf32> to vector<8x128xbf16>
    %cst_56 = arith.constant dense<0.000000e+00> : vector<8x384xf32>
    %228 = tpu.matmul %227, %3, %cst_56 {dimension_numbers = #tpu.dot_dimension_numbers<[1], [0], [0], [1], [0, 0, 1, 1], [], []>} : vector<8x128xbf16>, vector<128x384xbf16>, vector<8x384xf32> -> vector<8x384xf32>
    %229 = arith.addf %228, %6 : vector<8x384xf32>
    %230 = vector.extract_strided_slice %226 {offsets = [0, 0], sizes = [8, 128], strides = [1, 1]} : vector<8x384xf32> to vector<8x128xf32>
    %231 = vector.extract_strided_slice %229 {offsets = [0, 0], sizes = [8, 128], strides = [1, 1]} : vector<8x384xf32> to vector<8x128xf32>
    %232 = arith.addf %230, %231 : vector<8x128xf32>
    %233 = arith.negf %232 : vector<8x128xf32>
    %234 = math.exp %233 : vector<8x128xf32>
    %cst_57 = arith.constant 1.000000e+00 : f32
    %235 = vector.broadcast %cst_57 : f32 to vector<8x128xf32>
    %236 = arith.addf %235, %234 : vector<8x128xf32>
    %237 = arith.divf %235, %236 : vector<8x128xf32>
    %238 = vector.extract_strided_slice %226 {offsets = [0, 128], sizes = [8, 128], strides = [1, 1]} : vector<8x384xf32> to vector<8x128xf32>
    %239 = vector.extract_strided_slice %229 {offsets = [0, 128], sizes = [8, 128], strides = [1, 1]} : vector<8x384xf32> to vector<8x128xf32>
    %240 = arith.addf %238, %239 : vector<8x128xf32>
    %241 = arith.negf %240 : vector<8x128xf32>
    %242 = math.exp %241 : vector<8x128xf32>
    %cst_58 = arith.constant 1.000000e+00 : f32
    %243 = vector.broadcast %cst_58 : f32 to vector<8x128xf32>
    %244 = arith.addf %243, %242 : vector<8x128xf32>
    %245 = arith.divf %243, %244 : vector<8x128xf32>
    %246 = vector.extract_strided_slice %226 {offsets = [0, 256], sizes = [8, 128], strides = [1, 1]} : vector<8x384xf32> to vector<8x128xf32>
    %247 = vector.extract_strided_slice %229 {offsets = [0, 256], sizes = [8, 128], strides = [1, 1]} : vector<8x384xf32> to vector<8x128xf32>
    %248 = arith.mulf %237, %247 : vector<8x128xf32>
    %249 = arith.addf %246, %248 : vector<8x128xf32>
    %250 = math.tanh %249 : vector<8x128xf32>
    %cst_59 = arith.constant 1.000000e+00 : f32
    %251 = vector.broadcast %cst_59 : f32 to vector<8x128xf32>
    %252 = arith.subf %251, %245 : vector<8x128xf32>
    %253 = arith.mulf %252, %250 : vector<8x128xf32>
    %254 = arith.mulf %245, %219 : vector<8x128xf32>
    %255 = arith.addf %253, %254 : vector<8x128xf32>
    %256 = arith.index_cast %c6_i32 : i32 to index
    %c0_60 = arith.constant 0 : index
    %c0_61 = arith.constant 0 : index
    %257 = vector.load %arg5[%256, %c0_60, %c0_61] : memref<8x8x128xf32, #tpu.memory_space<vmem>>, vector<1x8x128xf32>
    %258 = vector.shape_cast %257 : vector<1x8x128xf32> to vector<8x128xf32>
    %259 = vector.shape_cast %255 : vector<8x128xf32> to vector<1x8x128xf32>
    tpu.vector_store %arg5[%256, %c0_60, %c0_61], %259 {strides = array<i32>} : memref<8x8x128xf32, #tpu.memory_space<vmem>>, vector<1x8x128xf32>,
    %c7_i32 = arith.constant 7 : i32
    %260 = arith.index_cast %c7_i32 : i32 to index
    %c0_62 = arith.constant 0 : index
    %c0_63 = arith.constant 0 : index
    %261 = vector.load %arg2[%260, %c0_62, %c0_63] : memref<8x8x384xf32, #tpu.memory_space<vmem>>, vector<1x8x384xf32>
    %262 = vector.shape_cast %261 : vector<1x8x384xf32> to vector<8x384xf32>
    %263 = arith.truncf %255 : vector<8x128xf32> to vector<8x128xbf16>
    %cst_64 = arith.constant dense<0.000000e+00> : vector<8x384xf32>
    %264 = tpu.matmul %263, %3, %cst_64 {dimension_numbers = #tpu.dot_dimension_numbers<[1], [0], [0], [1], [0, 0, 1, 1], [], []>} : vector<8x128xbf16>, vector<128x384xbf16>, vector<8x384xf32> -> vector<8x384xf32>
    %265 = arith.addf %264, %6 : vector<8x384xf32>
    %266 = vector.extract_strided_slice %262 {offsets = [0, 0], sizes = [8, 128], strides = [1, 1]} : vector<8x384xf32> to vector<8x128xf32>
    %267 = vector.extract_strided_slice %265 {offsets = [0, 0], sizes = [8, 128], strides = [1, 1]} : vector<8x384xf32> to vector<8x128xf32>
    %268 = arith.addf %266, %267 : vector<8x128xf32>
    %269 = arith.negf %268 : vector<8x128xf32>
    %270 = math.exp %269 : vector<8x128xf32>
    %cst_65 = arith.constant 1.000000e+00 : f32
    %271 = vector.broadcast %cst_65 : f32 to vector<8x128xf32>
    %272 = arith.addf %271, %270 : vector<8x128xf32>
    %273 = arith.divf %271, %272 : vector<8x128xf32>
    %274 = vector.extract_strided_slice %262 {offsets = [0, 128], sizes = [8, 128], strides = [1, 1]} : vector<8x384xf32> to vector<8x128xf32>
    %275 = vector.extract_strided_slice %265 {offsets = [0, 128], sizes = [8, 128], strides = [1, 1]} : vector<8x384xf32> to vector<8x128xf32>
    %276 = arith.addf %274, %275 : vector<8x128xf32>
    %277 = arith.negf %276 : vector<8x128xf32>
    %278 = math.exp %277 : vector<8x128xf32>
    %cst_66 = arith.constant 1.000000e+00 : f32
    %279 = vector.broadcast %cst_66 : f32 to vector<8x128xf32>
    %280 = arith.addf %279, %278 : vector<8x128xf32>
    %281 = arith.divf %279, %280 : vector<8x128xf32>
    %282 = vector.extract_strided_slice %262 {offsets = [0, 256], sizes = [8, 128], strides = [1, 1]} : vector<8x384xf32> to vector<8x128xf32>
    %283 = vector.extract_strided_slice %265 {offsets = [0, 256], sizes = [8, 128], strides = [1, 1]} : vector<8x384xf32> to vector<8x128xf32>
    %284 = arith.mulf %273, %283 : vector<8x128xf32>
    %285 = arith.addf %282, %284 : vector<8x128xf32>
    %286 = math.tanh %285 : vector<8x128xf32>
    %cst_67 = arith.constant 1.000000e+00 : f32
    %287 = vector.broadcast %cst_67 : f32 to vector<8x128xf32>
    %288 = arith.subf %287, %281 : vector<8x128xf32>
    %289 = arith.mulf %288, %286 : vector<8x128xf32>
    %290 = arith.mulf %281, %255 : vector<8x128xf32>
    %291 = arith.addf %289, %290 : vector<8x128xf32>
    %292 = arith.index_cast %c7_i32 : i32 to index
    %c0_68 = arith.constant 0 : index
    %c0_69 = arith.constant 0 : index
    %293 = vector.load %arg5[%292, %c0_68, %c0_69] : memref<8x8x128xf32, #tpu.memory_space<vmem>>, vector<1x8x128xf32>
    %294 = vector.shape_cast %293 : vector<1x8x128xf32> to vector<8x128xf32>
    %295 = vector.shape_cast %291 : vector<8x128xf32> to vector<1x8x128xf32>
    tpu.vector_store %arg5[%292, %c0_68, %c0_69], %295 {strides = array<i32>} : memref<8x8x128xf32, #tpu.memory_space<vmem>>, vector<1x8x128xf32>,
    %c8_i32 = arith.constant 8 : i32
    %c0_70 = arith.constant 0 : index
    %c0_71 = arith.constant 0 : index
    %296 = vector.load %arg6[%c0_70, %c0_71] : memref<8x128xf32, #tpu.memory_space<vmem>>, vector<8x128xf32>
    tpu.vector_store %arg6[%c0_70, %c0_71], %291 {strides = array<i32>} : memref<8x128xf32, #tpu.memory_space<vmem>>, vector<8x128xf32>,
    return
  }
  func.func @transform_0(%arg0: i32, %arg1: i32) -> (i32, i32, i32) {
    %c0_i32 = arith.constant 0 : i32
    %c0_i32_0 = arith.constant 0 : i32
    return %arg1, %arg0, %c0_i32 : i32, i32, i32
  }
  func.func @transform_1(%arg0: i32, %arg1: i32) -> (i32, i32) {
    %c0_i32 = arith.constant 0 : i32
    %c0_i32_0 = arith.constant 0 : i32
    %c0_i32_1 = arith.constant 0 : i32
    return %c0_i32, %c0_i32_0 : i32, i32
  }
  func.func @transform_2(%arg0: i32, %arg1: i32) -> (i32, i32) {
    %c0_i32 = arith.constant 0 : i32
    %c0_i32_0 = arith.constant 0 : i32
    %c0_i32_1 = arith.constant 0 : i32
    return %c0_i32, %c0_i32_0 : i32, i32
  }
  func.func @transform_3(%arg0: i32, %arg1: i32) -> (i32, i32, i32) {
    %c0_i32 = arith.constant 0 : i32
    %c0_i32_0 = arith.constant 0 : i32
    return %arg1, %arg0, %c0_i32 : i32, i32, i32
  }
}

</mosaic_0001>

<bundles_post_ra>
// kernel: local_motion_extractor_forward.4
= control target key start
LH: loop header
LB: loop body
LE: loop exit
PB: predicated region body
PF: predicated region fallthrough
CT: control target
= control target key end

     0   :  { %s1546_s12 = smov 0   ;;  %s1548_s13 = smov 0   ;;  %s1897_s0 = inlined_call_operand.vmem [shape: f32[576,128], index: 0, kind: input, shape index: {}]   ;;  %s1898_s1 = inlined_call_operand.vmem [shape: f32[128,256], index: 1, kind: input, shape index: {}]   ;;  %s1899_s2 = inlined_call_operand.vmem [shape: f32[1,256], index: 2, kind: input, shape index: {}]   ;;  %s1900_s3 = inlined_call_operand.vmem [shape: f32[576,256], index: 3, kind: output, shape index: {}]  }
   0x1   :  { %s1550_s14 = smov 0   ;;  %s1552_s15 = smov 0  }
   0x2   :  { %s1554_s16 = smov 0   ;;  %s1556_s17 = smov 0  }
   0x3   :  { %s1558_s18 = smov 0   ;;  %s1560_s19 = smov 0  }
   0x4   :  { %s1562_s20 = smov 0  }
   0x5 LB: > { %s1180_s21 = sadd.s32 4294967295, %s1524_s20   ;;  %s28_s22 = sadd.s32 1, %s1516_s18  ;;  %s1524_s20 = sphi %s1562_s20, %s13_s20   ;;  %s1520_s19 = sphi %s1560_s19, %s1909_s19   ;;  %s1516_s18 = sphi %s1558_s18, %s1908_s18   ;;  %s1512_s17 = sphi %s1556_s17, %s1907_s17   ;;  %s1508_s16 = sphi %s1554_s16, %s1906_s16   ;;  %s1504_s15 = sphi %s1552_s15, %s1905_s15   ;;  %s1500_s14 = sphi %s1550_s14, %s1904_s14   ;;  %s1496_s13 = sphi %s1548_s13, %s1903_s13   ;;  %s1492_s12 = sphi %s1546_s12, %s1902_s12  }
   0x6   : > { %p30_p0 = scmp.ge.s32.totalorder %s28_s22, 2  ;;  %s32_s23 = sadd.s32 1, %s1520_s19 }
   0x7   : > { %s69_s24 = sadd.s32 1, %s1504_s15  ;;  %p76_p1 = scmp.ne.s32.totalorder %s1504_s15, %s1500_s14 }
   0x8   : > { %s1911_s22 = smov (%p30_p0, %s28_s22), 0  ;;  %s1913_s23 = smov (!%p30_p0, %s32_s23), %s1520_s19 }
   0x9   : > { %s65_s25 = ssub.s32 %s1516_s18, %s1911_s22  ;;  %p77_p2 = scmp.eq.s32.totalorder %s1524_s20, 0 }
   0xa   : > { %p34_p3 = scmp.ge.s32.totalorder %s1913_s23, 2  ;;  %p67_p4 = scmp.eq.s32.totalorder %s65_s25, 0 }
   0xb   : > { %p78_p5 = por %p77_p2, %p76_p1  ;;  %s123_s26 = sadd.s32 1, %s1496_s13 }
   0xc   : > { %s1915_s23 = smov (%p34_p3, %s1913_s23), 0  ;;  %p133_p6 = scmp.ne.s32.totalorder %s1496_s13, %s1492_s12 }
   0xd   : > { %s1607_s27 = scalar_select %p67_p4, %s1504_s15, %s69_s24  }
   0xe   : > { %s118_s28 = ssub.s32 %s1520_s19, %s1915_s23  ;;  %p134_p7 = scmp.eq.s32.totalorder %s1180_s21, 3 }
   0xf   : > { %s120_s29 = sor.u32 %s118_s28, %s65_s25  ;;  %p1183_p10 = scmp.ge.s32.totalorder %s1524_s20, 4 }
  0x10   : > { %p121_p8 = scmp.eq.s32.totalorder %s120_s29, 0  ;;  %p1613_p9 = por %p134_p7, %p133_p6 }
  0x11   : > { %156 = sbr.rel (%p1183_p10) target bundleno = 36 (0x24), region = 16 }
  0x12   : > { %s1618_s4 = scalar_select %p121_p8, %s1496_s13, %s123_s26  }
  0x18   : > { %171 = sbr.rel (!%p78_p5) target bundleno = 36 (0x24), region = 24  ;;  %s173_s5 = sand.u32 (%p78_p5), 1, %s1504_s15  }
  0x19   : > { %s1185_s6 = sshll.u32 (%p78_p5), %s1516_s18, 3  ;;  %s1184_s7 = sshll.u32 (%p78_p5), %s173_s5, 7 }
  0x1a   : > { %s1626_s10 = scalar_lea.vmem (%p78_p5), %s1898_s1, %s1185_s6  ;;  %s175_s11 = scalar_lea.vmem (%p78_p5), [#allocation3], %s1184_s7 }
  0x1b   : > { %v238_v0 = vld [vmem:[%s1626_s10] sm:$0xff] (%p78_p5)  ;;  %v240_v1 = vld [vmem:[%s1626_s10 + $0x10] sm:$0xff] (%p78_p5) }
  0x1c   : > { %v242_v2 = vld [vmem:[%s1626_s10 + $0x20] sm:$0xff] (%p78_p5)  ;;  %239 = vst [vmem:[%s175_s11] sm:$0xff] (%p78_p5), %v238_v0  ;;  %241 = vst [vmem:[%s175_s11 + $0x8] sm:$0xff] (%p78_p5), %v240_v1  ;;  %v244_v3 = vld [vmem:[%s1626_s10 + $0x30] sm:$0xff] (%p78_p5) }
  0x1d   : > { %243 = vst [vmem:[%s175_s11 + $0x10] sm:$0xff] (%p78_p5), %v242_v2  ;;  %v246_v4 = vld [vmem:[%s1626_s10 + $0x40] sm:$0xff] (%p78_p5)  ;;  %v248_v5 = vld [vmem:[%s1626_s10 + $0x50] sm:$0xff] (%p78_p5)  ;;  %245 = vst [vmem:[%s175_s11 + $0x18] sm:$0xff] (%p78_p5), %v244_v3 }
  0x1e   : > { %247 = vst [vmem:[%s175_s11 + $0x20] sm:$0xff] (%p78_p5), %v246_v4  ;;  %249 = vst [vmem:[%s175_s11 + $0x28] sm:$0xff] (%p78_p5), %v248_v5  ;;  %v250_v6 = vld [vmem:[%s1626_s10 + $0x60] sm:$0xff] (%p78_p5)  ;;  %v252_v7 = vld [vmem:[%s1626_s10 + $0x70] sm:$0xff] (%p78_p5) }
  0x1f   : > { %v254_v8 = vld [vmem:[%s1626_s10 + $0x80] sm:$0xff]  ;;  %251 = vst [vmem:[%s175_s11 + $0x30] sm:$0xff] %v250_v6  ;;  %253 = vst [vmem:[%s175_s11 + $0x38] sm:$0xff] %v252_v7  ;;  %v256_v9 = vld [vmem:[%s1626_s10 + $0x90] sm:$0xff] }
  0x20   : > { %255 = vst [vmem:[%s175_s11 + $0x40] sm:$0xff] %v254_v8  ;;  %v258_v10 = vld [vmem:[%s1626_s10 + $0xa0] sm:$0xff]  ;;  %v260_v11 = vld [vmem:[%s1626_s10 + $0xb0] sm:$0xff]  ;;  %257 = vst [vmem:[%s175_s11 + $0x48] sm:$0xff] %v256_v9 }
  0x21   : > { %259 = vst [vmem:[%s175_s11 + $0x50] sm:$0xff] %v258_v10  ;;  %261 = vst [vmem:[%s175_s11 + $0x58] sm:$0xff] %v260_v11  ;;  %v262_v12 = vld [vmem:[%s1626_s10 + $0xc0] sm:$0xff]  ;;  %v264_v13 = vld [vmem:[%s1626_s10 + $0xd0] sm:$0xff] }
  0x22   : > { %v266_v14 = vld [vmem:[%s1626_s10 + $0xe0] sm:$0xff]  ;;  %263 = vst [vmem:[%s175_s11 + $0x60] sm:$0xff] %v262_v12  ;;  %265 = vst [vmem:[%s175_s11 + $0x68] sm:$0xff] %v264_v13  ;;  %v268_v15 = vld [vmem:[%s1626_s10 + $0xf0] sm:$0xff] }
  0x23   : > { %267 = vst [vmem:[%s175_s11 + $0x70] sm:$0xff] %v266_v14  ;;  %269 = vst [vmem:[%s175_s11 + $0x78] sm:$0xff] %v268_v15 }
  0x24 PF: > { %p1186_p11 = scmp.ge.s32.totalorder %s1524_s20, 1  ;;  %p280_p12 = scmp.lt.s32.totalorder %s1524_s20, 5 }
  0x26   : > { %p281_p13 = pnand %p1186_p11, %p280_p12 }
  0x27   : > { %s287_s21 = sand.u32 (!%p281_p13), 1, %s1500_s14   ;;  %s320_s24 = smul.u32 (!%p281_p13), 36, %s1512_s17 }
  0x28   : > { %284 = sbr.rel (%p281_p13) target bundleno = 333 (0x14d), region = 66  ;;  %s1187_s25 = sshll.u32 (!%p281_p13), %s287_s21, 7 }
  0x29   : > { %p321_p0 = scmp.lt.s32.totalorder (!%p281_p13), %s320_s24, 71  ;;  %s1648_s26 = scalar_lea.vmem (!%p281_p13), [#allocation3], %s1187_s25 }
  0x2a   : > { %v446_v16 = vld [vmem:[%s1648_s26] sm:$0xff] (!%p281_p13)  ;;  %v447_v17 = vld [vmem:[%s1648_s26 + $0x8] sm:$0xff] (!%p281_p13)  ;;  %v448_v18 = vld [vmem:[%s1648_s26 + $0x10] sm:$0xff] (!%p281_p13)  ;;  %p330_p1 = scmp.lt.s32.totalorder (!%p281_p13), %s1508_s16, 1  ;;  %s317_s7 = sand.u32 (!%p281_p13), 1, %s1492_s12  }
  0x2b   : > { %v1333_v19 = vpack.c.bf16 (!%p281_p13), %v447_v17, %v446_v16  ;;  %v449_v20 = vld [vmem:[%s1648_s26 + $0x18] sm:$0xff] (!%p281_p13)  ;;  %v450_v22 = vld [vmem:[%s1648_s26 + $0x20] sm:$0xff] (!%p281_p13)  ;;  %v451_v23 = vld [vmem:[%s1648_s26 + $0x28] sm:$0xff] (!%p281_p13)  ;;  %s1381_s11 = smul.u32 (!%p281_p13), 288, %s317_s7 }
  0x2c   : > { %v1337_v21 = vpack.c.bf16 (!%p281_p13), %v449_v20, %v448_v18  ;;  %v1341_v24 = vpack.c.bf16 (!%p281_p13), %v451_v23, %v450_v22  ;;  %v452_v27 = vld [vmem:[%s1648_s26 + $0x30] sm:$0xff] (!%p281_p13)  ;;  %v453_v28 = vld [vmem:[%s1648_s26 + $0x38] sm:$0xff] (!%p281_p13)  ;;  %v454_v30 = vld [vmem:[%s1648_s26 + $0x40] sm:$0xff] (!%p281_p13) }
  0x2d   : > { %1334 = vmatprep.subr.bf16.mxu0 (!%p281_p13), %v1333_v19  ;;  %1365 = vmatprep.subr.bf16.mxu1 (!%p281_p13), %v1333_v19  ;;  %v1345_v29 = vpack.c.bf16 (!%p281_p13), %v453_v28, %v452_v27  ;;  %v455_v31 = vld [vmem:[%s1648_s26 + $0x48] sm:$0xff] (!%p281_p13)  ;;  %v456_v33 = vld [vmem:[%s1648_s26 + $0x50] sm:$0xff] (!%p281_p13)  ;;  %v457_v34 = vld [vmem:[%s1648_s26 + $0x58] sm:$0xff] (!%p281_p13)  ;;  %s1719_s12 = scalar_lea.vmem (!%p281_p13), [#allocation4], %s1381_s11 }
  0x2e   : > { %1336 = vmatpush3.bf16.msra.mxu0 (!%p281_p13), %v1333_v19  ;;  %1373 = vmatpush3.bf16.msra.mxu1 (!%p281_p13), %v1333_v19  ;;  %v1349_v32 = vpack.c.bf16 (!%p281_p13), %v455_v31, %v454_v30  ;;  %v1353_v35 = vpack.c.bf16 (!%p281_p13), %v457_v34, %v456_v33  ;;  %v458_v36 = vld [vmem:[%s1648_s26 + $0x60] sm:$0xff] (!%p281_p13)  ;;  %v459_v37 = vld [vmem:[%s1648_s26 + $0x68] sm:$0xff] (!%p281_p13)  ;;  %v460_v39 = vld [vmem:[%s1648_s26 + $0x70] sm:$0xff] (!%p281_p13) }
  0x2f   : > { %s1917_s24 = smov (!%p321_p0, %s320_s24), 71  ;;  %1338 = vmatprep.subr.bf16.mxu0 %v1337_v21  ;;  %1366 = vmatprep.subr.bf16.mxu1 %v1337_v21  ;;  %v1357_v38 = vpack.c.bf16 %v459_v37, %v458_v36  ;;  %v461_v40 = vld [vmem:[%s1648_s26 + $0x78] sm:$0xff]  ;;  %s1194_s21 = smul.u32 (%p1613_p9), 72, %s1512_s17 }
  0x30   : > { %s1188_s14 = sshll.u32 %s1917_s24, 3  ;;  %v1361_v41 = vpack.c.bf16 %v461_v40, %v460_v39 }
  0x31   : > { %s1659_s5 = scalar_lea.vmem %s1897_s0, %s1188_s14  ;;  %s906_s30 = sadd.s32 (%p1613_p9), %s1508_s16, %s1194_s21 }
  0x32   : > { %v410_v25 = vld [vmem:[%s1659_s5] sm:$0xff]  ;;  %v428_v26 = vld [vmem:[%s1659_s5 + $0x90] sm:$0xff]  ;;  %1340 = vmatpush3.bf16.msra.mxu0 %v1337_v21  ;;  %1374 = vmatpush3.bf16.msra.mxu1 %v1337_v21  ;;  %v411_v42 = vld [vmem:[%s1659_s5 + $0x8] sm:$0xff]  ;;  %s331_s6 = scalar_select %p330_p1, %s1508_s16, 1 }
  0x33   : > { %1279 = vmatprep.mubr.f32.mxu0 %v410_v25  ;;  %1306 = vmatprep.mubr.f32.mxu1 %v428_v26  ;;  %v429_v43 = vld [vmem:[%s1659_s5 + $0x98] sm:$0xff]  ;;  %v412_v44 = vld [vmem:[%s1659_s5 + $0x10] sm:$0xff]  ;;  %v430_v45 = vld [vmem:[%s1659_s5 + $0xa0] sm:$0xff]  ;;  %s1191_s24 = sshll.u32 (%p1613_p9), %s906_s30, 3 }
  0x34   : > { %1342 = vmatprep.subr.bf16.mxu0 %v1341_v24  ;;  %1367 = vmatprep.subr.bf16.mxu1 %v1341_v24  ;;  %v413_v46 = vld [vmem:[%s1659_s5 + $0x18] sm:$0xff]  ;;  %v431_v47 = vld [vmem:[%s1659_s5 + $0xa8] sm:$0xff]  ;;  %v414_v48 = vld [vmem:[%s1659_s5 + $0x20] sm:$0xff]  ;;  %s332_s10 = scalar_lea.vmem %s1899_s2, %s331_s6  ;;  %s1808_s17 = scalar_lea.vmem (%p1613_p9), %s1900_s3, %s1191_s24 }
  0x35   : > { %v432_v49 = vld [vmem:[%s1659_s5 + $0xb0] sm:$0xff]  ;;  %v415_v50 = vld [vmem:[%s1659_s5 + $0x28] sm:$0xff]  ;;  %v433_v51 = vld [vmem:[%s1659_s5 + $0xb8] sm:$0xff] }
  0x36   : > { %1344 = vmatpush3.bf16.msra.mxu0 %v1341_v24  ;;  %1375 = vmatpush3.bf16.msra.mxu1 %v1341_v24  ;;  %v416_v52 = vld [vmem:[%s1659_s5 + $0x30] sm:$0xff]  ;;  %v434_v53 = vld [vmem:[%s1659_s5 + $0xc0] sm:$0xff]  ;;  %v417_v54 = vld [vmem:[%s1659_s5 + $0x38] sm:$0xff] }
  0x37   : > { %1346 = vmatprep.subr.bf16.mxu0 %v1345_v29  ;;  %1368 = vmatprep.subr.bf16.mxu1 %v1345_v29  ;;  %v435_v55 = vld [vmem:[%s1659_s5 + $0xc8] sm:$0xff]  ;;  %v418_v56 = vld [vmem:[%s1659_s5 + $0x40] sm:$0xff]  ;;  %v436_v57 = vld [vmem:[%s1659_s5 + $0xd0] sm:$0xff] }
  0x38   : > { %v419_v58 = vld [vmem:[%s1659_s5 + $0x48] sm:$0xff]  ;;  %v437_v59 = vld [vmem:[%s1659_s5 + $0xd8] sm:$0xff]  ;;  %v420_v60 = vld [vmem:[%s1659_s5 + $0x50] sm:$0xff] }
  0x39   : > { %v438_v61 = vld [vmem:[%s1659_s5 + $0xe0] sm:$0xff]  ;;  %v421_v62 = vld [vmem:[%s1659_s5 + $0x58] sm:$0xff]  ;;  %v439_v63 = vld [vmem:[%s1659_s5 + $0xe8] sm:$0xff] }
  0x3a   : > { %1348 = vmatpush3.bf16.msra.mxu0 %v1345_v29  ;;  %1376 = vmatpush3.bf16.msra.mxu1 %v1345_v29  ;;  %v422_v0 = vld [vmem:[%s1659_s5 + $0x60] sm:$0xff]  ;;  %v440_v1 = vld [vmem:[%s1659_s5 + $0xf0] sm:$0xff]  ;;  %v423_v2 = vld [vmem:[%s1659_s5 + $0x68] sm:$0xff] }
  0x3b   : > { %1350 = vmatprep.subr.bf16.mxu0 %v1349_v32  ;;  %1369 = vmatprep.subr.bf16.mxu1 %v1349_v32  ;;  %v441_v3 = vld [vmem:[%s1659_s5 + $0xf8] sm:$0xff]  ;;  %v424_v4 = vld [vmem:[%s1659_s5 + $0x70] sm:$0xff]  ;;  %v442_v5 = vld [vmem:[%s1659_s5 + $0x100] sm:$0xff] }
  0x3c   : > { %v425_v6 = vld [vmem:[%s1659_s5 + $0x78] sm:$0xff]  ;;  %v443_v7 = vld [vmem:[%s1659_s5 + $0x108] sm:$0xff]  ;;  %v426_v8 = vld [vmem:[%s1659_s5 + $0x80] sm:$0xff] }
  0x3d   : > { %v444_v9 = vld [vmem:[%s1659_s5 + $0x110] sm:$0xff]  ;;  %v427_v10 = vld [vmem:[%s1659_s5 + $0x88] sm:$0xff]  ;;  %v445_v11 = vld [vmem:[%s1659_s5 + $0x118] sm:$0xff] }
  0x3e   : > { %1352 = vmatpush3.bf16.msra.mxu0 %v1349_v32  ;;  %1377 = vmatpush3.bf16.msra.mxu1 %v1349_v32  ;;  %v1713_v12 = vld [vmem:[%s332_s10] ss:$0 sm:$0xff] }
  0x3f   : > { %1354 = vmatprep.subr.bf16.mxu0 %v1353_v35  ;;  %1370 = vmatprep.subr.bf16.mxu1 %v1353_v35 }
  0x42   : > { %1356 = vmatpush3.bf16.msra.mxu0 %v1353_v35  ;;  %1378 = vmatpush3.bf16.msra.mxu1 %v1353_v35 }
  0x43   : > { %1358 = vmatprep.subr.bf16.mxu0 %v1357_v38  ;;  %1371 = vmatprep.subr.bf16.mxu1 %v1357_v38 }
  0x46   : > { %1360 = vmatpush3.bf16.msra.mxu0 %v1357_v38  ;;  %1379 = vmatpush3.bf16.msra.mxu1 %v1357_v38 }
  0x47   : > { %1362 = vmatprep.subr.bf16.mxu0 %v1361_v41  ;;  %1372 = vmatprep.subr.bf16.mxu1 %v1361_v41 }
  0x4a   : > { %1364 = vmatpush3.bf16.msra.mxu0 %v1361_v41  ;;  %1380 = vmatpush3.bf16.msra.mxu1 %v1361_v41 }
  0x4d   : > { %1280 = vmatmul.mubr.f32.vlgmr.msra.gmra.mrb[0].mxu0 %v411_v42  ;;  %1307 = vmatmul.mubr.f32.vlgmr.msra.gmra.mrb[0].mxu1 %v429_v43 }
  0x4e   : > { %1282 = vmatprep.mubr.f32.mxu0 %v412_v44  ;;  %1309 = vmatprep.mubr.f32.mxu1 %v430_v45 }
  0x51   : > { %1283 = vmatmul.mubr.f32.gmra.mrb[2].mxu0 %v413_v46  ;;  %1310 = vmatmul.mubr.f32.gmra.mrb[2].mxu1 %v431_v47 }
  0x52   : > { %1285 = vmatprep.mubr.f32.mxu0 %v414_v48  ;;  %1312 = vmatprep.mubr.f32.mxu1 %v432_v49 }
  0x55   : > { %1286 = vmatmul.mubr.f32.gmra.mrb[4].mxu0 %v415_v50  ;;  %1313 = vmatmul.mubr.f32.gmra.mrb[4].mxu1 %v433_v51 }
  0x56   : > { %1288 = vmatprep.mubr.f32.mxu0 %v416_v52  ;;  %1315 = vmatprep.mubr.f32.mxu1 %v434_v53 }
  0x59   : > { %1289 = vmatmul.mubr.f32.gmra.mrb[6].mxu0 %v417_v54  ;;  %1316 = vmatmul.mubr.f32.gmra.mrb[6].mxu1 %v435_v55 }
  0x5a   : > { %1291 = vmatprep.mubr.f32.mxu0 %v418_v56  ;;  %1318 = vmatprep.mubr.f32.mxu1 %v436_v57 }
  0x5d   : > { %1292 = vmatmul.mubr.f32.gmra.mrb[8].mxu0 %v419_v58  ;;  %1319 = vmatmul.mubr.f32.gmra.mrb[8].mxu1 %v437_v59 }
  0x5e   : > { %1294 = vmatprep.mubr.f32.mxu0 %v420_v60  ;;  %1321 = vmatprep.mubr.f32.mxu1 %v438_v61 }
  0x61   : > { %1295 = vmatmul.mubr.f32.gmra.mrb[10].mxu0 %v421_v62  ;;  %1322 = vmatmul.mubr.f32.gmra.mrb[10].mxu1 %v439_v63 }
  0x62   : > { %1297 = vmatprep.mubr.f32.mxu0 %v422_v0  ;;  %1324 = vmatprep.mubr.f32.mxu1 %v440_v1 }
  0x65   : > { %1298 = vmatmul.mubr.f32.gmra.mrb[12].mxu0 %v423_v2  ;;  %1325 = vmatmul.mubr.f32.gmra.mrb[12].mxu1 %v441_v3 }
  0x66   : > { %1300 = vmatprep.mubr.f32.mxu0 %v424_v4  ;;  %1327 = vmatprep.mubr.f32.mxu1 %v442_v5 }
  0x69   : > { %1301 = vmatmul.mubr.f32.gmra.mrb[14].mxu0 %v425_v6  ;;  %1328 = vmatmul.mubr.f32.gmra.mrb[14].mxu1 %v443_v7 }
  0x6a   : > { %1303 = vmatprep.mubr.f32.mxu0 %v426_v8  ;;  %1330 = vmatprep.mubr.f32.mxu1 %v444_v9 }
  0x6d   : > { %1304 = vmatmul.mubr.f32.gmra.mrb[16].mxu0 %v427_v10  ;;  %1331 = vmatmul.mubr.f32.gmra.mrb[16].mxu1 %v445_v11 }
 0x120   : > { %v1281_v13 = vpop.f32.mrb[0].mxu0  ;;  %v1308_v14 = vpop.f32.mrb[0].mxu1 }
 0x121   : > { %v826_v15 = vadd.f32 %v1281_v13, %v1713_v12  ;;  %v844_v16 = vadd.f32 %v1308_v14, %v1713_v12  ;;  %v528_v17 = vpop.f32.mrb[1].mxu0  ;;  %v618_v18 = vpop.f32.mrb[1].mxu1 }
 0x122   : > { %v825_v19 = vadd.f32 %v1713_v12, %v528_v17  ;;  %v843_v20 = vadd.f32 %v1713_v12, %v618_v18 }
 0x123   : > { %862 = vst [vmem:[%s1719_s12 + $0x8] sm:$0xff] %v826_v15  ;;  %880 = vst [vmem:[%s1719_s12 + $0x98] sm:$0xff] %v844_v16 }
 0x124   : > { %861 = vst [vmem:[%s1719_s12] sm:$0xff] %v825_v19  ;;  %879 = vst [vmem:[%s1719_s12 + $0x90] sm:$0xff] %v843_v20  ;;  %v1284_v21 = vpop.f32.mrb[2].mxu0  ;;  %v1311_v22 = vpop.f32.mrb[2].mxu1 }
 0x125   : > { %v828_v23 = vadd.f32 %v1284_v21, %v1713_v12  ;;  %v846_v24 = vadd.f32 %v1311_v22, %v1713_v12  ;;  %v538_v25 = vpop.f32.mrb[3].mxu0  ;;  %v628_v26 = vpop.f32.mrb[3].mxu1 }
 0x126   : > { %v827_v27 = vadd.f32 %v1713_v12, %v538_v25  ;;  %v845_v28 = vadd.f32 %v1713_v12, %v628_v26 }
 0x127   : > { %864 = vst [vmem:[%s1719_s12 + $0x18] sm:$0xff] %v828_v23  ;;  %882 = vst [vmem:[%s1719_s12 + $0xa8] sm:$0xff] %v846_v24 }
 0x128   : > { %863 = vst [vmem:[%s1719_s12 + $0x10] sm:$0xff] %v827_v27  ;;  %881 = vst [vmem:[%s1719_s12 + $0xa0] sm:$0xff] %v845_v28  ;;  %v1287_v29 = vpop.f32.mrb[4].mxu0  ;;  %v1314_v30 = vpop.f32.mrb[4].mxu1 }
 0x129   : > { %v830_v31 = vadd.f32 %v1287_v29, %v1713_v12  ;;  %v848_v32 = vadd.f32 %v1314_v30, %v1713_v12  ;;  %v548_v33 = vpop.f32.mrb[5].mxu0  ;;  %v638_v34 = vpop.f32.mrb[5].mxu1 }
 0x12a   : > { %v829_v35 = vadd.f32 %v1713_v12, %v548_v33  ;;  %v847_v36 = vadd.f32 %v1713_v12, %v638_v34  ;;  %v1008_v22 = vld [vmem:[%s1719_s12 + $0x8] sm:$0xff] (%p1613_p9) }
 0x12b   : > { %866 = vst [vmem:[%s1719_s12 + $0x28] sm:$0xff] %v830_v31  ;;  %884 = vst [vmem:[%s1719_s12 + $0xb8] sm:$0xff] %v848_v32 }
 0x12c   : > { %865 = vst [vmem:[%s1719_s12 + $0x20] sm:$0xff] %v829_v35  ;;  %883 = vst [vmem:[%s1719_s12 + $0xb0] sm:$0xff] %v847_v36  ;;  %v1290_v37 = vpop.f32.mrb[6].mxu0  ;;  %v1317_v38 = vpop.f32.mrb[6].mxu1 }
 0x12d   : > { %v832_v39 = vadd.f32 %v1290_v37, %v1713_v12  ;;  %v850_v40 = vadd.f32 %v1317_v38, %v1713_v12  ;;  %v558_v41 = vpop.f32.mrb[7].mxu0  ;;  %v648_v42 = vpop.f32.mrb[7].mxu1  ;;  %1009 = vst [vmem:[%s1808_s17 + $0x10] sm:$0xff] (%p1613_p9), %v1008_v22 }
 0x12e   : > { %v831_v43 = vadd.f32 %v1713_v12, %v558_v41  ;;  %v849_v44 = vadd.f32 %v1713_v12, %v648_v42  ;;  %v1012_v24 = vld [vmem:[%s1719_s12 + $0x18] sm:$0xff] (%p1613_p9)  ;;  %v1048_v42 = vld [vmem:[%s1719_s12 + $0xa8] sm:$0xff] (%p1613_p9) }
 0x12f   : > { %868 = vst [vmem:[%s1719_s12 + $0x38] sm:$0xff] %v832_v39  ;;  %886 = vst [vmem:[%s1719_s12 + $0xc8] sm:$0xff] %v850_v40  ;;  %v1010_v23 = vld [vmem:[%s1719_s12 + $0x10] sm:$0xff] (%p1613_p9)  ;;  %v1044_v40 = vld [vmem:[%s1719_s12 + $0x98] sm:$0xff] (%p1613_p9) }
 0x130   : > { %867 = vst [vmem:[%s1719_s12 + $0x30] sm:$0xff] %v831_v43  ;;  %885 = vst [vmem:[%s1719_s12 + $0xc0] sm:$0xff] %v849_v44  ;;  %v1293_v45 = vpop.f32.mrb[8].mxu0  ;;  %v1320_v46 = vpop.f32.mrb[8].mxu1  ;;  %v1042_v39 = vld [vmem:[%s1719_s12 + $0x90] sm:$0xff] (%p1613_p9)  ;;  %v1046_v41 = vld [vmem:[%s1719_s12 + $0xa0] sm:$0xff] (%p1613_p9) }
 0x131   : > { %v834_v47 = vadd.f32 %v1293_v45, %v1713_v12  ;;  %v852_v48 = vadd.f32 %v1320_v46, %v1713_v12  ;;  %v568_v49 = vpop.f32.mrb[9].mxu0  ;;  %v658_v50 = vpop.f32.mrb[9].mxu1  ;;  %1011 = vst [vmem:[%s1808_s17 + $0x20] sm:$0xff] (%p1613_p9), %v1010_v23  ;;  %1013 = vst [vmem:[%s1808_s17 + $0x30] sm:$0xff] (%p1613_p9), %v1012_v24 }
 0x132   : > { %v833_v51 = vadd.f32 %v1713_v12, %v568_v49  ;;  %v851_v52 = vadd.f32 %v1713_v12, %v658_v50  ;;  %v1016_v26 = vld [vmem:[%s1719_s12 + $0x28] sm:$0xff] (%p1613_p9)  ;;  %1043 = vst [vmem:[%s1808_s17 + $0x120] sm:$0xff] (%p1613_p9), %v1042_v39  ;;  %1045 = vst [vmem:[%s1808_s17 + $0x130] sm:$0xff] (%p1613_p9), %v1044_v40  ;;  %v1052_v44 = vld [vmem:[%s1719_s12 + $0xb8] sm:$0xff] (%p1613_p9) }
 0x133   : > { %870 = vst [vmem:[%s1719_s12 + $0x48] sm:$0xff] %v834_v47  ;;  %888 = vst [vmem:[%s1719_s12 + $0xd8] sm:$0xff] %v852_v48  ;;  %v1014_v25 = vld [vmem:[%s1719_s12 + $0x20] sm:$0xff] (%p1613_p9)  ;;  %v1050_v43 = vld [vmem:[%s1719_s12 + $0xb0] sm:$0xff] (%p1613_p9) }
 0x134   : > { %869 = vst [vmem:[%s1719_s12 + $0x40] sm:$0xff] %v833_v51  ;;  %887 = vst [vmem:[%s1719_s12 + $0xd0] sm:$0xff] %v851_v52  ;;  %v1296_v53 = vpop.f32.mrb[10].mxu0  ;;  %v1323_v54 = vpop.f32.mrb[10].mxu1 }
 0x135   : > { %v836_v55 = vadd.f32 %v1296_v53, %v1713_v12  ;;  %v854_v56 = vadd.f32 %v1323_v54, %v1713_v12  ;;  %v578_v57 = vpop.f32.mrb[11].mxu0  ;;  %v668_v58 = vpop.f32.mrb[11].mxu1  ;;  %1015 = vst [vmem:[%s1808_s17 + $0x40] sm:$0xff] (%p1613_p9), %v1014_v25  ;;  %1017 = vst [vmem:[%s1808_s17 + $0x50] sm:$0xff] (%p1613_p9), %v1016_v26 }
 0x136   : > { %v835_v59 = vadd.f32 %v1713_v12, %v578_v57  ;;  %v853_v60 = vadd.f32 %v1713_v12, %v668_v58  ;;  %v1020_v28 = vld [vmem:[%s1719_s12 + $0x38] sm:$0xff] (%p1613_p9)  ;;  %1047 = vst [vmem:[%s1808_s17 + $0x140] sm:$0xff] (%p1613_p9), %v1046_v41  ;;  %1049 = vst [vmem:[%s1808_s17 + $0x150] sm:$0xff] (%p1613_p9), %v1048_v42  ;;  %v1056_v46 = vld [vmem:[%s1719_s12 + $0xc8] sm:$0xff] (%p1613_p9) }
 0x137   : > { %872 = vst [vmem:[%s1719_s12 + $0x58] sm:$0xff] %v836_v55  ;;  %890 = vst [vmem:[%s1719_s12 + $0xe8] sm:$0xff] %v854_v56  ;;  %v1018_v27 = vld [vmem:[%s1719_s12 + $0x30] sm:$0xff] (%p1613_p9)  ;;  %v1054_v45 = vld [vmem:[%s1719_s12 + $0xc0] sm:$0xff] (%p1613_p9) }
 0x138   : > { %871 = vst [vmem:[%s1719_s12 + $0x50] sm:$0xff] %v835_v59  ;;  %889 = vst [vmem:[%s1719_s12 + $0xe0] sm:$0xff] %v853_v60  ;;  %v1299_v61 = vpop.f32.mrb[12].mxu0  ;;  %v1326_v62 = vpop.f32.mrb[12].mxu1 }
 0x139   : > { %v838_v63 = vadd.f32 %v1299_v61, %v1713_v12  ;;  %v856_v0 = vadd.f32 %v1326_v62, %v1713_v12  ;;  %v588_v1 = vpop.f32.mrb[13].mxu0  ;;  %v678_v2 = vpop.f32.mrb[13].mxu1  ;;  %1019 = vst [vmem:[%s1808_s17 + $0x60] sm:$0xff] (%p1613_p9), %v1018_v27  ;;  %1021 = vst [vmem:[%s1808_s17 + $0x70] sm:$0xff] (%p1613_p9), %v1020_v28 }
 0x13a   : > { %v837_v3 = vadd.f32 %v1713_v12, %v588_v1  ;;  %v855_v4 = vadd.f32 %v1713_v12, %v678_v2  ;;  %v1024_v30 = vld [vmem:[%s1719_s12 + $0x48] sm:$0xff] (%p1613_p9)  ;;  %1051 = vst [vmem:[%s1808_s17 + $0x160] sm:$0xff] (%p1613_p9), %v1050_v43  ;;  %1053 = vst [vmem:[%s1808_s17 + $0x170] sm:$0xff] (%p1613_p9), %v1052_v44  ;;  %v1060_v48 = vld [vmem:[%s1719_s12 + $0xd8] sm:$0xff] (%p1613_p9) }
 0x13b   : > { %874 = vst [vmem:[%s1719_s12 + $0x68] sm:$0xff] %v838_v63  ;;  %892 = vst [vmem:[%s1719_s12 + $0xf8] sm:$0xff] %v856_v0  ;;  %v1022_v29 = vld [vmem:[%s1719_s12 + $0x40] sm:$0xff] (%p1613_p9)  ;;  %v1058_v47 = vld [vmem:[%s1719_s12 + $0xd0] sm:$0xff] (%p1613_p9) }
 0x13c   : > { %873 = vst [vmem:[%s1719_s12 + $0x60] sm:$0xff] %v837_v3  ;;  %891 = vst [vmem:[%s1719_s12 + $0xf0] sm:$0xff] %v855_v4  ;;  %v1302_v5 = vpop.f32.mrb[14].mxu0  ;;  %v1329_v6 = vpop.f32.mrb[14].mxu1 }
 0x13d   : > { %v840_v7 = vadd.f32 %v1302_v5, %v1713_v12  ;;  %v858_v8 = vadd.f32 %v1329_v6, %v1713_v12  ;;  %v598_v9 = vpop.f32.mrb[15].mxu0  ;;  %v688_v10 = vpop.f32.mrb[15].mxu1  ;;  %1023 = vst [vmem:[%s1808_s17 + $0x80] sm:$0xff] (%p1613_p9), %v1022_v29  ;;  %1025 = vst [vmem:[%s1808_s17 + $0x90] sm:$0xff] (%p1613_p9), %v1024_v30 }
 0x13e   : > { %v839_v11 = vadd.f32 %v1713_v12, %v598_v9  ;;  %v857_v13 = vadd.f32 %v1713_v12, %v688_v10  ;;  %903 = sbr.rel (!%p1613_p9) target bundleno = 333 (0x14d), region = 82  ;;  %v1028_v32 = vld [vmem:[%s1719_s12 + $0x58] sm:$0xff] (%p1613_p9)  ;;  %1055 = vst [vmem:[%s1808_s17 + $0x180] sm:$0xff] (%p1613_p9), %v1054_v45  ;;  %1057 = vst [vmem:[%s1808_s17 + $0x190] sm:$0xff] (%p1613_p9), %v1056_v46  ;;  %v1064_v50 = vld [vmem:[%s1719_s12 + $0xe8] sm:$0xff] (%p1613_p9) }
 0x13f   : > { %876 = vst [vmem:[%s1719_s12 + $0x78] sm:$0xff] %v840_v7  ;;  %894 = vst [vmem:[%s1719_s12 + $0x108] sm:$0xff] %v858_v8  ;;  %v1026_v31 = vld [vmem:[%s1719_s12 + $0x50] sm:$0xff] (%p1613_p9)  ;;  %v1062_v49 = vld [vmem:[%s1719_s12 + $0xe0] sm:$0xff] (%p1613_p9) }
 0x140   : > { %875 = vst [vmem:[%s1719_s12 + $0x70] sm:$0xff] %v839_v11  ;;  %893 = vst [vmem:[%s1719_s12 + $0x100] sm:$0xff] %v857_v13  ;;  %v1305_v14 = vpop.f32.mrb[16].mxu0  ;;  %v1332_v15 = vpop.f32.mrb[16].mxu1 }
 0x141   : > { %v842_v16 = vadd.f32 %v1305_v14, %v1713_v12  ;;  %v860_v17 = vadd.f32 %v1332_v15, %v1713_v12  ;;  %v608_v18 = vpop.f32.mrb[17].mxu0  ;;  %v698_v19 = vpop.f32.mrb[17].mxu1  ;;  %1027 = vst [vmem:[%s1808_s17 + $0xa0] sm:$0xff] (%p1613_p9), %v1026_v31  ;;  %1029 = vst [vmem:[%s1808_s17 + $0xb0] sm:$0xff] (%p1613_p9), %v1028_v32 }
 0x142   : > { %v841_v20 = vadd.f32 %v1713_v12, %v608_v18  ;;  %v859_v21 = vadd.f32 %v1713_v12, %v698_v19  ;;  %v1006_v12 = vld [vmem:[%s1719_s12] sm:$0xff] (%p1613_p9)  ;;  %v1032_v34 = vld [vmem:[%s1719_s12 + $0x68] sm:$0xff] (%p1613_p9)  ;;  %1059 = vst [vmem:[%s1808_s17 + $0x1a0] sm:$0xff] (%p1613_p9), %v1058_v47  ;;  %1061 = vst [vmem:[%s1808_s17 + $0x1b0] sm:$0xff] (%p1613_p9), %v1060_v48 }
 0x143   : > { %878 = vst [vmem:[%s1719_s12 + $0x88] sm:$0xff] %v842_v16  ;;  %896 = vst [vmem:[%s1719_s12 + $0x118] sm:$0xff] %v860_v17  ;;  %v1030_v33 = vld [vmem:[%s1719_s12 + $0x60] sm:$0xff] (%p1613_p9)  ;;  %v1066_v51 = vld [vmem:[%s1719_s12 + $0xf0] sm:$0xff] (%p1613_p9) }
 0x144   : > { %877 = vst [vmem:[%s1719_s12 + $0x80] sm:$0xff] %v841_v20  ;;  %895 = vst [vmem:[%s1719_s12 + $0x110] sm:$0xff] %v859_v21  ;;  %v1068_v52 = vld [vmem:[%s1719_s12 + $0xf8] sm:$0xff] (%p1613_p9) }
 0x145   : > { %1007 = vst [vmem:[%s1808_s17] sm:$0xff] %v1006_v12  ;;  %1031 = vst [vmem:[%s1808_s17 + $0xc0] sm:$0xff] %v1030_v33 }
 0x146   : > { %1033 = vst [vmem:[%s1808_s17 + $0xd0] sm:$0xff] %v1032_v34  ;;  %v1036_v36 = vld [vmem:[%s1719_s12 + $0x78] sm:$0xff]  ;;  %1063 = vst [vmem:[%s1808_s17 + $0x1c0] sm:$0xff] %v1062_v49  ;;  %v1072_v54 = vld [vmem:[%s1719_s12 + $0x108] sm:$0xff] }
 0x147   : > { %v1034_v35 = vld [vmem:[%s1719_s12 + $0x70] sm:$0xff]  ;;  %1037 = vst [vmem:[%s1808_s17 + $0xf0] sm:$0xff] %v1036_v36  ;;  %1065 = vst [vmem:[%s1808_s17 + $0x1d0] sm:$0xff] %v1064_v50  ;;  %v1070_v53 = vld [vmem:[%s1719_s12 + $0x100] sm:$0xff] }
 0x148   : > { %1035 = vst [vmem:[%s1808_s17 + $0xe0] sm:$0xff] %v1034_v35  ;;  %1067 = vst [vmem:[%s1808_s17 + $0x1e0] sm:$0xff] %v1066_v51 }
 0x149   : > { %1069 = vst [vmem:[%s1808_s17 + $0x1f0] sm:$0xff] %v1068_v52  ;;  %1071 = vst [vmem:[%s1808_s17 + $0x200] sm:$0xff] %v1070_v53 }
 0x14a   : > { %v1040_v38 = vld [vmem:[%s1719_s12 + $0x88] sm:$0xff]  ;;  %v1076_v56 = vld [vmem:[%s1719_s12 + $0x118] sm:$0xff]  ;;  %1073 = vst [vmem:[%s1808_s17 + $0x210] sm:$0xff] %v1072_v54 }
 0x14b   : > { %v1038_v37 = vld [vmem:[%s1719_s12 + $0x80] sm:$0xff]  ;;  %1041 = vst [vmem:[%s1808_s17 + $0x110] sm:$0xff] %v1040_v38  ;;  %v1074_v55 = vld [vmem:[%s1719_s12 + $0x110] sm:$0xff]  ;;  %1077 = vst [vmem:[%s1808_s17 + $0x230] sm:$0xff] %v1076_v56 }
 0x14c   : > { %1039 = vst [vmem:[%s1808_s17 + $0x100] sm:$0xff] %v1038_v37  ;;  %1075 = vst [vmem:[%s1808_s17 + $0x220] sm:$0xff] %v1074_v55 }
 0x14d PF: > { %s13_s20 = sadd.s32 1, %s1524_s20   ;;  %s1902_s12 = smov %s1496_s13 }
 0x14e   : > { %p10_p2 = scmp.ge.s32.totalorder %s13_s20, 6   ;;  %s1903_s13 = smov %s1618_s4 }
 0x14f   : > { %s1904_s14 = smov %s1504_s15  ;;  %s1905_s15 = smov %s1607_s27 }
 0x150   : > { %s1906_s16 = smov %s1516_s18  ;;  %s1907_s17 = smov %s1520_s19 }
 0x151   : > { %s1908_s18 = smov %s1911_s22  ;;  %s1909_s19 = smov %s1915_s23 }
 0x152   :  { %12 = sbr.rel (!%p10_p2) target bundleno = 5 (0x5), region = 157 }

// kernel: local_motion_extractor_forward.5
= control target key start
LH: loop header
LB: loop body
LE: loop exit
PB: predicated region body
PF: predicated region fallthrough
CT: control target
= control target key end

     0   :  { %s5012_s0 = inlined_call_operand.vmem [shape: f32[16,9216], index: 0, kind: input, shape index: {}]   ;;  %s5013_s1 = inlined_call_operand.vmem [shape: bf16[9216,256], index: 1, kind: input, shape index: {}]   ;;  %s5014_s2 = inlined_call_operand.vmem [shape: f32[1,256], index: 2, kind: input, shape index: {}]   ;;  %s5015_s3 = inlined_call_operand.vmem [shape: f32[16,256], index: 3, kind: output, shape index: {}]  }
   0x1   :  { %5017 = sst [smem:[#allocation7_spill]] %s5012_s0 }
   0x2   :  { %5018 = sst [smem:[#allocation8_spill]] %s5013_s1 }
   0x3   :  { %s3993_s12 = smov 0   ;;  %s3995_s13 = smov 0  }
   0x4   :  { %s3997_s14 = smov 0   ;;  %s3999_s15 = smov 0  }
   0x5   :  { %s4001_s16 = smov 0   ;;  %s4003_s17 = smov 0  }
   0x6   :  { %s4005_s18 = smov 0   ;;  %s4007_s19 = smov 0  }
   0x7   :  { %s4009_s20 = smov 0   ;;  %s4011_s21 = smov 0  }
   0x8   :  { %s4013_s22 = smov 0  }
   0x9 LB: > { %s3271_s23 = sadd.s32 4294967295, %s3970_s22   ;;  %s25_s24 = sadd.s32 1, %s3962_s20  ;;  %s3970_s22 = sphi %s4013_s22, %s13_s22   ;;  %s3966_s21 = sphi %s4011_s21, %s5035_s21   ;;  %s3962_s20 = sphi %s4009_s20, %s5034_s20   ;;  %s3958_s19 = sphi %s4007_s19, %s5033_s19   ;;  %s3954_s18 = sphi %s4005_s18, %s5032_s18   ;;  %s3950_s17 = sphi %s4003_s17, %s5031_s17   ;;  %s3946_s16 = sphi %s4001_s16, %s5030_s16   ;;  %s3942_s15 = sphi %s3999_s15, %s5029_s15   ;;  %s3938_s14 = sphi %s3997_s14, %s5028_s14   ;;  %s3934_s13 = sphi %s3995_s13, %s5027_s13   ;;  %s3930_s12 = sphi %s3993_s12, %s5026_s12  }
   0xa   : > { %p26_p0 = scmp.ge.s32.totalorder %s25_s24, 4  ;;  %s28_s25 = sadd.s32 1, %s3966_s21 }
   0xb   : > { %s41_s26 = sadd.s32 1, %s3950_s17  ;;  %p48_p1 = scmp.ne.s32.totalorder %s3950_s17, %s3946_s16 }
   0xc   : > { %s5037_s24 = smov (%p26_p0, %s25_s24), 0  ;;  %s5039_s25 = smov (!%p26_p0, %s28_s25), %s3966_s21 }
   0xd   : > { %s37_s27 = ssub.s32 %s3962_s20, %s5037_s24  ;;  %p49_p2 = scmp.eq.s32.totalorder %s3970_s22, 0 }
   0xe   : > { %p30_p3 = scmp.ge.s32.totalorder %s5039_s25, 2  ;;  %p39_p4 = scmp.eq.s32.totalorder %s37_s27, 0 }
   0xf   : > { %p4060_p5 = por %p49_p2, %p48_p1  ;;  %s69_s29 = sadd.s32 1, %s3942_s15 }
  0x10   : > { %s5041_s25 = smov (%p30_p3, %s5039_s25), 0  ;;  %p76_p6 = scmp.ne.s32.totalorder %s3942_s15, %s3938_s14 }
  0x11   : > { %5020 = sst [smem:[#allocation6_spill]] %s5041_s25  ;;  %s65_s4 = ssub.s32 %s3966_s21, %s5041_s25 }
  0x12   : > { %s4068_s30 = scalar_select %p39_p4, %s3950_s17, %s41_s26  }
  0x13   : > { %s66_s5 = sor.u32 %s65_s4, %s37_s27  ;;  %p121_p7 = scmp.eq.s32.totalorder %s65_s4, 0 }
  0x14   : > { %p67_p8 = scmp.eq.s32.totalorder %s66_s5, 0  ;;  %p4074_p9 = por %p76_p6, %p49_p2 }
  0x15   : > { %s123_s7 = sadd.s32 1, %s3934_s13  ;;  %p133_p10 = scmp.ne.s32.totalorder %s3934_s13, %s3930_s12 }
  0x16   : > { %s4082_s8 = scalar_select %p67_p8, %s3942_s15, %s69_s29  }
  0x17   : > { %s4085_s9 = scalar_select %p121_p7, %s3934_s13, %s123_s7  }
  0x18   : > { %p134_p11 = scmp.eq.s32.totalorder %s3271_s23, 7  ;;  %p3274_p13 = scmp.ge.s32.totalorder %s3970_s22, 8 }
  0x1a   : > { %p4087_p12 = por %p134_p11, %p133_p10  ;;  %156 = sbr.rel (%p3274_p13) target bundleno = 261 (0x105), region = 16 }
  0x21   : > { %159 = sbr.rel (!%p4060_p5) target bundleno = 60 (0x3c), region = 20  ;;  %s161_s11 = sand.u32 (%p4060_p5), 1, %s3950_s17  }
  0x22   : > { %s3431_s26 = smul.u32 (%p4060_p5), 144, %s3962_s20  ;;  %s5023_s0 = sld [smem:[#allocation7_spill]] (%p4060_p5) }
  0x23   : > { %s3647_s27 = smul.u32 (%p4060_p5), 288, %s161_s11 }
  0x25   : > { %s4104_s23 = scalar_lea.vmem (%p4060_p5), [#allocation3], %s3647_s27 }
  0x28   : > { %s4099_s5 = scalar_lea.vmem %s5023_s0, %s3431_s26 }
  0x29   : > { %v182_v0 = vld [vmem:[%s4099_s5] sm:$0xff]  ;;  %v184_v1 = vld [vmem:[%s4099_s5 + $0x8] sm:$0xff]  ;;  %v186_v2 = vld [vmem:[%s4099_s5 + $0x10] sm:$0xff] }
  0x2a   : > { %183 = vst [vmem:[%s4104_s23] sm:$0xff] %v182_v0  ;;  %185 = vst [vmem:[%s4104_s23 + $0x8] sm:$0xff] %v184_v1  ;;  %v188_v3 = vld [vmem:[%s4099_s5 + $0x18] sm:$0xff]  ;;  %v190_v4 = vld [vmem:[%s4099_s5 + $0x20] sm:$0xff] }
  0x2b   : > { %187 = vst [vmem:[%s4104_s23 + $0x10] sm:$0xff] %v186_v2  ;;  %v192_v5 = vld [vmem:[%s4099_s5 + $0x28] sm:$0xff]  ;;  %189 = vst [vmem:[%s4104_s23 + $0x18] sm:$0xff] %v188_v3  ;;  %v194_v6 = vld [vmem:[%s4099_s5 + $0x30] sm:$0xff] }
  0x2c   : > { %191 = vst [vmem:[%s4104_s23 + $0x20] sm:$0xff] %v190_v4  ;;  %193 = vst [vmem:[%s4104_s23 + $0x28] sm:$0xff] %v192_v5  ;;  %v196_v7 = vld [vmem:[%s4099_s5 + $0x38] sm:$0xff]  ;;  %v198_v8 = vld [vmem:[%s4099_s5 + $0x40] sm:$0xff] }
  0x2d   : > { %195 = vst [vmem:[%s4104_s23 + $0x30] sm:$0xff] %v194_v6  ;;  %197 = vst [vmem:[%s4104_s23 + $0x38] sm:$0xff] %v196_v7  ;;  %v200_v9 = vld [vmem:[%s4099_s5 + $0x48] sm:$0xff]  ;;  %v202_v10 = vld [vmem:[%s4099_s5 + $0x50] sm:$0xff] }
  0x2e   : > { %199 = vst [vmem:[%s4104_s23 + $0x40] sm:$0xff] %v198_v8  ;;  %v204_v11 = vld [vmem:[%s4099_s5 + $0x58] sm:$0xff]  ;;  %201 = vst [vmem:[%s4104_s23 + $0x48] sm:$0xff] %v200_v9  ;;  %v206_v12 = vld [vmem:[%s4099_s5 + $0x60] sm:$0xff] }
  0x2f   : > { %203 = vst [vmem:[%s4104_s23 + $0x50] sm:$0xff] %v202_v10  ;;  %205 = vst [vmem:[%s4104_s23 + $0x58] sm:$0xff] %v204_v11  ;;  %v208_v13 = vld [vmem:[%s4099_s5 + $0x68] sm:$0xff]  ;;  %v210_v14 = vld [vmem:[%s4099_s5 + $0x70] sm:$0xff] }
  0x30   : > { %207 = vst [vmem:[%s4104_s23 + $0x60] sm:$0xff] %v206_v12  ;;  %209 = vst [vmem:[%s4104_s23 + $0x68] sm:$0xff] %v208_v13  ;;  %v212_v15 = vld [vmem:[%s4099_s5 + $0x78] sm:$0xff]  ;;  %v214_v16 = vld [vmem:[%s4099_s5 + $0x80] sm:$0xff] }
  0x31   : > { %211 = vst [vmem:[%s4104_s23 + $0x70] sm:$0xff] %v210_v14  ;;  %v216_v17 = vld [vmem:[%s4099_s5 + $0x88] sm:$0xff]  ;;  %213 = vst [vmem:[%s4104_s23 + $0x78] sm:$0xff] %v212_v15  ;;  %v218_v18 = vld [vmem:[%s4099_s5 + $0x240] sm:$0xff] }
  0x32   : > { %215 = vst [vmem:[%s4104_s23 + $0x80] sm:$0xff] %v214_v16  ;;  %217 = vst [vmem:[%s4104_s23 + $0x88] sm:$0xff] %v216_v17  ;;  %v220_v19 = vld [vmem:[%s4099_s5 + $0x248] sm:$0xff]  ;;  %v222_v20 = vld [vmem:[%s4099_s5 + $0x250] sm:$0xff] }
  0x33   : > { %219 = vst [vmem:[%s4104_s23 + $0x90] sm:$0xff] %v218_v18  ;;  %221 = vst [vmem:[%s4104_s23 + $0x98] sm:$0xff] %v220_v19  ;;  %v224_v21 = vld [vmem:[%s4099_s5 + $0x258] sm:$0xff]  ;;  %v226_v22 = vld [vmem:[%s4099_s5 + $0x260] sm:$0xff] }
  0x34   : > { %223 = vst [vmem:[%s4104_s23 + $0xa0] sm:$0xff] %v222_v20  ;;  %v228_v23 = vld [vmem:[%s4099_s5 + $0x268] sm:$0xff]  ;;  %225 = vst [vmem:[%s4104_s23 + $0xa8] sm:$0xff] %v224_v21  ;;  %v230_v24 = vld [vmem:[%s4099_s5 + $0x270] sm:$0xff] }
  0x35   : > { %227 = vst [vmem:[%s4104_s23 + $0xb0] sm:$0xff] %v226_v22  ;;  %229 = vst [vmem:[%s4104_s23 + $0xb8] sm:$0xff] %v228_v23  ;;  %v232_v25 = vld [vmem:[%s4099_s5 + $0x278] sm:$0xff]  ;;  %v234_v26 = vld [vmem:[%s4099_s5 + $0x280] sm:$0xff] }
  0x36   : > { %231 = vst [vmem:[%s4104_s23 + $0xc0] sm:$0xff] %v230_v24  ;;  %233 = vst [vmem:[%s4104_s23 + $0xc8] sm:$0xff] %v232_v25  ;;  %v236_v27 = vld [vmem:[%s4099_s5 + $0x288] sm:$0xff]  ;;  %v238_v28 = vld [vmem:[%s4099_s5 + $0x290] sm:$0xff] }
  0x37   : > { %235 = vst [vmem:[%s4104_s23 + $0xd0] sm:$0xff] %v234_v26  ;;  %v240_v29 = vld [vmem:[%s4099_s5 + $0x298] sm:$0xff]  ;;  %237 = vst [vmem:[%s4104_s23 + $0xd8] sm:$0xff] %v236_v27  ;;  %v242_v30 = vld [vmem:[%s4099_s5 + $0x2a0] sm:$0xff] }
  0x38   : > { %239 = vst [vmem:[%s4104_s23 + $0xe0] sm:$0xff] %v238_v28  ;;  %241 = vst [vmem:[%s4104_s23 + $0xe8] sm:$0xff] %v240_v29  ;;  %v244_v31 = vld [vmem:[%s4099_s5 + $0x2a8] sm:$0xff]  ;;  %v246_v32 = vld [vmem:[%s4099_s5 + $0x2b0] sm:$0xff] }
  0x39   : > { %243 = vst [vmem:[%s4104_s23 + $0xf0] sm:$0xff] %v242_v30  ;;  %245 = vst [vmem:[%s4104_s23 + $0xf8] sm:$0xff] %v244_v31  ;;  %v248_v33 = vld [vmem:[%s4099_s5 + $0x2b8] sm:$0xff]  ;;  %v250_v34 = vld [vmem:[%s4099_s5 + $0x2c0] sm:$0xff] }
  0x3a   : > { %247 = vst [vmem:[%s4104_s23 + $0x100] sm:$0xff] %v246_v32  ;;  %v252_v35 = vld [vmem:[%s4099_s5 + $0x2c8] sm:$0xff]  ;;  %249 = vst [vmem:[%s4104_s23 + $0x108] sm:$0xff] %v248_v33 }
  0x3b   : > { %251 = vst [vmem:[%s4104_s23 + $0x110] sm:$0xff] %v250_v34  ;;  %253 = vst [vmem:[%s4104_s23 + $0x118] sm:$0xff] %v252_v35 }
  0x3c PF: > { %259 = sbr.rel (!%p4074_p9) target bundleno = 261 (0x105), region = 43  ;;  %s261_s28 = sand.u32 (%p4074_p9), 1, %s3942_s15  }
  0x3d   : > { %s3432_s7 = smul.u32 (%p4074_p9), 576, %s3962_s20  ;;  %s5024_s1 = sld [smem:[#allocation8_spill]] (%p4074_p9) }
  0x3e   : > { %s3648_s11 = smul.u32 (%p4074_p9), 1152, %s261_s28 }
  0x3f   : > { %s266_s26 = sadd.s32 (%p4074_p9), %s3966_s21, %s3432_s7 }
  0x40   : > { %s3277_s27 = sshll.u32 (%p4074_p9), %s266_s26, 2  ;;  %s4188_s6 = scalar_lea.vmem (%p4074_p9), [#allocation4], %s3648_s11 }
  0x43   : > { %s4183_s0 = scalar_lea.vmem %s5024_s1, %s3277_s27 }
  0x44   : > { %v284_v36 = vld [vmem:[%s4183_s0] sm:$0xf]  ;;  %v286_v37 = vld [vmem:[%s4183_s0 + $0x8] sm:$0xf]  ;;  %v288_v38 = vld [vmem:[%s4183_s0 + $0x10] sm:$0xf] }
  0x45   : > { %285 = vst [vmem:[%s4188_s6] sm:$0xf] %v284_v36  ;;  %287 = vst [vmem:[%s4188_s6 + $0x4] sm:$0xf] %v286_v37  ;;  %v290_v39 = vld [vmem:[%s4183_s0 + $0x18] sm:$0xf] }
  0x46   : > { %289 = vst [vmem:[%s4188_s6 + $0x8] sm:$0xf] %v288_v38  ;;  %v292_v40 = vld [vmem:[%s4183_s0 + $0x20] sm:$0xf]  ;;  %v294_v41 = vld [vmem:[%s4183_s0 + $0x28] sm:$0xf] }
  0x47   : > { %291 = vst [vmem:[%s4188_s6 + $0xc] sm:$0xf] %v290_v39  ;;  %293 = vst [vmem:[%s4188_s6 + $0x10] sm:$0xf] %v292_v40  ;;  %v296_v42 = vld [vmem:[%s4183_s0 + $0x30] sm:$0xf] }
  0x48   : > { %295 = vst [vmem:[%s4188_s6 + $0x14] sm:$0xf] %v294_v41  ;;  %v298_v43 = vld [vmem:[%s4183_s0 + $0x38] sm:$0xf]  ;;  %v300_v44 = vld [vmem:[%s4183_s0 + $0x40] sm:$0xf] }
  0x49   : > { %297 = vst [vmem:[%s4188_s6 + $0x18] sm:$0xf] %v296_v42  ;;  %299 = vst [vmem:[%s4188_s6 + $0x1c] sm:$0xf] %v298_v43  ;;  %v302_v45 = vld [vmem:[%s4183_s0 + $0x48] sm:$0xf] }
  0x4a   : > { %301 = vst [vmem:[%s4188_s6 + $0x20] sm:$0xf] %v300_v44  ;;  %v304_v46 = vld [vmem:[%s4183_s0 + $0x50] sm:$0xf]  ;;  %v306_v47 = vld [vmem:[%s4183_s0 + $0x58] sm:$0xf] }
  0x4b   : > { %303 = vst [vmem:[%s4188_s6 + $0x24] sm:$0xf] %v302_v45  ;;  %305 = vst [vmem:[%s4188_s6 + $0x28] sm:$0xf] %v304_v46  ;;  %v308_v48 = vld [vmem:[%s4183_s0 + $0x60] sm:$0xf] }
  0x4c   : > { %307 = vst [vmem:[%s4188_s6 + $0x2c] sm:$0xf] %v306_v47  ;;  %v310_v49 = vld [vmem:[%s4183_s0 + $0x68] sm:$0xf]  ;;  %v312_v50 = vld [vmem:[%s4183_s0 + $0x70] sm:$0xf] }
  0x4d   : > { %309 = vst [vmem:[%s4188_s6 + $0x30] sm:$0xf] %v308_v48  ;;  %311 = vst [vmem:[%s4188_s6 + $0x34] sm:$0xf] %v310_v49  ;;  %v314_v51 = vld [vmem:[%s4183_s0 + $0x78] sm:$0xf] }
  0x4e   : > { %313 = vst [vmem:[%s4188_s6 + $0x38] sm:$0xf] %v312_v50  ;;  %v316_v52 = vld [vmem:[%s4183_s0 + $0x80] sm:$0xf]  ;;  %v318_v53 = vld [vmem:[%s4183_s0 + $0x88] sm:$0xf] }
  0x4f   : > { %315 = vst [vmem:[%s4188_s6 + $0x3c] sm:$0xf] %v314_v51  ;;  %317 = vst [vmem:[%s4188_s6 + $0x40] sm:$0xf] %v316_v52  ;;  %v320_v54 = vld [vmem:[%s4183_s0 + $0x90] sm:$0xf] }
  0x50   : > { %319 = vst [vmem:[%s4188_s6 + $0x44] sm:$0xf] %v318_v53  ;;  %v322_v55 = vld [vmem:[%s4183_s0 + $0x98] sm:$0xf]  ;;  %v324_v56 = vld [vmem:[%s4183_s0 + $0xa0] sm:$0xf] }
  0x51   : > { %321 = vst [vmem:[%s4188_s6 + $0x48] sm:$0xf] %v320_v54  ;;  %323 = vst [vmem:[%s4188_s6 + $0x4c] sm:$0xf] %v322_v55  ;;  %v326_v57 = vld [vmem:[%s4183_s0 + $0xa8] sm:$0xf] }
  0x52   : > { %325 = vst [vmem:[%s4188_s6 + $0x50] sm:$0xf] %v324_v56  ;;  %v328_v58 = vld [vmem:[%s4183_s0 + $0xb0] sm:$0xf]  ;;  %v330_v59 = vld [vmem:[%s4183_s0 + $0xb8] sm:$0xf] }
  0x53   : > { %327 = vst [vmem:[%s4188_s6 + $0x54] sm:$0xf] %v326_v57  ;;  %329 = vst [vmem:[%s4188_s6 + $0x58] sm:$0xf] %v328_v58  ;;  %v332_v60 = vld [vmem:[%s4183_s0 + $0xc0] sm:$0xf] }
  0x54   : > { %331 = vst [vmem:[%s4188_s6 + $0x5c] sm:$0xf] %v330_v59  ;;  %v334_v61 = vld [vmem:[%s4183_s0 + $0xc8] sm:$0xf]  ;;  %v336_v62 = vld [vmem:[%s4183_s0 + $0xd0] sm:$0xf] }
  0x55   : > { %333 = vst [vmem:[%s4188_s6 + $0x60] sm:$0xf] %v332_v60  ;;  %335 = vst [vmem:[%s4188_s6 + $0x64] sm:$0xf] %v334_v61  ;;  %v338_v63 = vld [vmem:[%s4183_s0 + $0xd8] sm:$0xf] }
  0x56   : > { %337 = vst [vmem:[%s4188_s6 + $0x68] sm:$0xf] %v336_v62  ;;  %v340_v0 = vld [vmem:[%s4183_s0 + $0xe0] sm:$0xf]  ;;  %v342_v1 = vld [vmem:[%s4183_s0 + $0xe8] sm:$0xf] }
  0x57   : > { %339 = vst [vmem:[%s4188_s6 + $0x6c] sm:$0xf] %v338_v63  ;;  %341 = vst [vmem:[%s4188_s6 + $0x70] sm:$0xf] %v340_v0  ;;  %v344_v2 = vld [vmem:[%s4183_s0 + $0xf0] sm:$0xf] }
  0x58   : > { %343 = vst [vmem:[%s4188_s6 + $0x74] sm:$0xf] %v342_v1  ;;  %v346_v3 = vld [vmem:[%s4183_s0 + $0xf8] sm:$0xf]  ;;  %v348_v4 = vld [vmem:[%s4183_s0 + $0x100] sm:$0xf] }
  0x59   : > { %345 = vst [vmem:[%s4188_s6 + $0x78] sm:$0xf] %v344_v2  ;;  %347 = vst [vmem:[%s4188_s6 + $0x7c] sm:$0xf] %v346_v3  ;;  %v350_v5 = vld [vmem:[%s4183_s0 + $0x108] sm:$0xf] }
  0x5a   : > { %349 = vst [vmem:[%s4188_s6 + $0x80] sm:$0xf] %v348_v4  ;;  %v352_v6 = vld [vmem:[%s4183_s0 + $0x110] sm:$0xf]  ;;  %v354_v7 = vld [vmem:[%s4183_s0 + $0x118] sm:$0xf] }
  0x5b   : > { %351 = vst [vmem:[%s4188_s6 + $0x84] sm:$0xf] %v350_v5  ;;  %353 = vst [vmem:[%s4188_s6 + $0x88] sm:$0xf] %v352_v6  ;;  %v356_v8 = vld [vmem:[%s4183_s0 + $0x120] sm:$0xf] }
  0x5c   : > { %355 = vst [vmem:[%s4188_s6 + $0x8c] sm:$0xf] %v354_v7  ;;  %v358_v9 = vld [vmem:[%s4183_s0 + $0x128] sm:$0xf]  ;;  %v360_v10 = vld [vmem:[%s4183_s0 + $0x130] sm:$0xf] }
  0x5d   : > { %357 = vst [vmem:[%s4188_s6 + $0x90] sm:$0xf] %v356_v8  ;;  %359 = vst [vmem:[%s4188_s6 + $0x94] sm:$0xf] %v358_v9  ;;  %v362_v11 = vld [vmem:[%s4183_s0 + $0x138] sm:$0xf] }
  0x5e   : > { %361 = vst [vmem:[%s4188_s6 + $0x98] sm:$0xf] %v360_v10  ;;  %v364_v12 = vld [vmem:[%s4183_s0 + $0x140] sm:$0xf]  ;;  %v366_v13 = vld [vmem:[%s4183_s0 + $0x148] sm:$0xf] }
  0x5f   : > { %363 = vst [vmem:[%s4188_s6 + $0x9c] sm:$0xf] %v362_v11  ;;  %365 = vst [vmem:[%s4188_s6 + $0xa0] sm:$0xf] %v364_v12  ;;  %v368_v14 = vld [vmem:[%s4183_s0 + $0x150] sm:$0xf] }
  0x60   : > { %367 = vst [vmem:[%s4188_s6 + $0xa4] sm:$0xf] %v366_v13  ;;  %v370_v15 = vld [vmem:[%s4183_s0 + $0x158] sm:$0xf]  ;;  %v372_v16 = vld [vmem:[%s4183_s0 + $0x160] sm:$0xf] }
  0x61   : > { %369 = vst [vmem:[%s4188_s6 + $0xa8] sm:$0xf] %v368_v14  ;;  %371 = vst [vmem:[%s4188_s6 + $0xac] sm:$0xf] %v370_v15  ;;  %v374_v17 = vld [vmem:[%s4183_s0 + $0x168] sm:$0xf] }
  0x62   : > { %373 = vst [vmem:[%s4188_s6 + $0xb0] sm:$0xf] %v372_v16  ;;  %v376_v18 = vld [vmem:[%s4183_s0 + $0x170] sm:$0xf]  ;;  %v378_v19 = vld [vmem:[%s4183_s0 + $0x178] sm:$0xf] }
  0x63   : > { %375 = vst [vmem:[%s4188_s6 + $0xb4] sm:$0xf] %v374_v17  ;;  %377 = vst [vmem:[%s4188_s6 + $0xb8] sm:$0xf] %v376_v18  ;;  %v380_v20 = vld [vmem:[%s4183_s0 + $0x180] sm:$0xf] }
  0x64   : > { %379 = vst [vmem:[%s4188_s6 + $0xbc] sm:$0xf] %v378_v19  ;;  %v382_v21 = vld [vmem:[%s4183_s0 + $0x188] sm:$0xf]  ;;  %v384_v22 = vld [vmem:[%s4183_s0 + $0x190] sm:$0xf] }
  0x65   : > { %381 = vst [vmem:[%s4188_s6 + $0xc0] sm:$0xf] %v380_v20  ;;  %383 = vst [vmem:[%s4188_s6 + $0xc4] sm:$0xf] %v382_v21  ;;  %v386_v23 = vld [vmem:[%s4183_s0 + $0x198] sm:$0xf] }
  0x66   : > { %385 = vst [vmem:[%s4188_s6 + $0xc8] sm:$0xf] %v384_v22  ;;  %v388_v24 = vld [vmem:[%s4183_s0 + $0x1a0] sm:$0xf]  ;;  %v390_v25 = vld [vmem:[%s4183_s0 + $0x1a8] sm:$0xf] }
  0x67   : > { %387 = vst [vmem:[%s4188_s6 + $0xcc] sm:$0xf] %v386_v23  ;;  %389 = vst [vmem:[%s4188_s6 + $0xd0] sm:$0xf] %v388_v24  ;;  %v392_v26 = vld [vmem:[%s4183_s0 + $0x1b0] sm:$0xf] }
  0x68   : > { %391 = vst [vmem:[%s4188_s6 + $0xd4] sm:$0xf] %v390_v25  ;;  %v394_v27 = vld [vmem:[%s4183_s0 + $0x1b8] sm:$0xf]  ;;  %v396_v28 = vld [vmem:[%s4183_s0 + $0x1c0] sm:$0xf] }
  0x69   : > { %393 = vst [vmem:[%s4188_s6 + $0xd8] sm:$0xf] %v392_v26  ;;  %395 = vst [vmem:[%s4188_s6 + $0xdc] sm:$0xf] %v394_v27  ;;  %v398_v29 = vld [vmem:[%s4183_s0 + $0x1c8] sm:$0xf] }
  0x6a   : > { %397 = vst [vmem:[%s4188_s6 + $0xe0] sm:$0xf] %v396_v28  ;;  %v400_v30 = vld [vmem:[%s4183_s0 + $0x1d0] sm:$0xf]  ;;  %v402_v31 = vld [vmem:[%s4183_s0 + $0x1d8] sm:$0xf] }
  0x6b   : > { %399 = vst [vmem:[%s4188_s6 + $0xe4] sm:$0xf] %v398_v29  ;;  %401 = vst [vmem:[%s4188_s6 + $0xe8] sm:$0xf] %v400_v30  ;;  %v404_v32 = vld [vmem:[%s4183_s0 + $0x1e0] sm:$0xf] }
  0x6c   : > { %403 = vst [vmem:[%s4188_s6 + $0xec] sm:$0xf] %v402_v31  ;;  %v406_v33 = vld [vmem:[%s4183_s0 + $0x1e8] sm:$0xf]  ;;  %v408_v34 = vld [vmem:[%s4183_s0 + $0x1f0] sm:$0xf] }
  0x6d   : > { %405 = vst [vmem:[%s4188_s6 + $0xf0] sm:$0xf] %v404_v32  ;;  %407 = vst [vmem:[%s4188_s6 + $0xf4] sm:$0xf] %v406_v33  ;;  %v410_v35 = vld [vmem:[%s4183_s0 + $0x1f8] sm:$0xf] }
  0x6e   : > { %409 = vst [vmem:[%s4188_s6 + $0xf8] sm:$0xf] %v408_v34  ;;  %v412_v36 = vld [vmem:[%s4183_s0 + $0x200] sm:$0xf]  ;;  %v414_v37 = vld [vmem:[%s4183_s0 + $0x208] sm:$0xf] }
  0x6f   : > { %411 = vst [vmem:[%s4188_s6 + $0xfc] sm:$0xf] %v410_v35  ;;  %413 = vst [vmem:[%s4188_s6 + $0x100] sm:$0xf] %v412_v36  ;;  %v416_v38 = vld [vmem:[%s4183_s0 + $0x210] sm:$0xf] }
  0x70   : > { %415 = vst [vmem:[%s4188_s6 + $0x104] sm:$0xf] %v414_v37  ;;  %v418_v39 = vld [vmem:[%s4183_s0 + $0x218] sm:$0xf]  ;;  %v420_v40 = vld [vmem:[%s4183_s0 + $0x220] sm:$0xf] }
  0x71   : > { %417 = vst [vmem:[%s4188_s6 + $0x108] sm:$0xf] %v416_v38  ;;  %419 = vst [vmem:[%s4188_s6 + $0x10c] sm:$0xf] %v418_v39  ;;  %v422_v41 = vld [vmem:[%s4183_s0 + $0x228] sm:$0xf] }
  0x72   : > { %421 = vst [vmem:[%s4188_s6 + $0x110] sm:$0xf] %v420_v40  ;;  %v424_v42 = vld [vmem:[%s4183_s0 + $0x230] sm:$0xf]  ;;  %v426_v43 = vld [vmem:[%s4183_s0 + $0x238] sm:$0xf] }
  0x73   : > { %423 = vst [vmem:[%s4188_s6 + $0x114] sm:$0xf] %v422_v41  ;;  %425 = vst [vmem:[%s4188_s6 + $0x118] sm:$0xf] %v424_v42  ;;  %v428_v44 = vld [vmem:[%s4183_s0 + $0x240] sm:$0xf] }
  0x74   : > { %427 = vst [vmem:[%s4188_s6 + $0x11c] sm:$0xf] %v426_v43  ;;  %v430_v45 = vld [vmem:[%s4183_s0 + $0x248] sm:$0xf]  ;;  %v432_v46 = vld [vmem:[%s4183_s0 + $0x250] sm:$0xf] }
  0x75   : > { %429 = vst [vmem:[%s4188_s6 + $0x120] sm:$0xf] %v428_v44  ;;  %431 = vst [vmem:[%s4188_s6 + $0x124] sm:$0xf] %v430_v45  ;;  %v434_v47 = vld [vmem:[%s4183_s0 + $0x258] sm:$0xf] }
  0x76   : > { %433 = vst [vmem:[%s4188_s6 + $0x128] sm:$0xf] %v432_v46  ;;  %v436_v48 = vld [vmem:[%s4183_s0 + $0x260] sm:$0xf]  ;;  %v438_v49 = vld [vmem:[%s4183_s0 + $0x268] sm:$0xf] }
  0x77   : > { %435 = vst [vmem:[%s4188_s6 + $0x12c] sm:$0xf] %v434_v47  ;;  %437 = vst [vmem:[%s4188_s6 + $0x130] sm:$0xf] %v436_v48  ;;  %v440_v50 = vld [vmem:[%s4183_s0 + $0x270] sm:$0xf] }
  0x78   : > { %439 = vst [vmem:[%s4188_s6 + $0x134] sm:$0xf] %v438_v49  ;;  %v442_v51 = vld [vmem:[%s4183_s0 + $0x278] sm:$0xf]  ;;  %v444_v52 = vld [vmem:[%s4183_s0 + $0x280] sm:$0xf] }
  0x79   : > { %441 = vst [vmem:[%s4188_s6 + $0x138] sm:$0xf] %v440_v50  ;;  %443 = vst [vmem:[%s4188_s6 + $0x13c] sm:$0xf] %v442_v51  ;;  %v446_v53 = vld [vmem:[%s4183_s0 + $0x288] sm:$0xf] }
  0x7a   : > { %445 = vst [vmem:[%s4188_s6 + $0x140] sm:$0xf] %v444_v52  ;;  %v448_v54 = vld [vmem:[%s4183_s0 + $0x290] sm:$0xf]  ;;  %v450_v55 = vld [vmem:[%s4183_s0 + $0x298] sm:$0xf] }
  0x7b   : > { %447 = vst [vmem:[%s4188_s6 + $0x144] sm:$0xf] %v446_v53  ;;  %449 = vst [vmem:[%s4188_s6 + $0x148] sm:$0xf] %v448_v54  ;;  %v452_v56 = vld [vmem:[%s4183_s0 + $0x2a0] sm:$0xf] }
  0x7c   : > { %451 = vst [vmem:[%s4188_s6 + $0x14c] sm:$0xf] %v450_v55  ;;  %v454_v57 = vld [vmem:[%s4183_s0 + $0x2a8] sm:$0xf]  ;;  %v456_v58 = vld [vmem:[%s4183_s0 + $0x2b0] sm:$0xf] }
  0x7d   : > { %453 = vst [vmem:[%s4188_s6 + $0x150] sm:$0xf] %v452_v56  ;;  %455 = vst [vmem:[%s4188_s6 + $0x154] sm:$0xf] %v454_v57  ;;  %v458_v59 = vld [vmem:[%s4183_s0 + $0x2b8] sm:$0xf] }
  0x7e   : > { %457 = vst [vmem:[%s4188_s6 + $0x158] sm:$0xf] %v456_v58  ;;  %v460_v60 = vld [vmem:[%s4183_s0 + $0x2c0] sm:$0xf]  ;;  %v462_v61 = vld [vmem:[%s4183_s0 + $0x2c8] sm:$0xf] }
  0x7f   : > { %459 = vst [vmem:[%s4188_s6 + $0x15c] sm:$0xf] %v458_v59  ;;  %461 = vst [vmem:[%s4188_s6 + $0x160] sm:$0xf] %v460_v60  ;;  %v464_v62 = vld [vmem:[%s4183_s0 + $0x2d0] sm:$0xf] }
  0x80   : > { %463 = vst [vmem:[%s4188_s6 + $0x164] sm:$0xf] %v462_v61  ;;  %v466_v63 = vld [vmem:[%s4183_s0 + $0x2d8] sm:$0xf]  ;;  %v468_v0 = vld [vmem:[%s4183_s0 + $0x2e0] sm:$0xf] }
  0x81   : > { %465 = vst [vmem:[%s4188_s6 + $0x168] sm:$0xf] %v464_v62  ;;  %467 = vst [vmem:[%s4188_s6 + $0x16c] sm:$0xf] %v466_v63  ;;  %v470_v1 = vld [vmem:[%s4183_s0 + $0x2e8] sm:$0xf] }
  0x82   : > { %469 = vst [vmem:[%s4188_s6 + $0x170] sm:$0xf] %v468_v0  ;;  %v472_v2 = vld [vmem:[%s4183_s0 + $0x2f0] sm:$0xf]  ;;  %v474_v3 = vld [vmem:[%s4183_s0 + $0x2f8] sm:$0xf] }
  0x83   : > { %471 = vst [vmem:[%s4188_s6 + $0x174] sm:$0xf] %v470_v1  ;;  %473 = vst [vmem:[%s4188_s6 + $0x178] sm:$0xf] %v472_v2  ;;  %v476_v4 = vld [vmem:[%s4183_s0 + $0x300] sm:$0xf] }
  0x84   : > { %475 = vst [vmem:[%s4188_s6 + $0x17c] sm:$0xf] %v474_v3  ;;  %v478_v5 = vld [vmem:[%s4183_s0 + $0x308] sm:$0xf]  ;;  %v480_v6 = vld [vmem:[%s4183_s0 + $0x310] sm:$0xf] }
  0x85   : > { %477 = vst [vmem:[%s4188_s6 + $0x180] sm:$0xf] %v476_v4  ;;  %479 = vst [vmem:[%s4188_s6 + $0x184] sm:$0xf] %v478_v5  ;;  %v482_v7 = vld [vmem:[%s4183_s0 + $0x318] sm:$0xf] }
  0x86   : > { %481 = vst [vmem:[%s4188_s6 + $0x188] sm:$0xf] %v480_v6  ;;  %v484_v8 = vld [vmem:[%s4183_s0 + $0x320] sm:$0xf]  ;;  %v486_v9 = vld [vmem:[%s4183_s0 + $0x328] sm:$0xf] }
  0x87   : > { %483 = vst [vmem:[%s4188_s6 + $0x18c] sm:$0xf] %v482_v7  ;;  %485 = vst [vmem:[%s4188_s6 + $0x190] sm:$0xf] %v484_v8  ;;  %v488_v10 = vld [vmem:[%s4183_s0 + $0x330] sm:$0xf] }
  0x88   : > { %487 = vst [vmem:[%s4188_s6 + $0x194] sm:$0xf] %v486_v9  ;;  %v490_v11 = vld [vmem:[%s4183_s0 + $0x338] sm:$0xf]  ;;  %v492_v12 = vld [vmem:[%s4183_s0 + $0x340] sm:$0xf] }
  0x89   : > { %489 = vst [vmem:[%s4188_s6 + $0x198] sm:$0xf] %v488_v10  ;;  %491 = vst [vmem:[%s4188_s6 + $0x19c] sm:$0xf] %v490_v11  ;;  %v494_v13 = vld [vmem:[%s4183_s0 + $0x348] sm:$0xf] }
  0x8a   : > { %493 = vst [vmem:[%s4188_s6 + $0x1a0] sm:$0xf] %v492_v12  ;;  %v496_v14 = vld [vmem:[%s4183_s0 + $0x350] sm:$0xf]  ;;  %v498_v15 = vld [vmem:[%s4183_s0 + $0x358] sm:$0xf] }
  0x8b   : > { %495 = vst [vmem:[%s4188_s6 + $0x1a4] sm:$0xf] %v494_v13  ;;  %497 = vst [vmem:[%s4188_s6 + $0x1a8] sm:$0xf] %v496_v14  ;;  %v500_v16 = vld [vmem:[%s4183_s0 + $0x360] sm:$0xf] }
  0x8c   : > { %499 = vst [vmem:[%s4188_s6 + $0x1ac] sm:$0xf] %v498_v15  ;;  %v502_v17 = vld [vmem:[%s4183_s0 + $0x368] sm:$0xf]  ;;  %v504_v18 = vld [vmem:[%s4183_s0 + $0x370] sm:$0xf] }
  0x8d   : > { %501 = vst [vmem:[%s4188_s6 + $0x1b0] sm:$0xf] %v500_v16  ;;  %503 = vst [vmem:[%s4188_s6 + $0x1b4] sm:$0xf] %v502_v17  ;;  %v506_v19 = vld [vmem:[%s4183_s0 + $0x378] sm:$0xf] }
  0x8e   : > { %505 = vst [vmem:[%s4188_s6 + $0x1b8] sm:$0xf] %v504_v18  ;;  %v508_v20 = vld [vmem:[%s4183_s0 + $0x380] sm:$0xf]  ;;  %v510_v21 = vld [vmem:[%s4183_s0 + $0x388] sm:$0xf] }
  0x8f   : > { %507 = vst [vmem:[%s4188_s6 + $0x1bc] sm:$0xf] %v506_v19  ;;  %509 = vst [vmem:[%s4188_s6 + $0x1c0] sm:$0xf] %v508_v20  ;;  %v512_v22 = vld [vmem:[%s4183_s0 + $0x390] sm:$0xf] }
  0x90   : > { %511 = vst [vmem:[%s4188_s6 + $0x1c4] sm:$0xf] %v510_v21  ;;  %v514_v23 = vld [vmem:[%s4183_s0 + $0x398] sm:$0xf]  ;;  %v516_v24 = vld [vmem:[%s4183_s0 + $0x3a0] sm:$0xf] }
  0x91   : > { %513 = vst [vmem:[%s4188_s6 + $0x1c8] sm:$0xf] %v512_v22  ;;  %515 = vst [vmem:[%s4188_s6 + $0x1cc] sm:$0xf] %v514_v23  ;;  %v518_v25 = vld [vmem:[%s4183_s0 + $0x3a8] sm:$0xf] }
  0x92   : > { %517 = vst [vmem:[%s4188_s6 + $0x1d0] sm:$0xf] %v516_v24  ;;  %v520_v26 = vld [vmem:[%s4183_s0 + $0x3b0] sm:$0xf]  ;;  %v522_v27 = vld [vmem:[%s4183_s0 + $0x3b8] sm:$0xf] }
  0x93   : > { %519 = vst [vmem:[%s4188_s6 + $0x1d4] sm:$0xf] %v518_v25  ;;  %521 = vst [vmem:[%s4188_s6 + $0x1d8] sm:$0xf] %v520_v26  ;;  %v524_v28 = vld [vmem:[%s4183_s0 + $0x3c0] sm:$0xf] }
  0x94   : > { %523 = vst [vmem:[%s4188_s6 + $0x1dc] sm:$0xf] %v522_v27  ;;  %v526_v29 = vld [vmem:[%s4183_s0 + $0x3c8] sm:$0xf]  ;;  %v528_v30 = vld [vmem:[%s4183_s0 + $0x3d0] sm:$0xf] }
  0x95   : > { %525 = vst [vmem:[%s4188_s6 + $0x1e0] sm:$0xf] %v524_v28  ;;  %527 = vst [vmem:[%s4188_s6 + $0x1e4] sm:$0xf] %v526_v29  ;;  %v530_v31 = vld [vmem:[%s4183_s0 + $0x3d8] sm:$0xf] }
  0x96   : > { %529 = vst [vmem:[%s4188_s6 + $0x1e8] sm:$0xf] %v528_v30  ;;  %v532_v32 = vld [vmem:[%s4183_s0 + $0x3e0] sm:$0xf]  ;;  %v534_v33 = vld [vmem:[%s4183_s0 + $0x3e8] sm:$0xf] }
  0x97   : > { %531 = vst [vmem:[%s4188_s6 + $0x1ec] sm:$0xf] %v530_v31  ;;  %533 = vst [vmem:[%s4188_s6 + $0x1f0] sm:$0xf] %v532_v32  ;;  %v536_v34 = vld [vmem:[%s4183_s0 + $0x3f0] sm:$0xf] }
  0x98   : > { %535 = vst [vmem:[%s4188_s6 + $0x1f4] sm:$0xf] %v534_v33  ;;  %v538_v35 = vld [vmem:[%s4183_s0 + $0x3f8] sm:$0xf]  ;;  %v540_v36 = vld [vmem:[%s4183_s0 + $0x400] sm:$0xf] }
  0x99   : > { %537 = vst [vmem:[%s4188_s6 + $0x1f8] sm:$0xf] %v536_v34  ;;  %539 = vst [vmem:[%s4188_s6 + $0x1fc] sm:$0xf] %v538_v35  ;;  %v542_v37 = vld [vmem:[%s4183_s0 + $0x408] sm:$0xf] }
  0x9a   : > { %541 = vst [vmem:[%s4188_s6 + $0x200] sm:$0xf] %v540_v36  ;;  %v544_v38 = vld [vmem:[%s4183_s0 + $0x410] sm:$0xf]  ;;  %v546_v39 = vld [vmem:[%s4183_s0 + $0x418] sm:$0xf] }
  0x9b   : > { %543 = vst [vmem:[%s4188_s6 + $0x204] sm:$0xf] %v542_v37  ;;  %545 = vst [vmem:[%s4188_s6 + $0x208] sm:$0xf] %v544_v38  ;;  %v548_v40 = vld [vmem:[%s4183_s0 + $0x420] sm:$0xf] }
  0x9c   : > { %547 = vst [vmem:[%s4188_s6 + $0x20c] sm:$0xf] %v546_v39  ;;  %v550_v41 = vld [vmem:[%s4183_s0 + $0x428] sm:$0xf]  ;;  %v552_v42 = vld [vmem:[%s4183_s0 + $0x430] sm:$0xf] }
  0x9d   : > { %549 = vst [vmem:[%s4188_s6 + $0x210] sm:$0xf] %v548_v40  ;;  %551 = vst [vmem:[%s4188_s6 + $0x214] sm:$0xf] %v550_v41  ;;  %v554_v43 = vld [vmem:[%s4183_s0 + $0x438] sm:$0xf] }
  0x9e   : > { %553 = vst [vmem:[%s4188_s6 + $0x218] sm:$0xf] %v552_v42  ;;  %v556_v44 = vld [vmem:[%s4183_s0 + $0x440] sm:$0xf]  ;;  %v558_v45 = vld [vmem:[%s4183_s0 + $0x448] sm:$0xf] }
  0x9f   : > { %555 = vst [vmem:[%s4188_s6 + $0x21c] sm:$0xf] %v554_v43  ;;  %557 = vst [vmem:[%s4188_s6 + $0x220] sm:$0xf] %v556_v44  ;;  %v560_v46 = vld [vmem:[%s4183_s0 + $0x450] sm:$0xf] }
  0xa0   : > { %559 = vst [vmem:[%s4188_s6 + $0x224] sm:$0xf] %v558_v45  ;;  %v562_v47 = vld [vmem:[%s4183_s0 + $0x458] sm:$0xf]  ;;  %v564_v48 = vld [vmem:[%s4183_s0 + $0x460] sm:$0xf] }
  0xa1   : > { %561 = vst [vmem:[%s4188_s6 + $0x228] sm:$0xf] %v560_v46  ;;  %563 = vst [vmem:[%s4188_s6 + $0x22c] sm:$0xf] %v562_v47  ;;  %v566_v49 = vld [vmem:[%s4183_s0 + $0x468] sm:$0xf] }
  0xa2   : > { %565 = vst [vmem:[%s4188_s6 + $0x230] sm:$0xf] %v564_v48  ;;  %v568_v50 = vld [vmem:[%s4183_s0 + $0x470] sm:$0xf]  ;;  %v570_v51 = vld [vmem:[%s4183_s0 + $0x478] sm:$0xf] }
  0xa3   : > { %567 = vst [vmem:[%s4188_s6 + $0x234] sm:$0xf] %v566_v49  ;;  %569 = vst [vmem:[%s4188_s6 + $0x238] sm:$0xf] %v568_v50  ;;  %v572_v52 = vld [vmem:[%s4183_s0 + $0x480] sm:$0xf] }
  0xa4   : > { %571 = vst [vmem:[%s4188_s6 + $0x23c] sm:$0xf] %v570_v51  ;;  %v574_v53 = vld [vmem:[%s4183_s0 + $0x488] sm:$0xf]  ;;  %v576_v54 = vld [vmem:[%s4183_s0 + $0x490] sm:$0xf] }
  0xa5   : > { %573 = vst [vmem:[%s4188_s6 + $0x240] sm:$0xf] %v572_v52  ;;  %575 = vst [vmem:[%s4188_s6 + $0x244] sm:$0xf] %v574_v53  ;;  %v578_v55 = vld [vmem:[%s4183_s0 + $0x498] sm:$0xf] }
  0xa6   : > { %577 = vst [vmem:[%s4188_s6 + $0x248] sm:$0xf] %v576_v54  ;;  %v580_v56 = vld [vmem:[%s4183_s0 + $0x4a0] sm:$0xf]  ;;  %v582_v57 = vld [vmem:[%s4183_s0 + $0x4a8] sm:$0xf] }
  0xa7   : > { %579 = vst [vmem:[%s4188_s6 + $0x24c] sm:$0xf] %v578_v55  ;;  %581 = vst [vmem:[%s4188_s6 + $0x250] sm:$0xf] %v580_v56  ;;  %v584_v58 = vld [vmem:[%s4183_s0 + $0x4b0] sm:$0xf] }
  0xa8   : > { %583 = vst [vmem:[%s4188_s6 + $0x254] sm:$0xf] %v582_v57  ;;  %v586_v59 = vld [vmem:[%s4183_s0 + $0x4b8] sm:$0xf]  ;;  %v588_v60 = vld [vmem:[%s4183_s0 + $0x4c0] sm:$0xf] }
  0xa9   : > { %585 = vst [vmem:[%s4188_s6 + $0x258] sm:$0xf] %v584_v58  ;;  %587 = vst [vmem:[%s4188_s6 + $0x25c] sm:$0xf] %v586_v59  ;;  %v590_v61 = vld [vmem:[%s4183_s0 + $0x4c8] sm:$0xf] }
  0xaa   : > { %589 = vst [vmem:[%s4188_s6 + $0x260] sm:$0xf] %v588_v60  ;;  %v592_v62 = vld [vmem:[%s4183_s0 + $0x4d0] sm:$0xf]  ;;  %v594_v63 = vld [vmem:[%s4183_s0 + $0x4d8] sm:$0xf] }
  0xab   : > { %591 = vst [vmem:[%s4188_s6 + $0x264] sm:$0xf] %v590_v61  ;;  %593 = vst [vmem:[%s4188_s6 + $0x268] sm:$0xf] %v592_v62  ;;  %v596_v0 = vld [vmem:[%s4183_s0 + $0x4e0] sm:$0xf] }
  0xac   : > { %595 = vst [vmem:[%s4188_s6 + $0x26c] sm:$0xf] %v594_v63  ;;  %v598_v1 = vld [vmem:[%s4183_s0 + $0x4e8] sm:$0xf]  ;;  %v600_v2 = vld [vmem:[%s4183_s0 + $0x4f0] sm:$0xf] }
  0xad   : > { %597 = vst [vmem:[%s4188_s6 + $0x270] sm:$0xf] %v596_v0  ;;  %599 = vst [vmem:[%s4188_s6 + $0x274] sm:$0xf] %v598_v1  ;;  %v602_v3 = vld [vmem:[%s4183_s0 + $0x4f8] sm:$0xf] }
  0xae   : > { %601 = vst [vmem:[%s4188_s6 + $0x278] sm:$0xf] %v600_v2  ;;  %v604_v4 = vld [vmem:[%s4183_s0 + $0x500] sm:$0xf]  ;;  %v606_v5 = vld [vmem:[%s4183_s0 + $0x508] sm:$0xf] }
  0xaf   : > { %603 = vst [vmem:[%s4188_s6 + $0x27c] sm:$0xf] %v602_v3  ;;  %605 = vst [vmem:[%s4188_s6 + $0x280] sm:$0xf] %v604_v4  ;;  %v608_v6 = vld [vmem:[%s4183_s0 + $0x510] sm:$0xf] }
  0xb0   : > { %607 = vst [vmem:[%s4188_s6 + $0x284] sm:$0xf] %v606_v5  ;;  %v610_v7 = vld [vmem:[%s4183_s0 + $0x518] sm:$0xf]  ;;  %v612_v8 = vld [vmem:[%s4183_s0 + $0x520] sm:$0xf] }
  0xb1   : > { %609 = vst [vmem:[%s4188_s6 + $0x288] sm:$0xf] %v608_v6  ;;  %611 = vst [vmem:[%s4188_s6 + $0x28c] sm:$0xf] %v610_v7  ;;  %v614_v9 = vld [vmem:[%s4183_s0 + $0x528] sm:$0xf] }
  0xb2   : > { %613 = vst [vmem:[%s4188_s6 + $0x290] sm:$0xf] %v612_v8  ;;  %v616_v10 = vld [vmem:[%s4183_s0 + $0x530] sm:$0xf]  ;;  %v618_v11 = vld [vmem:[%s4183_s0 + $0x538] sm:$0xf] }
  0xb3   : > { %615 = vst [vmem:[%s4188_s6 + $0x294] sm:$0xf] %v614_v9  ;;  %617 = vst [vmem:[%s4188_s6 + $0x298] sm:$0xf] %v616_v10  ;;  %v620_v12 = vld [vmem:[%s4183_s0 + $0x540] sm:$0xf] }
  0xb4   : > { %619 = vst [vmem:[%s4188_s6 + $0x29c] sm:$0xf] %v618_v11  ;;  %v622_v13 = vld [vmem:[%s4183_s0 + $0x548] sm:$0xf]  ;;  %v624_v14 = vld [vmem:[%s4183_s0 + $0x550] sm:$0xf] }
  0xb5   : > { %621 = vst [vmem:[%s4188_s6 + $0x2a0] sm:$0xf] %v620_v12  ;;  %623 = vst [vmem:[%s4188_s6 + $0x2a4] sm:$0xf] %v622_v13  ;;  %v626_v15 = vld [vmem:[%s4183_s0 + $0x558] sm:$0xf] }
  0xb6   : > { %625 = vst [vmem:[%s4188_s6 + $0x2a8] sm:$0xf] %v624_v14  ;;  %v628_v16 = vld [vmem:[%s4183_s0 + $0x560] sm:$0xf]  ;;  %v630_v17 = vld [vmem:[%s4183_s0 + $0x568] sm:$0xf] }
  0xb7   : > { %627 = vst [vmem:[%s4188_s6 + $0x2ac] sm:$0xf] %v626_v15  ;;  %629 = vst [vmem:[%s4188_s6 + $0x2b0] sm:$0xf] %v628_v16  ;;  %v632_v18 = vld [vmem:[%s4183_s0 + $0x570] sm:$0xf] }
  0xb8   : > { %631 = vst [vmem:[%s4188_s6 + $0x2b4] sm:$0xf] %v630_v17  ;;  %v634_v19 = vld [vmem:[%s4183_s0 + $0x578] sm:$0xf]  ;;  %v636_v20 = vld [vmem:[%s4183_s0 + $0x580] sm:$0xf] }
  0xb9   : > { %633 = vst [vmem:[%s4188_s6 + $0x2b8] sm:$0xf] %v632_v18  ;;  %635 = vst [vmem:[%s4188_s6 + $0x2bc] sm:$0xf] %v634_v19  ;;  %v638_v21 = vld [vmem:[%s4183_s0 + $0x588] sm:$0xf] }
  0xba   : > { %637 = vst [vmem:[%s4188_s6 + $0x2c0] sm:$0xf] %v636_v20  ;;  %v640_v22 = vld [vmem:[%s4183_s0 + $0x590] sm:$0xf]  ;;  %v642_v23 = vld [vmem:[%s4183_s0 + $0x598] sm:$0xf] }
  0xbb   : > { %639 = vst [vmem:[%s4188_s6 + $0x2c4] sm:$0xf] %v638_v21  ;;  %641 = vst [vmem:[%s4188_s6 + $0x2c8] sm:$0xf] %v640_v22  ;;  %v644_v24 = vld [vmem:[%s4183_s0 + $0x5a0] sm:$0xf] }
  0xbc   : > { %643 = vst [vmem:[%s4188_s6 + $0x2cc] sm:$0xf] %v642_v23  ;;  %v646_v25 = vld [vmem:[%s4183_s0 + $0x5a8] sm:$0xf]  ;;  %v648_v26 = vld [vmem:[%s4183_s0 + $0x5b0] sm:$0xf] }
  0xbd   : > { %645 = vst [vmem:[%s4188_s6 + $0x2d0] sm:$0xf] %v644_v24  ;;  %647 = vst [vmem:[%s4188_s6 + $0x2d4] sm:$0xf] %v646_v25  ;;  %v650_v27 = vld [vmem:[%s4183_s0 + $0x5b8] sm:$0xf] }
  0xbe   : > { %649 = vst [vmem:[%s4188_s6 + $0x2d8] sm:$0xf] %v648_v26  ;;  %v652_v28 = vld [vmem:[%s4183_s0 + $0x5c0] sm:$0xf]  ;;  %v654_v29 = vld [vmem:[%s4183_s0 + $0x5c8] sm:$0xf] }
  0xbf   : > { %651 = vst [vmem:[%s4188_s6 + $0x2dc] sm:$0xf] %v650_v27  ;;  %653 = vst [vmem:[%s4188_s6 + $0x2e0] sm:$0xf] %v652_v28  ;;  %v656_v30 = vld [vmem:[%s4183_s0 + $0x5d0] sm:$0xf] }
  0xc0   : > { %655 = vst [vmem:[%s4188_s6 + $0x2e4] sm:$0xf] %v654_v29  ;;  %v658_v31 = vld [vmem:[%s4183_s0 + $0x5d8] sm:$0xf]  ;;  %v660_v32 = vld [vmem:[%s4183_s0 + $0x5e0] sm:$0xf] }
  0xc1   : > { %657 = vst [vmem:[%s4188_s6 + $0x2e8] sm:$0xf] %v656_v30  ;;  %659 = vst [vmem:[%s4188_s6 + $0x2ec] sm:$0xf] %v658_v31  ;;  %v662_v33 = vld [vmem:[%s4183_s0 + $0x5e8] sm:$0xf] }
  0xc2   : > { %661 = vst [vmem:[%s4188_s6 + $0x2f0] sm:$0xf] %v660_v32  ;;  %v664_v34 = vld [vmem:[%s4183_s0 + $0x5f0] sm:$0xf]  ;;  %v666_v35 = vld [vmem:[%s4183_s0 + $0x5f8] sm:$0xf] }
  0xc3   : > { %663 = vst [vmem:[%s4188_s6 + $0x2f4] sm:$0xf] %v662_v33  ;;  %665 = vst [vmem:[%s4188_s6 + $0x2f8] sm:$0xf] %v664_v34  ;;  %v668_v36 = vld [vmem:[%s4183_s0 + $0x600] sm:$0xf] }
  0xc4   : > { %667 = vst [vmem:[%s4188_s6 + $0x2fc] sm:$0xf] %v666_v35  ;;  %v670_v37 = vld [vmem:[%s4183_s0 + $0x608] sm:$0xf]  ;;  %v672_v38 = vld [vmem:[%s4183_s0 + $0x610] sm:$0xf] }
  0xc5   : > { %669 = vst [vmem:[%s4188_s6 + $0x300] sm:$0xf] %v668_v36  ;;  %671 = vst [vmem:[%s4188_s6 + $0x304] sm:$0xf] %v670_v37  ;;  %v674_v39 = vld [vmem:[%s4183_s0 + $0x618] sm:$0xf] }
  0xc6   : > { %673 = vst [vmem:[%s4188_s6 + $0x308] sm:$0xf] %v672_v38  ;;  %v676_v40 = vld [vmem:[%s4183_s0 + $0x620] sm:$0xf]  ;;  %v678_v41 = vld [vmem:[%s4183_s0 + $0x628] sm:$0xf] }
  0xc7   : > { %675 = vst [vmem:[%s4188_s6 + $0x30c] sm:$0xf] %v674_v39  ;;  %677 = vst [vmem:[%s4188_s6 + $0x310] sm:$0xf] %v676_v40  ;;  %v680_v42 = vld [vmem:[%s4183_s0 + $0x630] sm:$0xf] }
  0xc8   : > { %679 = vst [vmem:[%s4188_s6 + $0x314] sm:$0xf] %v678_v41  ;;  %v682_v43 = vld [vmem:[%s4183_s0 + $0x638] sm:$0xf]  ;;  %v684_v44 = vld [vmem:[%s4183_s0 + $0x640] sm:$0xf] }
  0xc9   : > { %681 = vst [vmem:[%s4188_s6 + $0x318] sm:$0xf] %v680_v42  ;;  %683 = vst [vmem:[%s4188_s6 + $0x31c] sm:$0xf] %v682_v43  ;;  %v686_v45 = vld [vmem:[%s4183_s0 + $0x648] sm:$0xf] }
  0xca   : > { %685 = vst [vmem:[%s4188_s6 + $0x320] sm:$0xf] %v684_v44  ;;  %v688_v46 = vld [vmem:[%s4183_s0 + $0x650] sm:$0xf]  ;;  %v690_v47 = vld [vmem:[%s4183_s0 + $0x658] sm:$0xf] }
  0xcb   : > { %687 = vst [vmem:[%s4188_s6 + $0x324] sm:$0xf] %v686_v45  ;;  %689 = vst [vmem:[%s4188_s6 + $0x328] sm:$0xf] %v688_v46  ;;  %v692_v48 = vld [vmem:[%s4183_s0 + $0x660] sm:$0xf] }
  0xcc   : > { %691 = vst [vmem:[%s4188_s6 + $0x32c] sm:$0xf] %v690_v47  ;;  %v694_v49 = vld [vmem:[%s4183_s0 + $0x668] sm:$0xf]  ;;  %v696_v50 = vld [vmem:[%s4183_s0 + $0x670] sm:$0xf] }
  0xcd   : > { %693 = vst [vmem:[%s4188_s6 + $0x330] sm:$0xf] %v692_v48  ;;  %695 = vst [vmem:[%s4188_s6 + $0x334] sm:$0xf] %v694_v49  ;;  %v698_v51 = vld [vmem:[%s4183_s0 + $0x678] sm:$0xf] }
  0xce   : > { %697 = vst [vmem:[%s4188_s6 + $0x338] sm:$0xf] %v696_v50  ;;  %v700_v52 = vld [vmem:[%s4183_s0 + $0x680] sm:$0xf]  ;;  %v702_v53 = vld [vmem:[%s4183_s0 + $0x688] sm:$0xf] }
  0xcf   : > { %699 = vst [vmem:[%s4188_s6 + $0x33c] sm:$0xf] %v698_v51  ;;  %701 = vst [vmem:[%s4188_s6 + $0x340] sm:$0xf] %v700_v52  ;;  %v704_v54 = vld [vmem:[%s4183_s0 + $0x690] sm:$0xf] }
  0xd0   : > { %703 = vst [vmem:[%s4188_s6 + $0x344] sm:$0xf] %v702_v53  ;;  %v706_v55 = vld [vmem:[%s4183_s0 + $0x698] sm:$0xf]  ;;  %v708_v56 = vld [vmem:[%s4183_s0 + $0x6a0] sm:$0xf] }
  0xd1   : > { %705 = vst [vmem:[%s4188_s6 + $0x348] sm:$0xf] %v704_v54  ;;  %707 = vst [vmem:[%s4188_s6 + $0x34c] sm:$0xf] %v706_v55  ;;  %v710_v57 = vld [vmem:[%s4183_s0 + $0x6a8] sm:$0xf] }
  0xd2   : > { %709 = vst [vmem:[%s4188_s6 + $0x350] sm:$0xf] %v708_v56  ;;  %v712_v58 = vld [vmem:[%s4183_s0 + $0x6b0] sm:$0xf]  ;;  %v714_v59 = vld [vmem:[%s4183_s0 + $0x6b8] sm:$0xf] }
  0xd3   : > { %711 = vst [vmem:[%s4188_s6 + $0x354] sm:$0xf] %v710_v57  ;;  %713 = vst [vmem:[%s4188_s6 + $0x358] sm:$0xf] %v712_v58  ;;  %v716_v60 = vld [vmem:[%s4183_s0 + $0x6c0] sm:$0xf] }
  0xd4   : > { %715 = vst [vmem:[%s4188_s6 + $0x35c] sm:$0xf] %v714_v59  ;;  %v718_v61 = vld [vmem:[%s4183_s0 + $0x6c8] sm:$0xf]  ;;  %v720_v62 = vld [vmem:[%s4183_s0 + $0x6d0] sm:$0xf] }
  0xd5   : > { %717 = vst [vmem:[%s4188_s6 + $0x360] sm:$0xf] %v716_v60  ;;  %719 = vst [vmem:[%s4188_s6 + $0x364] sm:$0xf] %v718_v61  ;;  %v722_v63 = vld [vmem:[%s4183_s0 + $0x6d8] sm:$0xf] }
  0xd6   : > { %721 = vst [vmem:[%s4188_s6 + $0x368] sm:$0xf] %v720_v62  ;;  %v724_v0 = vld [vmem:[%s4183_s0 + $0x6e0] sm:$0xf]  ;;  %v726_v1 = vld [vmem:[%s4183_s0 + $0x6e8] sm:$0xf] }
  0xd7   : > { %723 = vst [vmem:[%s4188_s6 + $0x36c] sm:$0xf] %v722_v63  ;;  %725 = vst [vmem:[%s4188_s6 + $0x370] sm:$0xf] %v724_v0  ;;  %v728_v2 = vld [vmem:[%s4183_s0 + $0x6f0] sm:$0xf] }
  0xd8   : > { %727 = vst [vmem:[%s4188_s6 + $0x374] sm:$0xf] %v726_v1  ;;  %v730_v3 = vld [vmem:[%s4183_s0 + $0x6f8] sm:$0xf]  ;;  %v732_v4 = vld [vmem:[%s4183_s0 + $0x700] sm:$0xf] }
  0xd9   : > { %729 = vst [vmem:[%s4188_s6 + $0x378] sm:$0xf] %v728_v2  ;;  %731 = vst [vmem:[%s4188_s6 + $0x37c] sm:$0xf] %v730_v3  ;;  %v734_v5 = vld [vmem:[%s4183_s0 + $0x708] sm:$0xf] }
  0xda   : > { %733 = vst [vmem:[%s4188_s6 + $0x380] sm:$0xf] %v732_v4  ;;  %v736_v6 = vld [vmem:[%s4183_s0 + $0x710] sm:$0xf]  ;;  %v738_v7 = vld [vmem:[%s4183_s0 + $0x718] sm:$0xf] }
  0xdb   : > { %735 = vst [vmem:[%s4188_s6 + $0x384] sm:$0xf] %v734_v5  ;;  %737 = vst [vmem:[%s4188_s6 + $0x388] sm:$0xf] %v736_v6  ;;  %v740_v8 = vld [vmem:[%s4183_s0 + $0x720] sm:$0xf] }
  0xdc   : > { %739 = vst [vmem:[%s4188_s6 + $0x38c] sm:$0xf] %v738_v7  ;;  %v742_v9 = vld [vmem:[%s4183_s0 + $0x728] sm:$0xf]  ;;  %v744_v10 = vld [vmem:[%s4183_s0 + $0x730] sm:$0xf] }
  0xdd   : > { %741 = vst [vmem:[%s4188_s6 + $0x390] sm:$0xf] %v740_v8  ;;  %743 = vst [vmem:[%s4188_s6 + $0x394] sm:$0xf] %v742_v9  ;;  %v746_v11 = vld [vmem:[%s4183_s0 + $0x738] sm:$0xf] }
  0xde   : > { %745 = vst [vmem:[%s4188_s6 + $0x398] sm:$0xf] %v744_v10  ;;  %v748_v12 = vld [vmem:[%s4183_s0 + $0x740] sm:$0xf]  ;;  %v750_v13 = vld [vmem:[%s4183_s0 + $0x748] sm:$0xf] }
  0xdf   : > { %747 = vst [vmem:[%s4188_s6 + $0x39c] sm:$0xf] %v746_v11  ;;  %749 = vst [vmem:[%s4188_s6 + $0x3a0] sm:$0xf] %v748_v12  ;;  %v752_v14 = vld [vmem:[%s4183_s0 + $0x750] sm:$0xf] }
  0xe0   : > { %751 = vst [vmem:[%s4188_s6 + $0x3a4] sm:$0xf] %v750_v13  ;;  %v754_v15 = vld [vmem:[%s4183_s0 + $0x758] sm:$0xf]  ;;  %v756_v16 = vld [vmem:[%s4183_s0 + $0x760] sm:$0xf] }
  0xe1   : > { %753 = vst [vmem:[%s4188_s6 + $0x3a8] sm:$0xf] %v752_v14  ;;  %755 = vst [vmem:[%s4188_s6 + $0x3ac] sm:$0xf] %v754_v15  ;;  %v758_v17 = vld [vmem:[%s4183_s0 + $0x768] sm:$0xf] }
  0xe2   : > { %757 = vst [vmem:[%s4188_s6 + $0x3b0] sm:$0xf] %v756_v16  ;;  %v760_v18 = vld [vmem:[%s4183_s0 + $0x770] sm:$0xf]  ;;  %v762_v19 = vld [vmem:[%s4183_s0 + $0x778] sm:$0xf] }
  0xe3   : > { %759 = vst [vmem:[%s4188_s6 + $0x3b4] sm:$0xf] %v758_v17  ;;  %761 = vst [vmem:[%s4188_s6 + $0x3b8] sm:$0xf] %v760_v18  ;;  %v764_v20 = vld [vmem:[%s4183_s0 + $0x780] sm:$0xf] }
  0xe4   : > { %763 = vst [vmem:[%s4188_s6 + $0x3bc] sm:$0xf] %v762_v19  ;;  %v766_v21 = vld [vmem:[%s4183_s0 + $0x788] sm:$0xf]  ;;  %v768_v22 = vld [vmem:[%s4183_s0 + $0x790] sm:$0xf] }
  0xe5   : > { %765 = vst [vmem:[%s4188_s6 + $0x3c0] sm:$0xf] %v764_v20  ;;  %767 = vst [vmem:[%s4188_s6 + $0x3c4] sm:$0xf] %v766_v21  ;;  %v770_v23 = vld [vmem:[%s4183_s0 + $0x798] sm:$0xf] }
  0xe6   : > { %769 = vst [vmem:[%s4188_s6 + $0x3c8] sm:$0xf] %v768_v22  ;;  %v772_v24 = vld [vmem:[%s4183_s0 + $0x7a0] sm:$0xf]  ;;  %v774_v25 = vld [vmem:[%s4183_s0 + $0x7a8] sm:$0xf] }
  0xe7   : > { %771 = vst [vmem:[%s4188_s6 + $0x3cc] sm:$0xf] %v770_v23  ;;  %773 = vst [vmem:[%s4188_s6 + $0x3d0] sm:$0xf] %v772_v24  ;;  %v776_v26 = vld [vmem:[%s4183_s0 + $0x7b0] sm:$0xf] }
  0xe8   : > { %775 = vst [vmem:[%s4188_s6 + $0x3d4] sm:$0xf] %v774_v25  ;;  %v778_v27 = vld [vmem:[%s4183_s0 + $0x7b8] sm:$0xf]  ;;  %v780_v28 = vld [vmem:[%s4183_s0 + $0x7c0] sm:$0xf] }
  0xe9   : > { %777 = vst [vmem:[%s4188_s6 + $0x3d8] sm:$0xf] %v776_v26  ;;  %779 = vst [vmem:[%s4188_s6 + $0x3dc] sm:$0xf] %v778_v27  ;;  %v782_v29 = vld [vmem:[%s4183_s0 + $0x7c8] sm:$0xf] }
  0xea   : > { %781 = vst [vmem:[%s4188_s6 + $0x3e0] sm:$0xf] %v780_v28  ;;  %v784_v30 = vld [vmem:[%s4183_s0 + $0x7d0] sm:$0xf]  ;;  %v786_v31 = vld [vmem:[%s4183_s0 + $0x7d8] sm:$0xf] }
  0xeb   : > { %783 = vst [vmem:[%s4188_s6 + $0x3e4] sm:$0xf] %v782_v29  ;;  %785 = vst [vmem:[%s4188_s6 + $0x3e8] sm:$0xf] %v784_v30  ;;  %v788_v32 = vld [vmem:[%s4183_s0 + $0x7e0] sm:$0xf] }
  0xec   : > { %787 = vst [vmem:[%s4188_s6 + $0x3ec] sm:$0xf] %v786_v31  ;;  %v790_v33 = vld [vmem:[%s4183_s0 + $0x7e8] sm:$0xf]  ;;  %v792_v34 = vld [vmem:[%s4183_s0 + $0x7f0] sm:$0xf] }
  0xed   : > { %789 = vst [vmem:[%s4188_s6 + $0x3f0] sm:$0xf] %v788_v32  ;;  %791 = vst [vmem:[%s4188_s6 + $0x3f4] sm:$0xf] %v790_v33  ;;  %v794_v35 = vld [vmem:[%s4183_s0 + $0x7f8] sm:$0xf] }
  0xee   : > { %793 = vst [vmem:[%s4188_s6 + $0x3f8] sm:$0xf] %v792_v34  ;;  %v796_v36 = vld [vmem:[%s4183_s0 + $0x800] sm:$0xf]  ;;  %v798_v37 = vld [vmem:[%s4183_s0 + $0x808] sm:$0xf] }
  0xef   : > { %795 = vst [vmem:[%s4188_s6 + $0x3fc] sm:$0xf] %v794_v35  ;;  %797 = vst [vmem:[%s4188_s6 + $0x400] sm:$0xf] %v796_v36  ;;  %v800_v38 = vld [vmem:[%s4183_s0 + $0x810] sm:$0xf] }
  0xf0   : > { %799 = vst [vmem:[%s4188_s6 + $0x404] sm:$0xf] %v798_v37  ;;  %v802_v39 = vld [vmem:[%s4183_s0 + $0x818] sm:$0xf]  ;;  %v804_v40 = vld [vmem:[%s4183_s0 + $0x820] sm:$0xf] }
  0xf1   : > { %801 = vst [vmem:[%s4188_s6 + $0x408] sm:$0xf] %v800_v38  ;;  %803 = vst [vmem:[%s4188_s6 + $0x40c] sm:$0xf] %v802_v39  ;;  %v806_v41 = vld [vmem:[%s4183_s0 + $0x828] sm:$0xf] }
  0xf2   : > { %805 = vst [vmem:[%s4188_s6 + $0x410] sm:$0xf] %v804_v40  ;;  %v808_v42 = vld [vmem:[%s4183_s0 + $0x830] sm:$0xf]  ;;  %v810_v43 = vld [vmem:[%s4183_s0 + $0x838] sm:$0xf] }
  0xf3   : > { %807 = vst [vmem:[%s4188_s6 + $0x414] sm:$0xf] %v806_v41  ;;  %809 = vst [vmem:[%s4188_s6 + $0x418] sm:$0xf] %v808_v42  ;;  %v812_v44 = vld [vmem:[%s4183_s0 + $0x840] sm:$0xf] }
  0xf4   : > { %811 = vst [vmem:[%s4188_s6 + $0x41c] sm:$0xf] %v810_v43  ;;  %v814_v45 = vld [vmem:[%s4183_s0 + $0x848] sm:$0xf]  ;;  %v816_v46 = vld [vmem:[%s4183_s0 + $0x850] sm:$0xf] }
  0xf5   : > { %813 = vst [vmem:[%s4188_s6 + $0x420] sm:$0xf] %v812_v44  ;;  %815 = vst [vmem:[%s4188_s6 + $0x424] sm:$0xf] %v814_v45  ;;  %v818_v47 = vld [vmem:[%s4183_s0 + $0x858] sm:$0xf] }
  0xf6   : > { %817 = vst [vmem:[%s4188_s6 + $0x428] sm:$0xf] %v816_v46  ;;  %v820_v48 = vld [vmem:[%s4183_s0 + $0x860] sm:$0xf]  ;;  %v822_v49 = vld [vmem:[%s4183_s0 + $0x868] sm:$0xf] }
  0xf7   : > { %819 = vst [vmem:[%s4188_s6 + $0x42c] sm:$0xf] %v818_v47  ;;  %821 = vst [vmem:[%s4188_s6 + $0x430] sm:$0xf] %v820_v48  ;;  %v824_v50 = vld [vmem:[%s4183_s0 + $0x870] sm:$0xf] }
  0xf8   : > { %823 = vst [vmem:[%s4188_s6 + $0x434] sm:$0xf] %v822_v49  ;;  %v826_v51 = vld [vmem:[%s4183_s0 + $0x878] sm:$0xf]  ;;  %v828_v52 = vld [vmem:[%s4183_s0 + $0x880] sm:$0xf] }
  0xf9   : > { %825 = vst [vmem:[%s4188_s6 + $0x438] sm:$0xf] %v824_v50  ;;  %827 = vst [vmem:[%s4188_s6 + $0x43c] sm:$0xf] %v826_v51  ;;  %v830_v53 = vld [vmem:[%s4183_s0 + $0x888] sm:$0xf] }
  0xfa   : > { %829 = vst [vmem:[%s4188_s6 + $0x440] sm:$0xf] %v828_v52  ;;  %v832_v54 = vld [vmem:[%s4183_s0 + $0x890] sm:$0xf]  ;;  %v834_v55 = vld [vmem:[%s4183_s0 + $0x898] sm:$0xf] }
  0xfb   : > { %831 = vst [vmem:[%s4188_s6 + $0x444] sm:$0xf] %v830_v53  ;;  %833 = vst [vmem:[%s4188_s6 + $0x448] sm:$0xf] %v832_v54  ;;  %v836_v56 = vld [vmem:[%s4183_s0 + $0x8a0] sm:$0xf] }
  0xfc   : > { %835 = vst [vmem:[%s4188_s6 + $0x44c] sm:$0xf] %v834_v55  ;;  %v838_v57 = vld [vmem:[%s4183_s0 + $0x8a8] sm:$0xf]  ;;  %v840_v58 = vld [vmem:[%s4183_s0 + $0x8b0] sm:$0xf] }
  0xfd   : > { %837 = vst [vmem:[%s4188_s6 + $0x450] sm:$0xf] %v836_v56  ;;  %839 = vst [vmem:[%s4188_s6 + $0x454] sm:$0xf] %v838_v57  ;;  %v842_v59 = vld [vmem:[%s4183_s0 + $0x8b8] sm:$0xf] }
  0xfe   : > { %841 = vst [vmem:[%s4188_s6 + $0x458] sm:$0xf] %v840_v58  ;;  %v844_v60 = vld [vmem:[%s4183_s0 + $0x8c0] sm:$0xf]  ;;  %v846_v61 = vld [vmem:[%s4183_s0 + $0x8c8] sm:$0xf] }
  0xff   : > { %843 = vst [vmem:[%s4188_s6 + $0x45c] sm:$0xf] %v842_v59  ;;  %845 = vst [vmem:[%s4188_s6 + $0x460] sm:$0xf] %v844_v60  ;;  %v848_v62 = vld [vmem:[%s4183_s0 + $0x8d0] sm:$0xf] }
 0x100   : > { %847 = vst [vmem:[%s4188_s6 + $0x464] sm:$0xf] %v846_v61  ;;  %v850_v63 = vld [vmem:[%s4183_s0 + $0x8d8] sm:$0xf]  ;;  %v852_v0 = vld [vmem:[%s4183_s0 + $0x8e0] sm:$0xf] }
 0x101   : > { %849 = vst [vmem:[%s4188_s6 + $0x468] sm:$0xf] %v848_v62  ;;  %851 = vst [vmem:[%s4188_s6 + $0x46c] sm:$0xf] %v850_v63  ;;  %v854_v1 = vld [vmem:[%s4183_s0 + $0x8e8] sm:$0xf] }
 0x102   : > { %853 = vst [vmem:[%s4188_s6 + $0x470] sm:$0xf] %v852_v0  ;;  %v856_v2 = vld [vmem:[%s4183_s0 + $0x8f0] sm:$0xf]  ;;  %v858_v3 = vld [vmem:[%s4183_s0 + $0x8f8] sm:$0xf] }
 0x103   : > { %855 = vst [vmem:[%s4188_s6 + $0x474] sm:$0xf] %v854_v1  ;;  %857 = vst [vmem:[%s4188_s6 + $0x478] sm:$0xf] %v856_v2 }
 0x104   : > { %859 = vst [vmem:[%s4188_s6 + $0x47c] sm:$0xf] %v858_v3 }
 0x105 PF: > { %p3278_p0 = scmp.ge.s32.totalorder %s3970_s22, 1  ;;  %p1463_p1 = scmp.lt.s32.totalorder %s3970_s22, 9 }
 0x107   : > { %p1464_p2 = pnand %p3278_p0, %p1463_p1 }
 0x108   : > { %s1470_s5 = sand.u32 (!%p1464_p2), 1, %s3946_s16   ;;  %s1477_s23 = sand.u32 (!%p1464_p2), 1, %s3938_s14  }
 0x109   : > { %1467 = sbr.rel (%p1464_p2) target bundleno = 681 (0x2a9), region = 88  ;;  %s1503_s0 = sand.u32 (!%p1464_p2), 1, %s3930_s12  }
 0x10a   : > { %s3649_s28 = smul.u32 (!%p1464_p2), 288, %s1470_s5  ;;  %s3279_s11 = sshll.u32 (!%p1464_p2), %s1503_s0, 4 }
 0x10b   : > { %s3650_s7 = smul.u32 (!%p1464_p2), 1152, %s1477_s23  ;;  %p1509_p3 = scmp.lt.s32.totalorder (!%p1464_p2), %s3958_s19, 1 }
 0x10c   : > { %s4776_s6 = scalar_lea.vmem (!%p1464_p2), [#allocation3], %s3649_s28  ;;  %s4780_s25 = scalar_lea.vmem (!%p1464_p2), [#allocation5], %s3279_s11 }
 0x10d   : > { %s4778_s1 = scalar_lea.vmem (!%p1464_p2), [#allocation4], %s3650_s7  ;;  %p3280_p4 = scmp.ne.s32.totalorder (!%p1464_p2), %s3954_s18, 0 }
 0x110   : > { %s4770_s26 = scalar_select %p1509_p3, %s3958_s19, 1 }
 0x111   : > { %1517 = sbr.rel (%p3280_p4) target bundleno = 280 (0x118), region = 100  ;;  %v3972_v4 = vmov (!%p3280_p4), 0.0  }
 0x112   : > { %s1511_s4 = scalar_lea.vmem %s5014_s2, %s4770_s26  ;;  %1518 = vst [vmem:[#allocation2] sm:$0xff] (!%p3280_p4), %v3972_v4  ;;  %1519 = vst [vmem:[#allocation2 + $0x8] sm:$0xff] (!%p3280_p4), %v3972_v4 }
 0x118 PF: > { %v3740_v5 = vld [vmem:[%s4778_s1 + $0x40] sm:$0xff]   ;;  %v3744_v9 = vld [vmem:[%s4778_s1 + $0x48] sm:$0xff]   ;;  %v3748_v13 = vld [vmem:[%s4778_s1 + $0x50] sm:$0xff]   ;;  %p3425_p5 = scmp.ne.s32.totalorder %s3954_s18, 3 }
 0x119   : > { %v3741_v6 = vld [vmem:[%s4778_s1 + $0xc0] sm:$0xff]   ;;  %3433 = vmatprep.subr.bf16.mxu0 %v3740_v5  ;;  %v3745_v10 = vld [vmem:[%s4778_s1 + $0xc8] sm:$0xff]   ;;  %v3749_v14 = vld [vmem:[%s4778_s1 + $0xd0] sm:$0xff]  }
 0x11a   : > { %v3742_v7 = vld [vmem:[%s4778_s1] sm:$0xff]   ;;  %3455 = vmatprep.subr.bf16.mxu1 %v3741_v6  ;;  %v3746_v11 = vld [vmem:[%s4778_s1 + $0x8] sm:$0xff]   ;;  %v3750_v15 = vld [vmem:[%s4778_s1 + $0x10] sm:$0xff]  }
 0x11b   : > { %v3743_v8 = vld [vmem:[%s4778_s1 + $0x80] sm:$0xff]   ;;  %3434 = vmatpush3.bf16.msra.mxu0 %v3742_v7  ;;  %v3747_v12 = vld [vmem:[%s4778_s1 + $0x88] sm:$0xff]   ;;  %v3751_v16 = vld [vmem:[%s4778_s1 + $0x90] sm:$0xff]  }
 0x11c   : > { %3456 = vmatpush3.bf16.msra.mxu1 %v3743_v8  ;;  %3435 = vmatprep.subr.bf16.mxu0 %v3744_v9  ;;  %v3752_v17 = vld [vmem:[%s4778_s1 + $0x58] sm:$0xff]   ;;  %v3756_v21 = vld [vmem:[%s4778_s1 + $0x60] sm:$0xff]   ;;  %v3760_v25 = vld [vmem:[%s4778_s1 + $0x68] sm:$0xff]  }
 0x11d   : > { %3457 = vmatprep.subr.bf16.mxu1 %v3745_v10  ;;  %v3753_v18 = vld [vmem:[%s4778_s1 + $0xd8] sm:$0xff]   ;;  %v3757_v22 = vld [vmem:[%s4778_s1 + $0xe0] sm:$0xff]   ;;  %v3761_v26 = vld [vmem:[%s4778_s1 + $0xe8] sm:$0xff]  }
 0x11e   : > { %v3754_v19 = vld [vmem:[%s4778_s1 + $0x18] sm:$0xff]   ;;  %v3758_v23 = vld [vmem:[%s4778_s1 + $0x20] sm:$0xff]   ;;  %v3762_v27 = vld [vmem:[%s4778_s1 + $0x28] sm:$0xff]  }
 0x11f   : > { %3436 = vmatpush3.bf16.msra.mxu0 %v3746_v11  ;;  %v3755_v20 = vld [vmem:[%s4778_s1 + $0x98] sm:$0xff]   ;;  %v3759_v24 = vld [vmem:[%s4778_s1 + $0xa0] sm:$0xff]   ;;  %v3763_v28 = vld [vmem:[%s4778_s1 + $0xa8] sm:$0xff]  }
 0x120   : > { %3458 = vmatpush3.bf16.msra.mxu1 %v3747_v12  ;;  %3437 = vmatprep.subr.bf16.mxu0 %v3748_v13  ;;  %v3764_v29 = vld [vmem:[%s4778_s1 + $0x70] sm:$0xff]   ;;  %v3768_v33 = vld [vmem:[%s4778_s1 + $0x78] sm:$0xff]   ;;  %v1523_v37 = vld [vmem:[%s4776_s6 + $0x8] sm:$0xff] }
 0x121   : > { %3459 = vmatprep.subr.bf16.mxu1 %v3749_v14  ;;  %v3765_v30 = vld [vmem:[%s4778_s1 + $0xf0] sm:$0xff]   ;;  %v3769_v34 = vld [vmem:[%s4778_s1 + $0xf8] sm:$0xff]   ;;  %v1522_v39 = vld [vmem:[%s4776_s6] sm:$0xff]  ;;  %2742 = vmatprep.mubr.f32.mxu0 %v1523_v37 }
 0x122   : > { %v3766_v31 = vld [vmem:[%s4778_s1 + $0x30] sm:$0xff]   ;;  %v3770_v35 = vld [vmem:[%s4778_s1 + $0x38] sm:$0xff]   ;;  %v3772_v41 = vld [vmem:[%s4778_s1 + $0x140] sm:$0xff]  }
 0x123   : > { %3438 = vmatpush3.bf16.msra.mxu0 %v3750_v15  ;;  %v3767_v32 = vld [vmem:[%s4778_s1 + $0xb0] sm:$0xff]   ;;  %v3771_v36 = vld [vmem:[%s4778_s1 + $0xb8] sm:$0xff]   ;;  %v3773_v42 = vld [vmem:[%s4778_s1 + $0x1c0] sm:$0xff]  }
 0x124   : > { %3460 = vmatpush3.bf16.msra.mxu1 %v3751_v16  ;;  %3439 = vmatprep.subr.bf16.mxu0 %v3752_v17  ;;  %v1525_v38 = vld [vmem:[%s4776_s6 + $0x18] sm:$0xff]  ;;  %v1524_v40 = vld [vmem:[%s4776_s6 + $0x10] sm:$0xff]  ;;  %v3774_v43 = vld [vmem:[%s4778_s1 + $0x100] sm:$0xff]  }
 0x125   : > { %3461 = vmatprep.subr.bf16.mxu1 %v3753_v18  ;;  %2785 = vmatprep.mubr.f32.mxu1 %v1525_v38  ;;  %v3775_v44 = vld [vmem:[%s4778_s1 + $0x180] sm:$0xff]   ;;  %v3776_v45 = vld [vmem:[%s4778_s1 + $0x148] sm:$0xff]   ;;  %v3780_v49 = vld [vmem:[%s4778_s1 + $0x150] sm:$0xff]  }
 0x126   : > { %v3777_v46 = vld [vmem:[%s4778_s1 + $0x1c8] sm:$0xff]   ;;  %v3781_v50 = vld [vmem:[%s4778_s1 + $0x1d0] sm:$0xff]   ;;  %v3784_v53 = vld [vmem:[%s4778_s1 + $0x158] sm:$0xff]  }
 0x127   : > { %3440 = vmatpush3.bf16.msra.mxu0 %v3754_v19  ;;  %v3778_v47 = vld [vmem:[%s4778_s1 + $0x108] sm:$0xff]   ;;  %v3782_v51 = vld [vmem:[%s4778_s1 + $0x110] sm:$0xff]   ;;  %v3785_v54 = vld [vmem:[%s4778_s1 + $0x1d8] sm:$0xff]  }
 0x128   : > { %3462 = vmatpush3.bf16.msra.mxu1 %v3755_v20  ;;  %3441 = vmatprep.subr.bf16.mxu0 %v3756_v21  ;;  %v3779_v48 = vld [vmem:[%s4778_s1 + $0x188] sm:$0xff]   ;;  %v3783_v52 = vld [vmem:[%s4778_s1 + $0x190] sm:$0xff]   ;;  %v3786_v55 = vld [vmem:[%s4778_s1 + $0x118] sm:$0xff]  }
 0x129   : > { %3463 = vmatprep.subr.bf16.mxu1 %v3757_v22  ;;  %v3787_v56 = vld [vmem:[%s4778_s1 + $0x198] sm:$0xff]   ;;  %v3788_v57 = vld [vmem:[%s4778_s1 + $0x160] sm:$0xff]   ;;  %v3792_v61 = vld [vmem:[%s4778_s1 + $0x168] sm:$0xff]  }
 0x12a   : > { %v3789_v58 = vld [vmem:[%s4778_s1 + $0x1e0] sm:$0xff]   ;;  %v3793_v62 = vld [vmem:[%s4778_s1 + $0x1e8] sm:$0xff]   ;;  %v3796_v1 = vld [vmem:[%s4778_s1 + $0x170] sm:$0xff]  }
 0x12b   : > { %3442 = vmatpush3.bf16.msra.mxu0 %v3758_v23  ;;  %v3790_v59 = vld [vmem:[%s4778_s1 + $0x120] sm:$0xff]   ;;  %v3794_v63 = vld [vmem:[%s4778_s1 + $0x128] sm:$0xff]   ;;  %v3797_v2 = vld [vmem:[%s4778_s1 + $0x1f0] sm:$0xff]  }
 0x12c   : > { %3464 = vmatpush3.bf16.msra.mxu1 %v3759_v24  ;;  %3443 = vmatprep.subr.bf16.mxu0 %v3760_v25  ;;  %v3791_v60 = vld [vmem:[%s4778_s1 + $0x1a0] sm:$0xff]   ;;  %v3795_v0 = vld [vmem:[%s4778_s1 + $0x1a8] sm:$0xff]   ;;  %v3798_v3 = vld [vmem:[%s4778_s1 + $0x130] sm:$0xff]  }
 0x12d   : > { %3465 = vmatprep.subr.bf16.mxu1 %v3761_v26  ;;  %v3799_v4 = vld [vmem:[%s4778_s1 + $0x1b0] sm:$0xff]   ;;  %v1541_v5 = vld [vmem:[%s4776_s6 + $0x98] sm:$0xff]  ;;  %v1543_v6 = vld [vmem:[%s4776_s6 + $0xa8] sm:$0xff] }
 0x12e   : > { %v1540_v7 = vld [vmem:[%s4776_s6 + $0x90] sm:$0xff]  ;;  %v1542_v8 = vld [vmem:[%s4776_s6 + $0xa0] sm:$0xff]  ;;  %v3800_v9 = vld [vmem:[%s4778_s1 + $0x178] sm:$0xff]  }
 0x12f   : > { %3444 = vmatpush3.bf16.msra.mxu0 %v3762_v27  ;;  %v3801_v10 = vld [vmem:[%s4778_s1 + $0x1f8] sm:$0xff]   ;;  %v1527_v13 = vld [vmem:[%s4776_s6 + $0x28] sm:$0xff]  ;;  %v1526_v15 = vld [vmem:[%s4776_s6 + $0x20] sm:$0xff] }
 0x130   : > { %3466 = vmatpush3.bf16.msra.mxu1 %v3763_v28  ;;  %3445 = vmatprep.subr.bf16.mxu0 %v3764_v29  ;;  %v3802_v11 = vld [vmem:[%s4778_s1 + $0x138] sm:$0xff]   ;;  %v1528_v16 = vld [vmem:[%s4776_s6 + $0x30] sm:$0xff]  ;;  %v3804_v17 = vld [vmem:[%s4778_s1 + $0x240] sm:$0xff]  }
 0x131   : > { %3467 = vmatprep.subr.bf16.mxu1 %v3765_v30  ;;  %v3803_v12 = vld [vmem:[%s4778_s1 + $0x1b8] sm:$0xff]   ;;  %v3805_v18 = vld [vmem:[%s4778_s1 + $0x2c0] sm:$0xff]   ;;  %v1544_v22 = vld [vmem:[%s4776_s6 + $0xb0] sm:$0xff] }
 0x132   : > { %v1529_v14 = vld [vmem:[%s4776_s6 + $0x38] sm:$0xff]  ;;  %v3806_v19 = vld [vmem:[%s4778_s1 + $0x200] sm:$0xff]   ;;  %v3808_v23 = vld [vmem:[%s4778_s1 + $0x248] sm:$0xff]  }
 0x133   : > { %3446 = vmatpush3.bf16.msra.mxu0 %v3766_v31  ;;  %v3807_v20 = vld [vmem:[%s4778_s1 + $0x280] sm:$0xff]   ;;  %v1545_v21 = vld [vmem:[%s4776_s6 + $0xb8] sm:$0xff]  ;;  %v3809_v24 = vld [vmem:[%s4778_s1 + $0x2c8] sm:$0xff]  }
 0x134   : > { %3468 = vmatpush3.bf16.msra.mxu1 %v3767_v32  ;;  %3447 = vmatprep.subr.bf16.mxu0 %v3768_v33  ;;  %v1547_v25 = vld [vmem:[%s4776_s6 + $0xc8] sm:$0xff]  ;;  %v1546_v28 = vld [vmem:[%s4776_s6 + $0xc0] sm:$0xff]  ;;  %v3812_v29 = vld [vmem:[%s4778_s1 + $0x250] sm:$0xff]  }
 0x135   : > { %3469 = vmatprep.subr.bf16.mxu1 %v3769_v34  ;;  %v3810_v26 = vld [vmem:[%s4778_s1 + $0x208] sm:$0xff]   ;;  %v3813_v30 = vld [vmem:[%s4778_s1 + $0x2d0] sm:$0xff]   ;;  %v3816_v33 = vld [vmem:[%s4778_s1 + $0x258] sm:$0xff]  }
 0x136   : > { %v3811_v27 = vld [vmem:[%s4778_s1 + $0x288] sm:$0xff]   ;;  %v3814_v31 = vld [vmem:[%s4778_s1 + $0x210] sm:$0xff]   ;;  %v3817_v34 = vld [vmem:[%s4778_s1 + $0x2d8] sm:$0xff]  }
 0x137   : > { %3448 = vmatpush3.bf16.msra.mxu0 %v3770_v35  ;;  %v3815_v32 = vld [vmem:[%s4778_s1 + $0x290] sm:$0xff]   ;;  %v3818_v35 = vld [vmem:[%s4778_s1 + $0x218] sm:$0xff]   ;;  %v3820_v37 = vld [vmem:[%s4778_s1 + $0x260] sm:$0xff]  }
 0x138   : > { %3470 = vmatpush3.bf16.msra.mxu1 %v3771_v36  ;;  %3477 = vmatprep.subr.bf16.mxu0 %v3772_v41  ;;  %v3819_v36 = vld [vmem:[%s4778_s1 + $0x298] sm:$0xff]   ;;  %v3821_v38 = vld [vmem:[%s4778_s1 + $0x2e0] sm:$0xff]   ;;  %v3824_v41 = vld [vmem:[%s4778_s1 + $0x268] sm:$0xff]  }
 0x139   : > { %3499 = vmatprep.subr.bf16.mxu1 %v3773_v42  ;;  %v3825_v42 = vld [vmem:[%s4778_s1 + $0x2e8] sm:$0xff]  }
 0x13a   : > { %2743 = vmatmul.mubr.f32.vlgmr.msra.gmra.mrb[0].mxu0 %v1522_v39  ;;  %v3822_v39 = vld [vmem:[%s4778_s1 + $0x220] sm:$0xff]  }
 0x13b   : > { %2786 = vmatmul.mubr.f32.vlgmr.msra.gmra.mrb[0].mxu1 %v1524_v40  ;;  %3478 = vmatpush3.bf16.msra.mxu0 %v3774_v43  ;;  %v3823_v40 = vld [vmem:[%s4778_s1 + $0x2a0] sm:$0xff]   ;;  %v3826_v43 = vld [vmem:[%s4778_s1 + $0x228] sm:$0xff]  }
 0x13c   : > { %3500 = vmatpush3.bf16.msra.mxu1 %v3775_v44  ;;  %3479 = vmatprep.subr.bf16.mxu0 %v3776_v45  ;;  %v3827_v44 = vld [vmem:[%s4778_s1 + $0x2a8] sm:$0xff]   ;;  %v3828_v45 = vld [vmem:[%s4778_s1 + $0x270] sm:$0xff]  }
 0x13d   : > { %3501 = vmatprep.subr.bf16.mxu1 %v3777_v46  ;;  %2747 = vmatprep.mubr.f32.mxu0 %v1541_v5  ;;  %v3829_v46 = vld [vmem:[%s4778_s1 + $0x2f0] sm:$0xff]  }
 0x13e   : > { %2790 = vmatprep.mubr.f32.mxu1 %v1543_v6  ;;  %2748 = vmatmul.mubr.f32.gmra.mrb[2].mxu0 %v1540_v7  ;;  %v3844_v5 = vld [vmem:[%s4778_s1 + $0x350] sm:$0xff]  }
 0x13f   : > { %3480 = vmatpush3.bf16.msra.mxu0 %v3778_v47  ;;  %2791 = vmatmul.mubr.f32.gmra.mrb[2].mxu1 %v1542_v8  ;;  %v3830_v47 = vld [vmem:[%s4778_s1 + $0x230] sm:$0xff]  }
 0x140   : > { %3502 = vmatpush3.bf16.msra.mxu1 %v3779_v48  ;;  %3481 = vmatprep.subr.bf16.mxu0 %v3780_v49  ;;  %v3831_v48 = vld [vmem:[%s4778_s1 + $0x2b0] sm:$0xff]   ;;  %v3832_v49 = vld [vmem:[%s4778_s1 + $0x278] sm:$0xff]  }
 0x141   : > { %3503 = vmatprep.subr.bf16.mxu1 %v3781_v50  ;;  %2828 = vmatprep.mubr.f32.mxu0 %v1527_v13  ;;  %v3833_v50 = vld [vmem:[%s4778_s1 + $0x2f8] sm:$0xff]   ;;  %v3845_v6 = vld [vmem:[%s4778_s1 + $0x3d0] sm:$0xff]   ;;  %v3852_v13 = vld [vmem:[%s4778_s1 + $0x360] sm:$0xff]  }
 0x142   : > { %2871 = vmatprep.mubr.f32.mxu1 %v1529_v14  ;;  %v3846_v7 = vld [vmem:[%s4778_s1 + $0x310] sm:$0xff]   ;;  %v3853_v14 = vld [vmem:[%s4778_s1 + $0x3e0] sm:$0xff]  }
 0x143   : > { %3482 = vmatpush3.bf16.msra.mxu0 %v3782_v51  ;;  %v3834_v51 = vld [vmem:[%s4778_s1 + $0x238] sm:$0xff]   ;;  %v3847_v8 = vld [vmem:[%s4778_s1 + $0x390] sm:$0xff]  }
 0x144   : > { %3504 = vmatpush3.bf16.msra.mxu1 %v3783_v52  ;;  %3483 = vmatprep.subr.bf16.mxu0 %v3784_v53  ;;  %v3835_v52 = vld [vmem:[%s4778_s1 + $0x2b8] sm:$0xff]   ;;  %v1531_v53 = vld [vmem:[%s4776_s6 + $0x48] sm:$0xff] }
 0x145   : > { %3505 = vmatprep.subr.bf16.mxu1 %v3785_v54  ;;  %v1533_v54 = vld [vmem:[%s4776_s6 + $0x58] sm:$0xff] }
 0x147   : > { %3484 = vmatpush3.bf16.msra.mxu0 %v3786_v55  ;;  %v1530_v55 = vld [vmem:[%s4776_s6 + $0x40] sm:$0xff] }
 0x148   : > { %3506 = vmatpush3.bf16.msra.mxu1 %v3787_v56  ;;  %3485 = vmatprep.subr.bf16.mxu0 %v3788_v57  ;;  %v1532_v56 = vld [vmem:[%s4776_s6 + $0x50] sm:$0xff]  ;;  %v3836_v57 = vld [vmem:[%s4778_s1 + $0x340] sm:$0xff]  }
 0x149   : > { %3507 = vmatprep.subr.bf16.mxu1 %v3789_v58  ;;  %v3837_v58 = vld [vmem:[%s4778_s1 + $0x3c0] sm:$0xff]  }
 0x14b   : > { %3486 = vmatpush3.bf16.msra.mxu0 %v3790_v59  ;;  %v3838_v59 = vld [vmem:[%s4778_s1 + $0x300] sm:$0xff]  }
 0x14c   : > { %3508 = vmatpush3.bf16.msra.mxu1 %v3791_v60  ;;  %3487 = vmatprep.subr.bf16.mxu0 %v3792_v61  ;;  %v3839_v60 = vld [vmem:[%s4778_s1 + $0x380] sm:$0xff]   ;;  %v1549_v61 = vld [vmem:[%s4776_s6 + $0xd8] sm:$0xff] }
 0x14d   : > { %3509 = vmatprep.subr.bf16.mxu1 %v3793_v62  ;;  %v1548_v62 = vld [vmem:[%s4776_s6 + $0xd0] sm:$0xff] }
 0x14f   : > { %3488 = vmatpush3.bf16.msra.mxu0 %v3794_v63  ;;  %v3840_v63 = vld [vmem:[%s4778_s1 + $0x348] sm:$0xff]  }
 0x150   : > { %3510 = vmatpush3.bf16.msra.mxu1 %v3795_v0  ;;  %3489 = vmatprep.subr.bf16.mxu0 %v3796_v1  ;;  %v3841_v0 = vld [vmem:[%s4778_s1 + $0x3c8] sm:$0xff]  }
 0x151   : > { %3511 = vmatprep.subr.bf16.mxu1 %v3797_v2  ;;  %v1551_v1 = vld [vmem:[%s4776_s6 + $0xe8] sm:$0xff] }
 0x152   : > { %v3842_v2 = vld [vmem:[%s4778_s1 + $0x308] sm:$0xff]  }
 0x153   : > { %3490 = vmatpush3.bf16.msra.mxu0 %v3798_v3  ;;  %v3843_v3 = vld [vmem:[%s4778_s1 + $0x388] sm:$0xff]  }
 0x154   : > { %3512 = vmatpush3.bf16.msra.mxu1 %v3799_v4  ;;  %3491 = vmatprep.subr.bf16.mxu0 %v3800_v9  ;;  %v1550_v4 = vld [vmem:[%s4776_s6 + $0xe0] sm:$0xff]  ;;  %v3848_v9 = vld [vmem:[%s4778_s1 + $0x358] sm:$0xff]  }
 0x155   : > { %3513 = vmatprep.subr.bf16.mxu1 %v3801_v10  ;;  %v3849_v10 = vld [vmem:[%s4778_s1 + $0x3d8] sm:$0xff]  }
 0x157   : > { %3492 = vmatpush3.bf16.msra.mxu0 %v3802_v11  ;;  %v3850_v11 = vld [vmem:[%s4778_s1 + $0x318] sm:$0xff]  }
 0x158   : > { %3514 = vmatpush3.bf16.msra.mxu1 %v3803_v12  ;;  %3521 = vmatprep.subr.bf16.mxu0 %v3804_v17  ;;  %v3851_v12 = vld [vmem:[%s4778_s1 + $0x398] sm:$0xff]   ;;  %v3856_v17 = vld [vmem:[%s4778_s1 + $0x368] sm:$0xff]  }
 0x159   : > { %3543 = vmatprep.subr.bf16.mxu1 %v3805_v18  ;;  %v3857_v18 = vld [vmem:[%s4778_s1 + $0x3e8] sm:$0xff]  }
 0x15a   : > { %2829 = vmatmul.mubr.f32.vlgmr.msra.gmra.mrb[4].mxu0 %v1526_v15  ;;  %v3854_v15 = vld [vmem:[%s4778_s1 + $0x320] sm:$0xff]  }
 0x15b   : > { %2872 = vmatmul.mubr.f32.vlgmr.msra.gmra.mrb[4].mxu1 %v1528_v16  ;;  %3522 = vmatpush3.bf16.msra.mxu0 %v3806_v19  ;;  %v3855_v16 = vld [vmem:[%s4778_s1 + $0x3a0] sm:$0xff]   ;;  %v3858_v19 = vld [vmem:[%s4778_s1 + $0x328] sm:$0xff]  }
 0x15c   : > { %3544 = vmatpush3.bf16.msra.mxu1 %v3807_v20  ;;  %2833 = vmatprep.mubr.f32.mxu0 %v1545_v21  ;;  %v3859_v20 = vld [vmem:[%s4778_s1 + $0x3a8] sm:$0xff]   ;;  %v3860_v21 = vld [vmem:[%s4778_s1 + $0x370] sm:$0xff]  }
 0x15d   : > { %3523 = vmatprep.subr.bf16.mxu0 %v3808_v23  ;;  %2876 = vmatprep.mubr.f32.mxu1 %v1547_v25  ;;  %v3862_v23 = vld [vmem:[%s4778_s1 + $0x330] sm:$0xff]   ;;  %v3864_v25 = vld [vmem:[%s4778_s1 + $0x378] sm:$0xff]  }
 0x15e   : > { %2834 = vmatmul.mubr.f32.gmra.mrb[6].mxu0 %v1544_v22  ;;  %3545 = vmatprep.subr.bf16.mxu1 %v3809_v24  ;;  %v3861_v22 = vld [vmem:[%s4778_s1 + $0x3f0] sm:$0xff]  }
 0x15f   : > { %3524 = vmatpush3.bf16.msra.mxu0 %v3810_v26  ;;  %2877 = vmatmul.mubr.f32.gmra.mrb[6].mxu1 %v1546_v28  ;;  %v3863_v24 = vld [vmem:[%s4778_s1 + $0x3b0] sm:$0xff]   ;;  %v3865_v26 = vld [vmem:[%s4778_s1 + $0x3f8] sm:$0xff]  }
 0x160   : > { %3546 = vmatpush3.bf16.msra.mxu1 %v3811_v27  ;;  %3525 = vmatprep.subr.bf16.mxu0 %v3812_v29  ;;  %v3866_v27 = vld [vmem:[%s4778_s1 + $0x338] sm:$0xff]   ;;  %v1535_v29 = vld [vmem:[%s4776_s6 + $0x68] sm:$0xff] }
 0x161   : > { %3547 = vmatprep.subr.bf16.mxu1 %v3813_v30  ;;  %2914 = vmatprep.mubr.f32.mxu0 %v1531_v53  ;;  %v3867_v28 = vld [vmem:[%s4778_s1 + $0x3b8] sm:$0xff]  }
 0x162   : > { %2957 = vmatprep.mubr.f32.mxu1 %v1533_v54  ;;  %v1537_v30 = vld [vmem:[%s4776_s6 + $0x78] sm:$0xff] }
 0x163   : > { %3526 = vmatpush3.bf16.msra.mxu0 %v3814_v31  ;;  %v1534_v31 = vld [vmem:[%s4776_s6 + $0x60] sm:$0xff]  ;;  %v3882_v53 = vld [vmem:[%s4778_s1 + $0x478] sm:$0xff]  }
 0x164   : > { %3548 = vmatpush3.bf16.msra.mxu1 %v3815_v32  ;;  %3527 = vmatprep.subr.bf16.mxu0 %v3816_v33  ;;  %v1536_v32 = vld [vmem:[%s4776_s6 + $0x70] sm:$0xff]  ;;  %v3868_v33 = vld [vmem:[%s4778_s1 + $0x440] sm:$0xff]   ;;  %v3883_v54 = vld [vmem:[%s4778_s1 + $0x438] sm:$0xff]  }
 0x165   : > { %3549 = vmatprep.subr.bf16.mxu1 %v3817_v34  ;;  %v3869_v34 = vld [vmem:[%s4778_s1 + $0x400] sm:$0xff]  }
 0x167   : > { %3528 = vmatpush3.bf16.msra.mxu0 %v3818_v35  ;;  %v1553_v35 = vld [vmem:[%s4776_s6 + $0xf8] sm:$0xff] }
 0x168   : > { %3550 = vmatpush3.bf16.msra.mxu1 %v3819_v36  ;;  %3529 = vmatprep.subr.bf16.mxu0 %v3820_v37  ;;  %v1552_v36 = vld [vmem:[%s4776_s6 + $0xf0] sm:$0xff]  ;;  %v3870_v37 = vld [vmem:[%s4778_s1 + $0x448] sm:$0xff]  }
 0x169   : > { %3551 = vmatprep.subr.bf16.mxu1 %v3821_v38  ;;  %v1555_v38 = vld [vmem:[%s4776_s6 + $0x108] sm:$0xff] }
 0x16b   : > { %3530 = vmatpush3.bf16.msra.mxu0 %v3822_v39  ;;  %v3871_v39 = vld [vmem:[%s4778_s1 + $0x408] sm:$0xff]  }
 0x16c   : > { %3552 = vmatpush3.bf16.msra.mxu1 %v3823_v40  ;;  %3531 = vmatprep.subr.bf16.mxu0 %v3824_v41  ;;  %v1554_v40 = vld [vmem:[%s4776_s6 + $0x100] sm:$0xff]  ;;  %v3872_v41 = vld [vmem:[%s4778_s1 + $0x450] sm:$0xff]  }
 0x16d   : > { %3553 = vmatprep.subr.bf16.mxu1 %v3825_v42  ;;  %v3873_v42 = vld [vmem:[%s4778_s1 + $0x410] sm:$0xff]  }
 0x16f   : > { %3532 = vmatpush3.bf16.msra.mxu0 %v3826_v43  ;;  %v3874_v43 = vld [vmem:[%s4778_s1 + $0x458] sm:$0xff]  }
 0x170   : > { %3554 = vmatpush3.bf16.msra.mxu1 %v3827_v44  ;;  %3533 = vmatprep.subr.bf16.mxu0 %v3828_v45  ;;  %v3875_v44 = vld [vmem:[%s4778_s1 + $0x418] sm:$0xff]   ;;  %v3876_v45 = vld [vmem:[%s4778_s1 + $0x460] sm:$0xff]  }
 0x171   : > { %3555 = vmatprep.subr.bf16.mxu1 %v3829_v46  ;;  %v3877_v46 = vld [vmem:[%s4778_s1 + $0x420] sm:$0xff]  }
 0x173   : > { %3534 = vmatpush3.bf16.msra.mxu0 %v3830_v47  ;;  %v3878_v47 = vld [vmem:[%s4778_s1 + $0x468] sm:$0xff]  }
 0x174   : > { %3556 = vmatpush3.bf16.msra.mxu1 %v3831_v48  ;;  %3535 = vmatprep.subr.bf16.mxu0 %v3832_v49  ;;  %v1539_v48 = vld [vmem:[%s4776_s6 + $0x88] sm:$0xff]  ;;  %v1557_v49 = vld [vmem:[%s4776_s6 + $0x118] sm:$0xff] }
 0x175   : > { %3557 = vmatprep.subr.bf16.mxu1 %v3833_v50  ;;  %v3879_v50 = vld [vmem:[%s4778_s1 + $0x428] sm:$0xff]  }
 0x177   : > { %3536 = vmatpush3.bf16.msra.mxu0 %v3834_v51  ;;  %v3880_v51 = vld [vmem:[%s4778_s1 + $0x470] sm:$0xff]  }
 0x178   : > { %3558 = vmatpush3.bf16.msra.mxu1 %v3835_v52  ;;  %3565 = vmatprep.subr.bf16.mxu0 %v3836_v57  ;;  %v3881_v52 = vld [vmem:[%s4778_s1 + $0x430] sm:$0xff]  }
 0x179   : > { %3587 = vmatprep.subr.bf16.mxu1 %v3837_v58 }
 0x17a   : > { %2915 = vmatmul.mubr.f32.vlgmr.msra.gmra.mrb[8].mxu0 %v1530_v55  ;;  %v1538_v55 = vld [vmem:[%s4776_s6 + $0x80] sm:$0xff] }
 0x17b   : > { %2958 = vmatmul.mubr.f32.vlgmr.msra.gmra.mrb[8].mxu1 %v1532_v56  ;;  %3566 = vmatpush3.bf16.msra.mxu0 %v3838_v59  ;;  %v1556_v56 = vld [vmem:[%s4776_s6 + $0x110] sm:$0xff] }
 0x17c   : > { %2919 = vmatprep.mubr.f32.mxu0 %v1549_v61  ;;  %3588 = vmatpush3.bf16.msra.mxu1 %v3839_v60 }
 0x17d   : > { %3567 = vmatprep.subr.bf16.mxu0 %v3840_v63  ;;  %2962 = vmatprep.mubr.f32.mxu1 %v1551_v1 }
 0x17e   : > { %2920 = vmatmul.mubr.f32.gmra.mrb[10].mxu0 %v1548_v62  ;;  %3589 = vmatprep.subr.bf16.mxu1 %v3841_v0 }
 0x17f   : > { %3568 = vmatpush3.bf16.msra.mxu0 %v3842_v2  ;;  %2963 = vmatmul.mubr.f32.gmra.mrb[10].mxu1 %v1550_v4 }
 0x180   : > { %3590 = vmatpush3.bf16.msra.mxu1 %v3843_v3  ;;  %3569 = vmatprep.subr.bf16.mxu0 %v3844_v5 }
 0x181   : > { %3591 = vmatprep.subr.bf16.mxu1 %v3845_v6  ;;  %3000 = vmatprep.mubr.f32.mxu0 %v1535_v29 }
 0x182   : > { %3043 = vmatprep.mubr.f32.mxu1 %v1537_v30 }
 0x183   : > { %3570 = vmatpush3.bf16.msra.mxu0 %v3846_v7 }
 0x184   : > { %3592 = vmatpush3.bf16.msra.mxu1 %v3847_v8  ;;  %3571 = vmatprep.subr.bf16.mxu0 %v3848_v9 }
 0x185   : > { %3593 = vmatprep.subr.bf16.mxu1 %v3849_v10 }
 0x187   : > { %3572 = vmatpush3.bf16.msra.mxu0 %v3850_v11 }
 0x188   : > { %3594 = vmatpush3.bf16.msra.mxu1 %v3851_v12  ;;  %3573 = vmatprep.subr.bf16.mxu0 %v3852_v13 }
 0x189   : > { %3595 = vmatprep.subr.bf16.mxu1 %v3853_v14 }
 0x18b   : > { %3574 = vmatpush3.bf16.msra.mxu0 %v3854_v15 }
 0x18c   : > { %3596 = vmatpush3.bf16.msra.mxu1 %v3855_v16  ;;  %3575 = vmatprep.subr.bf16.mxu0 %v3856_v17 }
 0x18d   : > { %3597 = vmatprep.subr.bf16.mxu1 %v3857_v18 }
 0x18f   : > { %3576 = vmatpush3.bf16.msra.mxu0 %v3858_v19 }
 0x190   : > { %3598 = vmatpush3.bf16.msra.mxu1 %v3859_v20  ;;  %3577 = vmatprep.subr.bf16.mxu0 %v3860_v21 }
 0x191   : > { %3599 = vmatprep.subr.bf16.mxu1 %v3861_v22 }
 0x193   : > { %3578 = vmatpush3.bf16.msra.mxu0 %v3862_v23 }
 0x194   : > { %3600 = vmatpush3.bf16.msra.mxu1 %v3863_v24  ;;  %3579 = vmatprep.subr.bf16.mxu0 %v3864_v25 }
 0x195   : > { %3601 = vmatprep.subr.bf16.mxu1 %v3865_v26 }
 0x197   : > { %3580 = vmatpush3.bf16.msra.mxu0 %v3866_v27 }
 0x198   : > { %3602 = vmatpush3.bf16.msra.mxu1 %v3867_v28  ;;  %3609 = vmatprep.subr.bf16.mxu0 %v3868_v33 }
 0x199   : > { %3631 = vmatprep.subr.bf16.mxu1 %v3868_v33 }
 0x19a   : > { %3001 = vmatmul.mubr.f32.vlgmr.msra.gmra.mrb[12].mxu0 %v1534_v31 }
 0x19b   : > { %3044 = vmatmul.mubr.f32.vlgmr.msra.gmra.mrb[12].mxu1 %v1536_v32  ;;  %3610 = vmatpush3.bf16.msra.mxu0 %v3869_v34 }
 0x19c   : > { %3639 = vmatpush3.bf16.msra.mxu1 %v3869_v34  ;;  %3005 = vmatprep.mubr.f32.mxu0 %v1553_v35 }
 0x19d   : > { %3611 = vmatprep.subr.bf16.mxu0 %v3870_v37  ;;  %3632 = vmatprep.subr.bf16.mxu1 %v3870_v37 }
 0x19e   : > { %3006 = vmatmul.mubr.f32.gmra.mrb[14].mxu0 %v1552_v36  ;;  %3048 = vmatprep.mubr.f32.mxu1 %v1555_v38 }
 0x19f   : > { %3612 = vmatpush3.bf16.msra.mxu0 %v3871_v39  ;;  %3049 = vmatmul.mubr.f32.gmra.mrb[14].mxu1 %v1554_v40 }
 0x1a0   : > { %3640 = vmatpush3.bf16.msra.mxu1 %v3871_v39  ;;  %3613 = vmatprep.subr.bf16.mxu0 %v3872_v41 }
 0x1a1   : > { %3633 = vmatprep.subr.bf16.mxu1 %v3872_v41  ;;  %3086 = vmatprep.mubr.f32.mxu0 %v1539_v48 }
 0x1a2   : > { %3091 = vmatprep.mubr.f32.mxu1 %v1557_v49 }
 0x1a3   : > { %3614 = vmatpush3.bf16.msra.mxu0 %v3873_v42 }
 0x1a4   : > { %3641 = vmatpush3.bf16.msra.mxu1 %v3873_v42  ;;  %3615 = vmatprep.subr.bf16.mxu0 %v3874_v43 }
 0x1a5   : > { %3634 = vmatprep.subr.bf16.mxu1 %v3874_v43 }
 0x1a7   : > { %3616 = vmatpush3.bf16.msra.mxu0 %v3875_v44 }
 0x1a8   : > { %3642 = vmatpush3.bf16.msra.mxu1 %v3875_v44  ;;  %3617 = vmatprep.subr.bf16.mxu0 %v3876_v45 }
 0x1a9   : > { %3635 = vmatprep.subr.bf16.mxu1 %v3876_v45 }
 0x1ab   : > { %3618 = vmatpush3.bf16.msra.mxu0 %v3877_v46 }
 0x1ac   : > { %3643 = vmatpush3.bf16.msra.mxu1 %v3877_v46  ;;  %3619 = vmatprep.subr.bf16.mxu0 %v3878_v47 }
 0x1ad   : > { %3636 = vmatprep.subr.bf16.mxu1 %v3878_v47 }
 0x1af   : > { %3620 = vmatpush3.bf16.msra.mxu0 %v3879_v50 }
 0x1b0   : > { %3644 = vmatpush3.bf16.msra.mxu1 %v3879_v50  ;;  %3621 = vmatprep.subr.bf16.mxu0 %v3880_v51 }
 0x1b1   : > { %3637 = vmatprep.subr.bf16.mxu1 %v3880_v51 }
 0x1b3   : > { %3622 = vmatpush3.bf16.msra.mxu0 %v3881_v52 }
 0x1b4   : > { %3645 = vmatpush3.bf16.msra.mxu1 %v3881_v52  ;;  %3623 = vmatprep.subr.bf16.mxu0 %v3882_v53 }
 0x1b5   : > { %3638 = vmatprep.subr.bf16.mxu1 %v3882_v53 }
 0x1b7   : > { %3624 = vmatpush3.bf16.msra.mxu0 %v3883_v54 }
 0x1b8   : > { %3646 = vmatpush3.bf16.msra.mxu1 %v3883_v54 }
 0x1ba   : > { %3087 = vmatmul.mubr.f32.vlgmr.msra.gmra.mrb[16].mxu0 %v1538_v55 }
 0x1bb   : > { %3092 = vmatmul.mubr.f32.vlgmr.msra.gmra.mrb[16].mxu1 %v1556_v56 }
 0x20d   : > { %v3449_v57 = vpop.f32.mrb[0].mxu0 }
 0x20e   : > { %v3471_v58 = vpop.f32.mrb[0].mxu1  ;;  %v3450_v59 = vpop.f32.mrb[1].mxu0 }
 0x20f   : > { %v3451_v60 = vadd.f32 %v3450_v59, %v3449_v57  ;;  %v3472_v61 = vpop.f32.mrb[1].mxu1 }
 0x210   : > { %v3473_v62 = vadd.f32 %v3472_v61, %v3471_v58 }
 0x211   : > { %v3452_v0 = vpop.f32.mrb[2].mxu0 }
 0x212   : > { %v2788_v63 = vadd.f32 %v3473_v62, %v3451_v60  ;;  %v3474_v1 = vpop.f32.mrb[2].mxu1  ;;  %v3453_v2 = vpop.f32.mrb[3].mxu0  ;;  %v1520_v60 = vld [vmem:[#allocation2] sm:$0xff] }
 0x213   : > { %v3475_v3 = vpop.f32.mrb[3].mxu1  ;;  %v3454_v4 = vadd.f32 %v3453_v2, %v3452_v0 }
 0x214   : > { %v3476_v5 = vadd.f32 %v3475_v3, %v3474_v1 }
 0x216   : > { %v2793_v6 = vadd.f32 %v3476_v5, %v3454_v4  ;;  %v3426_v4 = vld [vmem:[%s1511_s4] ss:$0 sm:$0xff] (!%p3425_p5) }
 0x22d   : > { %v3493_v7 = vpop.f32.mrb[4].mxu0 }
 0x22e   : > { %v3515_v8 = vpop.f32.mrb[4].mxu1  ;;  %v3494_v9 = vpop.f32.mrb[5].mxu0 }
 0x22f   : > { %v3495_v10 = vadd.f32 %v3494_v9, %v3493_v7  ;;  %v3516_v11 = vpop.f32.mrb[5].mxu1 }
 0x230   : > { %v3517_v12 = vadd.f32 %v3516_v11, %v3515_v8 }
 0x231   : > { %v2831_v13 = vadd.f32 %v3495_v10, %v2788_v63  ;;  %v3496_v14 = vpop.f32.mrb[6].mxu0  ;;  %v1521_v63 = vld [vmem:[#allocation2 + $0x8] sm:$0xff] }
 0x232   : > { %v3497_v15 = vpop.f32.mrb[7].mxu0  ;;  %v3518_v19 = vpop.f32.mrb[6].mxu1 }
 0x233   : > { %v2874_v16 = vadd.f32 %v3517_v12, %v2831_v13  ;;  %v3498_v17 = vadd.f32 %v3497_v15, %v3496_v14  ;;  %v3519_v20 = vpop.f32.mrb[7].mxu1 }
 0x234   : > { %v3520_v21 = vadd.f32 %v3519_v20, %v3518_v19 }
 0x235   : > { %v2836_v18 = vadd.f32 %v3498_v17, %v2793_v6 }
 0x237   : > { %v2879_v22 = vadd.f32 %v3520_v21, %v2836_v18 }
 0x24d   : > { %v3537_v23 = vpop.f32.mrb[8].mxu0 }
 0x24e   : > { %v3559_v24 = vpop.f32.mrb[8].mxu1  ;;  %v3538_v25 = vpop.f32.mrb[9].mxu0 }
 0x24f   : > { %v3539_v26 = vadd.f32 %v3538_v25, %v3537_v23  ;;  %v3560_v27 = vpop.f32.mrb[9].mxu1 }
 0x250   : > { %v3561_v28 = vadd.f32 %v3560_v27, %v3559_v24 }
 0x251   : > { %v2917_v29 = vadd.f32 %v3539_v26, %v2874_v16  ;;  %v3540_v30 = vpop.f32.mrb[10].mxu0 }
 0x252   : > { %v3541_v31 = vpop.f32.mrb[11].mxu0  ;;  %v3562_v34 = vpop.f32.mrb[10].mxu1 }
 0x253   : > { %v2960_v32 = vadd.f32 %v3561_v28, %v2917_v29  ;;  %v3542_v33 = vadd.f32 %v3541_v31, %v3540_v30  ;;  %v3563_v36 = vpop.f32.mrb[11].mxu1 }
 0x254   : > { %v3564_v37 = vadd.f32 %v3563_v36, %v3562_v34 }
 0x255   : > { %v2922_v35 = vadd.f32 %v3542_v33, %v2879_v22 }
 0x257   : > { %v2965_v38 = vadd.f32 %v3564_v37, %v2922_v35 }
 0x26d   : > { %v3581_v39 = vpop.f32.mrb[12].mxu0 }
 0x26e   : > { %v3603_v40 = vpop.f32.mrb[12].mxu1  ;;  %v3582_v41 = vpop.f32.mrb[13].mxu0 }
 0x26f   : > { %v3583_v42 = vadd.f32 %v3582_v41, %v3581_v39  ;;  %v3604_v43 = vpop.f32.mrb[13].mxu1 }
 0x270   : > { %v3605_v44 = vadd.f32 %v3604_v43, %v3603_v40 }
 0x271   : > { %v3003_v45 = vadd.f32 %v3583_v42, %v2960_v32  ;;  %v3584_v46 = vpop.f32.mrb[14].mxu0 }
 0x272   : > { %v3585_v47 = vpop.f32.mrb[15].mxu0  ;;  %v3606_v50 = vpop.f32.mrb[14].mxu1 }
 0x273   : > { %v3046_v48 = vadd.f32 %v3605_v44, %v3003_v45  ;;  %v3586_v49 = vadd.f32 %v3585_v47, %v3584_v46  ;;  %v3607_v51 = vpop.f32.mrb[15].mxu1 }
 0x274   : > { %v3608_v53 = vadd.f32 %v3607_v51, %v3606_v50 }
 0x275   : > { %v3008_v52 = vadd.f32 %v3586_v49, %v2965_v38 }
 0x277   : > { %v3051_v54 = vadd.f32 %v3608_v53, %v3008_v52 }
 0x28d   : > { %v3625_v55 = vpop.f32.mrb[16].mxu0 }
 0x28e   : > { %v3628_v56 = vpop.f32.mrb[16].mxu1  ;;  %v3626_v57 = vpop.f32.mrb[17].mxu0 }
 0x28f   : > { %v3627_v58 = vadd.f32 %v3626_v57, %v3625_v55  ;;  %v3629_v59 = vpop.f32.mrb[17].mxu1 }
 0x290   : > { %v3630_v61 = vadd.f32 %v3629_v59, %v3628_v56  ;;  %3104 = sbr.rel (%p3425_p5) target bundleno = 673 (0x2a1), region = 104 }
 0x291   : > { %v3089_v62 = vadd.f32 %v3627_v58, %v3046_v48 }
 0x292   : > { %v3094_v0 = vadd.f32 %v3630_v61, %v3051_v54 }
 0x293   : > { %v3097_v1 = vadd.f32 %v3089_v62, %v1520_v60 }
 0x294   : > { %v3098_v2 = vadd.f32 %v3094_v0, %v1521_v63 }
 0x295   : > { %3099 = vst [vmem:[#allocation2] sm:$0xff] %v3097_v1 }
 0x296   : > { %3100 = vst [vmem:[#allocation2 + $0x8] sm:$0xff] %v3098_v2 }
 0x29c   : > { %v3105_v3 = vld [vmem:[#allocation2] sm:$0xff] }
 0x29d   : > { %v3106_v5 = vld [vmem:[#allocation2 + $0x8] sm:$0xff]  ;;  %v3114_v6 = vadd.f32 %v3426_v4, %v3105_v3 }
 0x29e   : > { %v3115_v7 = vadd.f32 %v3426_v4, %v3106_v5 }
 0x29f   : > { %3116 = vst [vmem:[%s4780_s25] sm:$0xff] %v3114_v6 }
 0x2a0   : > { %3117 = vst [vmem:[%s4780_s25 + $0x8] sm:$0xff] %v3115_v7 }
 0x2a1 PF: > { %3124 = sbr.rel (!%p4087_p12) target bundleno = 681 (0x2a9), region = 108  ;;  %s3428_s14 = sshll.u32 (%p4087_p12), %s3958_s19, 3 }
 0x2a2   : > { %s3129_s5 = scalar_lea.vmem (%p4087_p12), %s5015_s3, %s3428_s14 }
 0x2a6   : > { %v3159_v8 = vld [vmem:[%s4780_s25] sm:$0xff] (%p4087_p12) }
 0x2a7   : > { %v3161_v9 = vld [vmem:[%s4780_s25 + $0x8] sm:$0xff] (%p4087_p12)  ;;  %3160 = vst [vmem:[%s3129_s5] sm:$0xff] (%p4087_p12), %v3159_v8 }
 0x2a8   : > { %3162 = vst [vmem:[%s3129_s5 + $0x10] sm:$0xff] %v3161_v9 }
 0x2a9 PF: > { %s13_s22 = sadd.s32 1, %s3970_s22   ;;  %s5025_s25 = sld [smem:[#allocation6_spill]] }
 0x2aa   : > { %p10_p6 = scmp.ge.s32.totalorder %s13_s22, 10   ;;  %s5026_s12 = smov %s3934_s13 }
 0x2ab   : > { %s5027_s13 = smov %s4085_s9  ;;  %s5028_s14 = smov %s3942_s15 }
 0x2ac   : > { %s5029_s15 = smov %s4082_s8  ;;  %s5030_s16 = smov %s3950_s17 }
 0x2ad   : > { %s5031_s17 = smov %s4068_s30  ;;  %s5032_s18 = smov %s3962_s20 }
 0x2ae   : > { %s5033_s19 = smov %s3966_s21  ;;  %s5034_s20 = smov %s5037_s24 }
 0x2af   : > { %s5035_s21 = smov %s5025_s25  ;;  %12 = sbr.rel (!%p10_p6) target bundleno = 9 (0x9), region = 188 }

// kernel: local_motion_extractor_forward.6
= control target key start
LH: loop header
LB: loop body
LE: loop exit
PB: predicated region body
PF: predicated region fallthrough
CT: control target
= control target key end

     0   :  { %s952_s12 = smov 0   ;;  %s954_s13 = smov 0   ;;  %s1131_s0 = inlined_call_operand.vmem [shape: f32[16,256], index: 0, kind: input, shape index: {}]   ;;  %s1132_s1 = inlined_call_operand.vmem [shape: bf16[256,384], index: 1, kind: input, shape index: {}]   ;;  %s1133_s2 = inlined_call_operand.vmem [shape: f32[1,384], index: 2, kind: input, shape index: {}]   ;;  %s1134_s3 = inlined_call_operand.vmem [shape: f32[16,384], index: 3, kind: output, shape index: {}]  }
   0x1   :  { %s956_s14 = smov 0   ;;  %s958_s15 = smov 0  }
   0x2   :  { %s960_s16 = smov 0  }
   0x3 LB: > { %s28_s17 = sadd.s32 1, %s926_s15  ;;  %s767_s18 = sadd.s32 4294967295, %s930_s16   ;;  %s930_s16 = sphi %s960_s16, %s13_s16   ;;  %s926_s15 = sphi %s958_s15, %s1139_s15   ;;  %s922_s14 = sphi %s956_s14, %s1138_s14   ;;  %s918_s13 = sphi %s954_s13, %s1137_s13   ;;  %s914_s12 = sphi %s952_s12, %s1136_s12  }
   0x4   : > { %p30_p0 = scmp.ge.s32.totalorder %s28_s17, 3  ;;  %p76_p1 = scmp.ne.s32.totalorder %s918_s13, %s914_s12 }
   0x5   : > { %p77_p2 = scmp.eq.s32.totalorder %s930_s16, 0  ;;  %p134_p4 = scmp.eq.s32.totalorder %s767_s18, 2 }
   0x6   : > { %s1141_s17 = smov (%p30_p0, %s28_s17), 0  ;;  %s69_s20 = sadd.s32 1, %s918_s13 }
   0x7   : > { %p78_p3 = por %p77_p2, %p76_p1  ;;  %s65_s19 = ssub.s32 %s926_s15, %s1141_s17 }
   0x8   : > { %p67_p5 = scmp.eq.s32.totalorder %s65_s19, 0  ;;  %p987_p6 = por %p134_p4, %p76_p1 }
   0x9   : > { %p771_p7 = scmp.ge.s32.totalorder %s930_s16, 3 }
   0xa   : > { %s992_s22 = scalar_select %p67_p5, %s918_s13, %s69_s20  }
   0xb   : > { %171 = sbr.rel (%p771_p7) target bundleno = 43 (0x2b), region = 20 }
  0x12   : > { %174 = sbr.rel (!%p78_p3) target bundleno = 43 (0x2b), region = 24  ;;  %s176_s23 = sand.u32 (%p78_p3), 1, %s918_s13  }
  0x13   : > { %s773_s24 = sshll.u32 (%p78_p3), %s926_s15, 2  ;;  %s772_s25 = sshll.u32 (%p78_p3), %s176_s23, 7 }
  0x14   : > { %s1000_s28 = scalar_lea.vmem (%p78_p3), %s1132_s1, %s773_s24  ;;  %s1004_s29 = scalar_lea.vmem (%p78_p3), [#allocation3], %s772_s25 }
  0x15   : > { %v199_v0 = vld [vmem:[%s1000_s28] sm:$0xf] (%p78_p3)  ;;  %v201_v1 = vld [vmem:[%s1000_s28 + $0xc] sm:$0xf] (%p78_p3)  ;;  %v203_v2 = vld [vmem:[%s1000_s28 + $0x18] sm:$0xf] (%p78_p3) }
  0x16   : > { %200 = vst [vmem:[%s1004_s29] sm:$0xf] (%p78_p3), %v199_v0  ;;  %202 = vst [vmem:[%s1004_s29 + $0x4] sm:$0xf] (%p78_p3), %v201_v1  ;;  %v205_v3 = vld [vmem:[%s1000_s28 + $0x24] sm:$0xf] (%p78_p3) }
  0x17   : > { %v207_v4 = vld [vmem:[%s1000_s28 + $0x30] sm:$0xf] (%p78_p3)  ;;  %204 = vst [vmem:[%s1004_s29 + $0x8] sm:$0xf] (%p78_p3), %v203_v2  ;;  %206 = vst [vmem:[%s1004_s29 + $0xc] sm:$0xf] (%p78_p3), %v205_v3 }
  0x18   : > { %208 = vst [vmem:[%s1004_s29 + $0x10] sm:$0xf] (%p78_p3), %v207_v4  ;;  %v209_v5 = vld [vmem:[%s1000_s28 + $0x3c] sm:$0xf] (%p78_p3)  ;;  %v211_v6 = vld [vmem:[%s1000_s28 + $0x48] sm:$0xf] (%p78_p3) }
  0x19   : > { %v213_v7 = vld [vmem:[%s1000_s28 + $0x54] sm:$0xf]  ;;  %210 = vst [vmem:[%s1004_s29 + $0x14] sm:$0xf] %v209_v5  ;;  %212 = vst [vmem:[%s1004_s29 + $0x18] sm:$0xf] %v211_v6 }
  0x1a   : > { %214 = vst [vmem:[%s1004_s29 + $0x1c] sm:$0xf] %v213_v7  ;;  %v215_v8 = vld [vmem:[%s1000_s28 + $0x60] sm:$0xf]  ;;  %v217_v9 = vld [vmem:[%s1000_s28 + $0x6c] sm:$0xf] }
  0x1b   : > { %v219_v10 = vld [vmem:[%s1000_s28 + $0x78] sm:$0xf]  ;;  %216 = vst [vmem:[%s1004_s29 + $0x20] sm:$0xf] %v215_v8  ;;  %218 = vst [vmem:[%s1004_s29 + $0x24] sm:$0xf] %v217_v9 }
  0x1c   : > { %220 = vst [vmem:[%s1004_s29 + $0x28] sm:$0xf] %v219_v10  ;;  %v221_v11 = vld [vmem:[%s1000_s28 + $0x84] sm:$0xf]  ;;  %v223_v12 = vld [vmem:[%s1000_s28 + $0x90] sm:$0xf] }
  0x1d   : > { %v225_v13 = vld [vmem:[%s1000_s28 + $0x9c] sm:$0xf]  ;;  %222 = vst [vmem:[%s1004_s29 + $0x2c] sm:$0xf] %v221_v11  ;;  %224 = vst [vmem:[%s1004_s29 + $0x30] sm:$0xf] %v223_v12 }
  0x1e   : > { %226 = vst [vmem:[%s1004_s29 + $0x34] sm:$0xf] %v225_v13  ;;  %v227_v14 = vld [vmem:[%s1000_s28 + $0xa8] sm:$0xf]  ;;  %v229_v15 = vld [vmem:[%s1000_s28 + $0xb4] sm:$0xf] }
  0x1f   : > { %v231_v16 = vld [vmem:[%s1000_s28 + $0xc0] sm:$0xf]  ;;  %228 = vst [vmem:[%s1004_s29 + $0x38] sm:$0xf] %v227_v14  ;;  %230 = vst [vmem:[%s1004_s29 + $0x3c] sm:$0xf] %v229_v15 }
  0x20   : > { %232 = vst [vmem:[%s1004_s29 + $0x40] sm:$0xf] %v231_v16  ;;  %v233_v17 = vld [vmem:[%s1000_s28 + $0xcc] sm:$0xf]  ;;  %v235_v18 = vld [vmem:[%s1000_s28 + $0xd8] sm:$0xf] }
  0x21   : > { %v237_v19 = vld [vmem:[%s1000_s28 + $0xe4] sm:$0xf]  ;;  %234 = vst [vmem:[%s1004_s29 + $0x44] sm:$0xf] %v233_v17  ;;  %236 = vst [vmem:[%s1004_s29 + $0x48] sm:$0xf] %v235_v18 }
  0x22   : > { %238 = vst [vmem:[%s1004_s29 + $0x4c] sm:$0xf] %v237_v19  ;;  %v239_v20 = vld [vmem:[%s1000_s28 + $0xf0] sm:$0xf]  ;;  %v241_v21 = vld [vmem:[%s1000_s28 + $0xfc] sm:$0xf] }
  0x23   : > { %v243_v22 = vld [vmem:[%s1000_s28 + $0x108] sm:$0xf]  ;;  %240 = vst [vmem:[%s1004_s29 + $0x50] sm:$0xf] %v239_v20  ;;  %242 = vst [vmem:[%s1004_s29 + $0x54] sm:$0xf] %v241_v21 }
  0x24   : > { %244 = vst [vmem:[%s1004_s29 + $0x58] sm:$0xf] %v243_v22  ;;  %v245_v23 = vld [vmem:[%s1000_s28 + $0x114] sm:$0xf]  ;;  %v247_v24 = vld [vmem:[%s1000_s28 + $0x120] sm:$0xf] }
  0x25   : > { %v249_v25 = vld [vmem:[%s1000_s28 + $0x12c] sm:$0xf]  ;;  %246 = vst [vmem:[%s1004_s29 + $0x5c] sm:$0xf] %v245_v23  ;;  %248 = vst [vmem:[%s1004_s29 + $0x60] sm:$0xf] %v247_v24 }
  0x26   : > { %250 = vst [vmem:[%s1004_s29 + $0x64] sm:$0xf] %v249_v25  ;;  %v251_v26 = vld [vmem:[%s1000_s28 + $0x138] sm:$0xf]  ;;  %v253_v27 = vld [vmem:[%s1000_s28 + $0x144] sm:$0xf] }
  0x27   : > { %v255_v28 = vld [vmem:[%s1000_s28 + $0x150] sm:$0xf]  ;;  %252 = vst [vmem:[%s1004_s29 + $0x68] sm:$0xf] %v251_v26  ;;  %254 = vst [vmem:[%s1004_s29 + $0x6c] sm:$0xf] %v253_v27 }
  0x28   : > { %256 = vst [vmem:[%s1004_s29 + $0x70] sm:$0xf] %v255_v28  ;;  %v257_v29 = vld [vmem:[%s1000_s28 + $0x15c] sm:$0xf]  ;;  %v259_v30 = vld [vmem:[%s1000_s28 + $0x168] sm:$0xf] }
  0x29   : > { %v261_v31 = vld [vmem:[%s1000_s28 + $0x174] sm:$0xf]  ;;  %258 = vst [vmem:[%s1004_s29 + $0x74] sm:$0xf] %v257_v29  ;;  %260 = vst [vmem:[%s1004_s29 + $0x78] sm:$0xf] %v259_v30 }
  0x2a   : > { %262 = vst [vmem:[%s1004_s29 + $0x7c] sm:$0xf] %v261_v31 }
  0x2b PF: > { %p774_p8 = scmp.ge.s32.totalorder %s930_s16, 1  ;;  %p354_p9 = scmp.lt.s32.totalorder %s930_s16, 4 }
  0x2d   : > { %p355_p10 = pnand %p774_p8, %p354_p9 }
  0x2e   : > { %s361_s30 = sand.u32 (!%p355_p10), 1, %s914_s12   ;;  %v423_v32 = vld [vmem:[%s1131_s0 + $0x8] sm:$0xff] (!%p355_p10)  ;;  %v425_v33 = vld [vmem:[%s1131_s0 + $0x18] sm:$0xff] (!%p355_p10)  ;;  %v422_v50 = vld [vmem:[%s1131_s0] sm:$0xff] (!%p355_p10)  ;;  %p409_p11 = scmp.lt.s32.totalorder (!%p355_p10), %s922_s14, 2 }
  0x2f   : > { %358 = sbr.rel (%p355_p10) target bundleno = 308 (0x134), region = 69  ;;  %s775_s8 = sshll.u32 (!%p355_p10), %s361_s30, 7  ;;  %586 = vmatprep.mubr.f32.mxu0 (!%p355_p10), %v423_v32  ;;  %591 = vmatprep.mubr.f32.mxu1 (!%p355_p10), %v425_v33  ;;  %v424_v51 = vld [vmem:[%s1131_s0 + $0x10] sm:$0xff] (!%p355_p10) }
  0x30   : > { %s1079_s9 = scalar_lea.vmem (!%p355_p10), [#allocation3], %s775_s8  ;;  %s776_s26 = sshll.u32 (!%p355_p10), %s361_s30, 4 }
  0x31   : > { %v876_v34 = vld [vmem:[%s1079_s9 + $0x40] sm:$0xff] (!%p355_p10)   ;;  %v878_v36 = vld [vmem:[%s1079_s9 + $0x48] sm:$0xff] (!%p355_p10)   ;;  %v880_v38 = vld [vmem:[%s1079_s9 + $0x50] sm:$0xff] (!%p355_p10)   ;;  %s395_s27 = scalar_lea.vmem (!%p355_p10), [#allocation4], %s776_s26 }
  0x32   : > { %v877_v35 = vld [vmem:[%s1079_s9] sm:$0xff] (!%p355_p10)   ;;  %798 = vmatprep.subr.bf16.mxu0 (!%p355_p10), %v876_v34  ;;  %820 = vmatprep.subr.bf16.mxu1 (!%p355_p10), %v876_v34  ;;  %v879_v37 = vld [vmem:[%s1079_s9 + $0x8] sm:$0xff] (!%p355_p10)   ;;  %v881_v39 = vld [vmem:[%s1079_s9 + $0x10] sm:$0xff] (!%p355_p10)  }
  0x33   : > { %799 = vmatpush3.bf16.msra.mxu0 (!%p355_p10), %v877_v35  ;;  %828 = vmatpush3.bf16.msra.mxu1 (!%p355_p10), %v877_v35  ;;  %v882_v40 = vld [vmem:[%s1079_s9 + $0x58] sm:$0xff] (!%p355_p10)   ;;  %v884_v42 = vld [vmem:[%s1079_s9 + $0x60] sm:$0xff] (!%p355_p10)   ;;  %v886_v44 = vld [vmem:[%s1079_s9 + $0x68] sm:$0xff] (!%p355_p10)  }
  0x34   : > { %800 = vmatprep.subr.bf16.mxu0 (!%p355_p10), %v878_v36  ;;  %821 = vmatprep.subr.bf16.mxu1 (!%p355_p10), %v878_v36  ;;  %v883_v41 = vld [vmem:[%s1079_s9 + $0x18] sm:$0xff] (!%p355_p10)   ;;  %v885_v43 = vld [vmem:[%s1079_s9 + $0x20] sm:$0xff] (!%p355_p10)   ;;  %v887_v45 = vld [vmem:[%s1079_s9 + $0x28] sm:$0xff] (!%p355_p10)  }
  0x35   : > { %v888_v46 = vld [vmem:[%s1079_s9 + $0x70] sm:$0xff] (!%p355_p10)   ;;  %v890_v48 = vld [vmem:[%s1079_s9 + $0x78] sm:$0xff] (!%p355_p10)  }
  0x36   : > { %v889_v47 = vld [vmem:[%s1079_s9 + $0x30] sm:$0xff]   ;;  %v891_v49 = vld [vmem:[%s1079_s9 + $0x38] sm:$0xff]   ;;  %s410_s20 = scalar_select %p409_p11, %s922_s14, 2 }
  0x37   : > { %801 = vmatpush3.bf16.msra.mxu0 %v879_v37  ;;  %829 = vmatpush3.bf16.msra.mxu1 %v879_v37  ;;  %s795_s28 = sshll.u32 (%p987_p6), %s922_s14, 3 }
  0x38   : > { %802 = vmatprep.subr.bf16.mxu0 %v880_v38  ;;  %822 = vmatprep.subr.bf16.mxu1 %v880_v38  ;;  %s411_s25 = scalar_lea.vmem %s1133_s2, %s410_s20  ;;  %s628_s30 = scalar_lea.vmem (%p987_p6), %s1134_s3, %s795_s28 }
  0x39   : > { %v793_v55 = vld [vmem:[%s411_s25] ss:$0 sm:$0xff] }
  0x3b   : > { %803 = vmatpush3.bf16.msra.mxu0 %v881_v39  ;;  %830 = vmatpush3.bf16.msra.mxu1 %v881_v39 }
  0x3c   : > { %804 = vmatprep.subr.bf16.mxu0 %v882_v40  ;;  %823 = vmatprep.subr.bf16.mxu1 %v882_v40 }
  0x3f   : > { %805 = vmatpush3.bf16.msra.mxu0 %v883_v41  ;;  %831 = vmatpush3.bf16.msra.mxu1 %v883_v41 }
  0x40   : > { %806 = vmatprep.subr.bf16.mxu0 %v884_v42  ;;  %824 = vmatprep.subr.bf16.mxu1 %v884_v42 }
  0x43   : > { %807 = vmatpush3.bf16.msra.mxu0 %v885_v43  ;;  %832 = vmatpush3.bf16.msra.mxu1 %v885_v43 }
  0x44   : > { %808 = vmatprep.subr.bf16.mxu0 %v886_v44  ;;  %825 = vmatprep.subr.bf16.mxu1 %v886_v44 }
  0x47   : > { %809 = vmatpush3.bf16.msra.mxu0 %v887_v45  ;;  %833 = vmatpush3.bf16.msra.mxu1 %v887_v45 }
  0x48   : > { %810 = vmatprep.subr.bf16.mxu0 %v888_v46  ;;  %826 = vmatprep.subr.bf16.mxu1 %v888_v46 }
  0x4b   : > { %811 = vmatpush3.bf16.msra.mxu0 %v889_v47  ;;  %834 = vmatpush3.bf16.msra.mxu1 %v889_v47 }
  0x4c   : > { %812 = vmatprep.subr.bf16.mxu0 %v890_v48  ;;  %827 = vmatprep.subr.bf16.mxu1 %v890_v48 }
  0x4f   : > { %813 = vmatpush3.bf16.msra.mxu0 %v891_v49  ;;  %835 = vmatpush3.bf16.msra.mxu1 %v891_v49 }
  0x52   : > { %587 = vmatmul.mubr.f32.vlgmr.msra.gmra.mrb[0].mxu0 %v422_v50  ;;  %592 = vmatmul.mubr.f32.vlgmr.msra.gmra.mrb[0].mxu1 %v424_v51 }
 0x125   : > { %v814_v52 = vpop.f32.mrb[0].mxu0  ;;  %v817_v53 = vpop.f32.mrb[0].mxu1  ;;  %623 = sbr.rel (!%p987_p6) target bundleno = 308 (0x134), region = 85 }
 0x126   : > { %v815_v54 = vpop.f32.mrb[1].mxu0  ;;  %v818_v56 = vpop.f32.mrb[1].mxu1 }
 0x127   : > { %v816_v57 = vadd.f32 %v815_v54, %v814_v52  ;;  %v819_v58 = vadd.f32 %v818_v56, %v817_v53 }
 0x129   : > { %v613_v59 = vadd.f32 %v816_v57, %v793_v55  ;;  %v614_v60 = vadd.f32 %v819_v58, %v793_v55 }
 0x12b   : > { %615 = vst [vmem:[%s395_s27] sm:$0xff] %v613_v59  ;;  %616 = vst [vmem:[%s395_s27 + $0x8] sm:$0xff] %v614_v60 }
 0x132   : > { %v658_v61 = vld [vmem:[%s395_s27] sm:$0xff]  ;;  %v660_v62 = vld [vmem:[%s395_s27 + $0x8] sm:$0xff] }
 0x133   : > { %659 = vst [vmem:[%s628_s30] sm:$0xff] %v658_v61  ;;  %661 = vst [vmem:[%s628_s30 + $0x18] sm:$0xff] %v660_v62 }
 0x134 PF: > { %s13_s16 = sadd.s32 1, %s930_s16   ;;  %s1136_s12 = smov %s918_s13 }
 0x135   : > { %p10_p12 = scmp.ge.s32.totalorder %s13_s16, 5   ;;  %s1137_s13 = smov %s992_s22 }
 0x136   : > { %s1138_s14 = smov %s926_s15  ;;  %s1139_s15 = smov %s1141_s17 }
 0x137   :  { %12 = sbr.rel (!%p10_p12) target bundleno = 3 (0x3), region = 160 }

// kernel: local_motion_extractor_forward.7
= control target key start
LH: loop header
LB: loop body
LE: loop exit
PB: predicated region body
PF: predicated region fallthrough
CT: control target
= control target key end

     0   :  { %v1501_v1 = vmov 0.0   ;;  %v1502_v2 = vmov 0   ;;  %vm1503_vm0 = vmmov 0   ;;  %v1504_v25 = vmov 0.0|0.0   ;;  %s2114_s1 = inlined_call_operand.vmem [shape: bf16[128,384], index: 1, kind: input, shape index: {}]   ;;  %s2115_s2 = inlined_call_operand.vmem [shape: f32[1,384], index: 2, kind: input, shape index: {}]   ;;  %s2116_s0 = inlined_call_operand.vmem [shape: f32[8,8,384], index: 0, kind: input, shape index: {}]   ;;  %s2117_s3 = inlined_call_operand.vmem [shape: f32[8,8,128], index: 3, kind: output, shape index: {}]  }
   0x1   :  { %v1528_v0 = vld [vmem:[%s2114_s1 + $0x4] ss:$12 sps:$4 sm:$0xff]   ;;  %1213 = vmatprep.subr.bf16.mxu1 %v1501_v1  ;;  %234 = vmatprep.mubr.bf16.mxu0 %v1502_v2  ;;  %v1535_v3 = vld [vmem:[%s2114_s1] ss:$12 sps:$4 sm:$0xff]   ;;  %v1543_v4 = vld [vmem:[%s2114_s1 + $0x1c] ss:$12 sps:$4 sm:$0xff]   ;;  %v54_v27 = vlaneseq }
   0x2   :  { %1229 = vmatprep.mubr.msk.bf16.mxu1 %vm1503_vm0, %v1501_v1  ;;  %202 = vmatprep.subr.bf16.mxu0 %v1528_v0  ;;  %v1549_v5 = vld [vmem:[%s2114_s1 + $0x18] ss:$12 sps:$4 sm:$0xff]   ;;  %v1555_v6 = vld [vmem:[%s2114_s1 + $0x34] ss:$12 sps:$4 sm:$0xff]   ;;  %v1561_v7 = vld [vmem:[%s2114_s1 + $0x30] ss:$12 sps:$4 sm:$0xff]  }
   0x3   :  { %203 = vmatpush1.bf16.msra.mxu0 %v1535_v3  ;;  %v1567_v8 = vld [vmem:[%s2114_s1 + $0x4c] ss:$12 sps:$4 sm:$0xff]   ;;  %v1572_v9 = vld [vmem:[%s2114_s1 + $0x8] ss:$12 sps:$4 sm:$0xff]   ;;  %v1583_v11 = vld [vmem:[%s2114_s1 + $0x64] ss:$12 sps:$4 sm:$0xff]  }
   0x4   :  { %204 = vmatprep.subr.bf16.mxu0 %v1543_v4  ;;  %v1578_v10 = vld [vmem:[%s2114_s1 + $0x48] ss:$12 sps:$4 sm:$0xff]   ;;  %1214 = vmatpush3.bf16.msra.mxu1 %v1572_v9  ;;  %v1590_v12 = vld [vmem:[%s2114_s1 + $0x20] ss:$12 sps:$4 sm:$0xff]   ;;  %v1609_v15 = vld [vmem:[%s2114_s1 + $0x38] ss:$12 sps:$4 sm:$0xff]  }
   0x5   :  { %1215 = vmatprep.subr.bf16.mxu1 %v1501_v1  ;;  %v1596_v13 = vld [vmem:[%s2114_s1 + $0x60] ss:$12 sps:$4 sm:$0xff]   ;;  %v1602_v14 = vld [vmem:[%s2114_s1 + $0x7c] ss:$12 sps:$4 sm:$0xff]   ;;  %v1616_v16 = vld [vmem:[%s2114_s1 + $0x78] ss:$12 sps:$4 sm:$0xff]  }
   0x6   :  { %v1622_v17 = vld [vmem:[%s2114_s1 + $0x94] ss:$12 sps:$4 sm:$0xff]   ;;  %v1628_v18 = vld [vmem:[%s2114_s1 + $0x50] ss:$12 sps:$4 sm:$0xff]   ;;  %v1641_v20 = vld [vmem:[%s2114_s1 + $0xac] ss:$12 sps:$4 sm:$0xff]  }
   0x7   :  { %205 = vmatpush1.bf16.msra.mxu0 %v1549_v5  ;;  %v1635_v19 = vld [vmem:[%s2114_s1 + $0x90] ss:$12 sps:$4 sm:$0xff]   ;;  %v1647_v21 = vld [vmem:[%s2114_s1 + $0x68] ss:$12 sps:$4 sm:$0xff]   ;;  %v1661_v23 = vld [vmem:[%s2114_s1 + $0x80] ss:$12 sps:$4 sm:$0xff]  }
   0x8   :  { %206 = vmatprep.subr.bf16.mxu0 %v1555_v6  ;;  %1216 = vmatpush3.bf16.msra.mxu1 %v1590_v12  ;;  %v1654_v22 = vld [vmem:[%s2114_s1 + $0xa8] ss:$12 sps:$4 sm:$0xff]   ;;  %v1669_v24 = vld [vmem:[%s2114_s1 + $0x98] ss:$12 sps:$4 sm:$0xff]   ;;  %v1679_v26 = vld [vmem:[%s2114_s1 + $0xb0] ss:$12 sps:$4 sm:$0xff]  }
   0x9   :  { %1217 = vmatprep.subr.bf16.mxu1 %v1501_v1  ;;  %v55_v28 = vshrl.u32 %v54_v27, 7  ;;  %v52_v30 = vld [vmem:[%s2115_s2] sm:$0x7]  ;;  %v71_v41 = vld [vmem:[%s2116_s0 + $0x8] sm:$0xff]  ;;  %v72_v58 = vld [vmem:[%s2116_s0 + $0x10] sm:$0xff] }
   0xa   :  { %v70_v34 = vld [vmem:[%s2116_s0] sm:$0xff] }
   0xb   :  { %207 = vmatpush1.bf16.msra.mxu0 %v1561_v7  ;;  %v56_v29 = vsub.s32 0, %v55_v28  ;;  %v60_v31 = vsub.s32 1, %v55_v28  ;;  %v64_v52 = vsub.s32 2, %v55_v28 }
   0xc   :  { %208 = vmatprep.subr.bf16.mxu0 %v1567_v8  ;;  %1218 = vmatpush3.bf16.msra.mxu1 %v1609_v15 }
   0xd   :  { %1219 = vmatprep.subr.bf16.mxu1 %v1501_v1  ;;  %v1720_v32 = vrot.slane %v52_v30, %v56_v29  ;;  %v1722_v33 = vrot.slane %v52_v30, %v60_v31  ;;  %v1732_v53 = vrot.slane %v52_v30, %v64_v52  ;;  %v1099_v30 = vld [vmem:[%s2116_s0 + $0x18] sm:$0xff] }
   0xf   :  { %209 = vmatpush1.bf16.msra.mxu0 %v1578_v10 }
  0x10   :  { %210 = vmatprep.subr.bf16.mxu0 %v1583_v11  ;;  %1220 = vmatpush3.bf16.msra.mxu1 %v1628_v18 }
  0x11   :  { %1221 = vmatprep.subr.bf16.mxu1 %v1501_v1 }
  0x13   :  { %211 = vmatpush1.bf16.msra.mxu0 %v1596_v13 }
  0x14   :  { %212 = vmatprep.subr.bf16.mxu0 %v1602_v14  ;;  %1222 = vmatpush3.bf16.msra.mxu1 %v1647_v21 }
  0x15   :  { %1223 = vmatprep.subr.bf16.mxu1 %v1501_v1 }
  0x17   :  { %213 = vmatpush1.bf16.msra.mxu0 %v1616_v16 }
  0x18   :  { %214 = vmatprep.subr.bf16.mxu0 %v1622_v17  ;;  %1224 = vmatpush3.bf16.msra.mxu1 %v1661_v23 }
  0x19   :  { %1225 = vmatprep.subr.bf16.mxu1 %v1501_v1 }
  0x1b   :  { %215 = vmatpush1.bf16.msra.mxu0 %v1635_v19 }
  0x1c   :  { %216 = vmatprep.subr.bf16.mxu0 %v1641_v20  ;;  %1226 = vmatpush3.bf16.msra.mxu1 %v1669_v24 }
  0x1d   :  { %1227 = vmatprep.subr.bf16.mxu1 %v1501_v1 }
  0x1f   :  { %217 = vmatpush1.bf16.msra.mxu0 %v1654_v22 }
  0x20   :  { %310 = vmatprep.subr.bf16.mxu0 %v1528_v0  ;;  %1228 = vmatpush3.bf16.msra.mxu1 %v1679_v26 }
  0x21   :  { %1233 = vmatprep.subr.bf16.mxu1 %v1501_v1 }
  0x22   :  { %235 = vmatmul.mubr.bf16.vlgmr.msra.gmra.mrb[0].mxu0 %v1504_v25 }
  0x23   :  { %311 = vmatpush1.bf16.msra.mxu0 %v1535_v3  ;;  %342 = vmatprep.mubr.bf16.mxu0 %v1502_v2 }
  0x24   :  { %312 = vmatprep.subr.bf16.mxu0 %v1543_v4  ;;  %1230 = vmatmul.mubr.bf16.vlgmr.msra.gmra.mrb[0].mxu1 %v1504_v25 }
  0x25   :  { %1234 = vmatpush3.bf16.msra.mxu1 %v1572_v9  ;;  %1249 = vmatprep.mubr.msk.bf16.mxu1 %vm1503_vm0, %v1501_v1 }
  0x26   :  { %1235 = vmatprep.subr.bf16.mxu1 %v1501_v1 }
  0x27   :  { %313 = vmatpush1.bf16.msra.mxu0 %v1549_v5 }
  0x28   :  { %314 = vmatprep.subr.bf16.mxu0 %v1555_v6 }
  0x29   :  { %1236 = vmatpush3.bf16.msra.mxu1 %v1590_v12 }
  0x2a   :  { %1237 = vmatprep.subr.bf16.mxu1 %v1501_v1 }
  0x2b   :  { %315 = vmatpush1.bf16.msra.mxu0 %v1561_v7 }
  0x2c   :  { %316 = vmatprep.subr.bf16.mxu0 %v1567_v8 }
  0x2d   :  { %1238 = vmatpush3.bf16.msra.mxu1 %v1609_v15 }
  0x2e   :  { %1239 = vmatprep.subr.bf16.mxu1 %v1501_v1 }
  0x2f   :  { %317 = vmatpush1.bf16.msra.mxu0 %v1578_v10 }
  0x30   :  { %318 = vmatprep.subr.bf16.mxu0 %v1583_v11 }
  0x31   :  { %1240 = vmatpush3.bf16.msra.mxu1 %v1628_v18 }
  0x32   :  { %1241 = vmatprep.subr.bf16.mxu1 %v1501_v1 }
  0x33   :  { %319 = vmatpush1.bf16.msra.mxu0 %v1596_v13 }
  0x34   :  { %320 = vmatprep.subr.bf16.mxu0 %v1602_v14 }
  0x35   :  { %1242 = vmatpush3.bf16.msra.mxu1 %v1647_v21 }
  0x36   :  { %1243 = vmatprep.subr.bf16.mxu1 %v1501_v1 }
  0x37   :  { %321 = vmatpush1.bf16.msra.mxu0 %v1616_v16 }
  0x38   :  { %322 = vmatprep.subr.bf16.mxu0 %v1622_v17 }
  0x39   :  { %1244 = vmatpush3.bf16.msra.mxu1 %v1661_v23 }
  0x3a   :  { %1245 = vmatprep.subr.bf16.mxu1 %v1501_v1 }
  0x3b   :  { %323 = vmatpush1.bf16.msra.mxu0 %v1635_v19 }
  0x3c   :  { %324 = vmatprep.subr.bf16.mxu0 %v1641_v20 }
  0x3d   :  { %1246 = vmatpush3.bf16.msra.mxu1 %v1669_v24 }
  0x3e   :  { %1247 = vmatprep.subr.bf16.mxu1 %v1501_v1 }
  0x3f   :  { %325 = vmatpush1.bf16.msra.mxu0 %v1654_v22 }
  0x40   :  { %419 = vmatprep.subr.bf16.mxu0 %v1528_v0 }
  0x41   :  { %1248 = vmatpush3.bf16.msra.mxu1 %v1679_v26 }
  0x42   :  { %1253 = vmatprep.subr.bf16.mxu1 %v1501_v1 }
  0xf5   :  { %v236_v35 = vpop.f32.mrb[0].mxu0 }
  0xf6   :  { %v237_v36 = vadd.f32 %v236_v35, %v1720_v32  ;;  %v238_v37 = vpop.f32.mrb[1].mxu0 }
  0xf7   :  { %v239_v38 = vadd.f32 %v238_v37, %v1722_v33  ;;  %v240_v39 = vpop.f32.mrb[2].mxu0  ;;  %v277_v45 = vpop.f32.mrb[0].mxu1 }
  0xf8   :  { %v283_v40 = vadd.f32 %v237_v36, %v70_v34  ;;  %v241_v42 = vpop.f32.mrb[3].mxu0  ;;  %v1231_v47 = vpop.f32.mrb[1].mxu1  ;;  %v278_v56 = vadd.f32 %v277_v45, %v1732_v53 }
  0xf9   :  { %v290_v44 = vadd.f32 %v239_v38, %v71_v41  ;;  %v280_v48 = vpop.f32.mrb[2].mxu1  ;;  %v1100_v42 = vld [vmem:[%s2116_s0 + $0x20] sm:$0xff] }
  0xfa   :  { %v1097_v43 = vmul.f32 -1.442695, %v283_v40  ;;  %v1232_v49 = vpop.f32.mrb[3].mxu1 }
  0xfb   :  { %v1098_v46 = vmul.f32 -1.442695, %v290_v44 }
  0xfc   :  { %1409 = vpow2.f32 %v1097_v43 }
  0xfd   :  { %1411 = vpow2.f32 %v1098_v46 }
 0x106   :  { %v1410_v50 = vpop.eup %1409 }
 0x107   :  { %v287_v51 = vadd.f32 1.0, %v1410_v50  ;;  %v1412_v54 = vpop.eup %1411 }
 0x108   :  { %v294_v55 = vadd.f32 1.0, %v1412_v54 }
 0x109   :  { %1413 = vrcp.f32 %v287_v51 }
 0x10a   :  { %1415 = vrcp.f32 %v294_v55  ;;  %v1101_v55 = vld [vmem:[%s2116_s0 + $0x28] sm:$0xff] }
 0x113   :  { %v1414_v57 = vpop.eup %1413 }
 0x114   :  { %v297_v59 = vmul.f32 %v1414_v57, %v278_v56  ;;  %v1416_v61 = vpop.eup %1415 }
 0x115   :  { %v300_v62 = vsub.f32 1.0, %v1416_v61  ;;  %v302_v27 = vmul.f32 0.0, %v1416_v61 }
 0x116   :  { %v298_v60 = vadd.f32 %v297_v59, %v72_v58 }
 0x118   :  { %1417 = vtanh.f32 %v298_v60 }
 0x122   :  { %v1418_v63 = vpop.eup %1417 }
 0x123   :  { %v301_v25 = vmul.f32 %v1418_v63, %v300_v62 }
 0x125   :  { %v1738_v28 = vadd.f32 %v302_v27, %v301_v25  ;;  %v1105_v27 = vld [vmem:[%s2116_s0 + $0x30] sm:$0xff] }
 0x127   :  { %304 = vst [vmem:[%s2117_s3] sm:$0xff] %v1738_v28  ;;  %v309_v29 = vpack.c.bf16 %v1738_v28, %v1738_v28 }
 0x129   :  { %343 = vmatmul.mubr.bf16.vlgmr.msra.gmra.mrb[4].mxu0 %v309_v29  ;;  %1250 = vmatmul.mubr.bf16.vlgmr.msra.gmra.mrb[4].mxu1 %v309_v29 }
 0x12a   :  { %420 = vmatpush1.bf16.msra.mxu0 %v1535_v3  ;;  %1254 = vmatpush3.bf16.msra.mxu1 %v1572_v9 }
 0x12b   :  { %421 = vmatprep.subr.bf16.mxu0 %v1543_v4  ;;  %1255 = vmatprep.subr.bf16.mxu1 %v1501_v1 }
 0x12c   :  { %451 = vmatprep.mubr.bf16.mxu0 %v1502_v2  ;;  %1269 = vmatprep.mubr.msk.bf16.mxu1 %vm1503_vm0, %v1501_v1 }
 0x12e   :  { %422 = vmatpush1.bf16.msra.mxu0 %v1549_v5  ;;  %1256 = vmatpush3.bf16.msra.mxu1 %v1590_v12 }
 0x12f   :  { %423 = vmatprep.subr.bf16.mxu0 %v1555_v6  ;;  %1257 = vmatprep.subr.bf16.mxu1 %v1501_v1 }
 0x132   :  { %424 = vmatpush1.bf16.msra.mxu0 %v1561_v7  ;;  %1258 = vmatpush3.bf16.msra.mxu1 %v1609_v15 }
 0x133   :  { %425 = vmatprep.subr.bf16.mxu0 %v1567_v8  ;;  %1259 = vmatprep.subr.bf16.mxu1 %v1501_v1 }
 0x136   :  { %426 = vmatpush1.bf16.msra.mxu0 %v1578_v10  ;;  %1260 = vmatpush3.bf16.msra.mxu1 %v1628_v18 }
 0x137   :  { %427 = vmatprep.subr.bf16.mxu0 %v1583_v11  ;;  %1261 = vmatprep.subr.bf16.mxu1 %v1501_v1 }
 0x13a   :  { %428 = vmatpush1.bf16.msra.mxu0 %v1596_v13  ;;  %1262 = vmatpush3.bf16.msra.mxu1 %v1647_v21 }
 0x13b   :  { %429 = vmatprep.subr.bf16.mxu0 %v1602_v14  ;;  %1263 = vmatprep.subr.bf16.mxu1 %v1501_v1 }
 0x13e   :  { %430 = vmatpush1.bf16.msra.mxu0 %v1616_v16  ;;  %1264 = vmatpush3.bf16.msra.mxu1 %v1661_v23 }
 0x13f   :  { %431 = vmatprep.subr.bf16.mxu0 %v1622_v17  ;;  %1265 = vmatprep.subr.bf16.mxu1 %v1501_v1 }
 0x142   :  { %432 = vmatpush1.bf16.msra.mxu0 %v1635_v19  ;;  %1266 = vmatpush3.bf16.msra.mxu1 %v1669_v24 }
 0x143   :  { %433 = vmatprep.subr.bf16.mxu0 %v1641_v20  ;;  %1267 = vmatprep.subr.bf16.mxu1 %v1501_v1 }
 0x146   :  { %434 = vmatpush1.bf16.msra.mxu0 %v1654_v22  ;;  %1268 = vmatpush3.bf16.msra.mxu1 %v1679_v26 }
 0x147   :  { %528 = vmatprep.subr.bf16.mxu0 %v1528_v0  ;;  %1273 = vmatprep.subr.bf16.mxu1 %v1501_v1 }
 0x1fc   :  { %v344_v31 = vpop.f32.mrb[4].mxu0  ;;  %v385_v34 = vpop.f32.mrb[4].mxu1 }
 0x1fd   :  { %v345_v35 = vadd.f32 %v344_v31, %v1720_v32  ;;  %v346_v36 = vpop.f32.mrb[5].mxu0  ;;  %v1251_v37 = vpop.f32.mrb[5].mxu1  ;;  %v386_v52 = vadd.f32 %v385_v34, %v1732_v53 }
 0x1fe   :  { %v347_v38 = vadd.f32 %v346_v36, %v1722_v33  ;;  %v348_v39 = vpop.f32.mrb[6].mxu0  ;;  %v388_v40 = vpop.f32.mrb[6].mxu1 }
 0x1ff   :  { %v391_v41 = vadd.f32 %v1099_v30, %v345_v35  ;;  %v349_v43 = vpop.f32.mrb[7].mxu0  ;;  %v1252_v44 = vpop.f32.mrb[7].mxu1  ;;  %v1106_v39 = vld [vmem:[%s2116_s0 + $0x38] sm:$0xff] }
 0x200   :  { %v398_v46 = vadd.f32 %v1100_v42, %v347_v38 }
 0x201   :  { %v1102_v45 = vmul.f32 -1.442695, %v391_v41 }
 0x202   :  { %v1103_v47 = vmul.f32 -1.442695, %v398_v46 }
 0x203   :  { %1419 = vpow2.f32 %v1102_v45 }
 0x204   :  { %1421 = vpow2.f32 %v1103_v47 }
 0x20d   :  { %v1420_v48 = vpop.eup %1419 }
 0x20e   :  { %v395_v49 = vadd.f32 1.0, %v1420_v48  ;;  %v1422_v50 = vpop.eup %1421 }
 0x20f   :  { %v402_v51 = vadd.f32 1.0, %v1422_v50 }
 0x210   :  { %1423 = vrcp.f32 %v395_v49 }
 0x211   :  { %1425 = vrcp.f32 %v402_v51  ;;  %v1107_v51 = vld [vmem:[%s2116_s0 + $0x40] sm:$0xff] }
 0x21a   :  { %v1424_v54 = vpop.eup %1423 }
 0x21b   :  { %v405_v56 = vmul.f32 %v1424_v54, %v386_v52  ;;  %v1426_v58 = vpop.eup %1425 }
 0x21c   :  { %v408_v59 = vsub.f32 1.0, %v1426_v58  ;;  %v410_v62 = vmul.f32 %v1426_v58, %v1738_v28 }
 0x21d   :  { %v406_v57 = vadd.f32 %v1101_v55, %v405_v56 }
 0x21f   :  { %1427 = vtanh.f32 %v406_v57 }
 0x229   :  { %v1428_v60 = vpop.eup %1427 }
 0x22a   :  { %v409_v61 = vmul.f32 %v1428_v60, %v408_v59 }
 0x22c   :  { %v1794_v63 = vadd.f32 %v410_v62, %v409_v61  ;;  %v1111_v62 = vld [vmem:[%s2116_s0 + $0x48] sm:$0xff] }
 0x22e   :  { %1104 = vst [vmem:[%s2117_s3 + $0x8] sm:$0xff] %v1794_v63  ;;  %v418_v25 = vpack.c.bf16 %v1794_v63, %v1794_v63 }
 0x230   :  { %452 = vmatmul.mubr.bf16.vlgmr.msra.gmra.mrb[8].mxu0 %v418_v25  ;;  %1270 = vmatmul.mubr.bf16.vlgmr.msra.gmra.mrb[8].mxu1 %v418_v25 }
 0x231   :  { %529 = vmatpush1.bf16.msra.mxu0 %v1535_v3  ;;  %1274 = vmatpush3.bf16.msra.mxu1 %v1572_v9 }
 0x232   :  { %530 = vmatprep.subr.bf16.mxu0 %v1543_v4  ;;  %1275 = vmatprep.subr.bf16.mxu1 %v1501_v1 }
 0x233   :  { %560 = vmatprep.mubr.bf16.mxu0 %v1502_v2  ;;  %1289 = vmatprep.mubr.msk.bf16.mxu1 %vm1503_vm0, %v1501_v1 }
 0x235   :  { %531 = vmatpush1.bf16.msra.mxu0 %v1549_v5  ;;  %1276 = vmatpush3.bf16.msra.mxu1 %v1590_v12 }
 0x236   :  { %532 = vmatprep.subr.bf16.mxu0 %v1555_v6  ;;  %1277 = vmatprep.subr.bf16.mxu1 %v1501_v1 }
 0x239   :  { %533 = vmatpush1.bf16.msra.mxu0 %v1561_v7  ;;  %1278 = vmatpush3.bf16.msra.mxu1 %v1609_v15 }
 0x23a   :  { %534 = vmatprep.subr.bf16.mxu0 %v1567_v8  ;;  %1279 = vmatprep.subr.bf16.mxu1 %v1501_v1 }
 0x23d   :  { %535 = vmatpush1.bf16.msra.mxu0 %v1578_v10  ;;  %1280 = vmatpush3.bf16.msra.mxu1 %v1628_v18 }
 0x23e   :  { %536 = vmatprep.subr.bf16.mxu0 %v1583_v11  ;;  %1281 = vmatprep.subr.bf16.mxu1 %v1501_v1 }
 0x241   :  { %537 = vmatpush1.bf16.msra.mxu0 %v1596_v13  ;;  %1282 = vmatpush3.bf16.msra.mxu1 %v1647_v21 }
 0x242   :  { %538 = vmatprep.subr.bf16.mxu0 %v1602_v14  ;;  %1283 = vmatprep.subr.bf16.mxu1 %v1501_v1 }
 0x245   :  { %539 = vmatpush1.bf16.msra.mxu0 %v1616_v16  ;;  %1284 = vmatpush3.bf16.msra.mxu1 %v1661_v23 }
 0x246   :  { %540 = vmatprep.subr.bf16.mxu0 %v1622_v17  ;;  %1285 = vmatprep.subr.bf16.mxu1 %v1501_v1 }
 0x249   :  { %541 = vmatpush1.bf16.msra.mxu0 %v1635_v19  ;;  %1286 = vmatpush3.bf16.msra.mxu1 %v1669_v24 }
 0x24a   :  { %542 = vmatprep.subr.bf16.mxu0 %v1641_v20  ;;  %1287 = vmatprep.subr.bf16.mxu1 %v1501_v1 }
 0x24d   :  { %543 = vmatpush1.bf16.msra.mxu0 %v1654_v22  ;;  %1288 = vmatpush3.bf16.msra.mxu1 %v1679_v26 }
 0x24e   :  { %637 = vmatprep.subr.bf16.mxu0 %v1528_v0  ;;  %1293 = vmatprep.subr.bf16.mxu1 %v1501_v1 }
 0x303   :  { %v453_v28 = vpop.f32.mrb[8].mxu0  ;;  %v494_v29 = vpop.f32.mrb[8].mxu1 }
 0x304   :  { %v454_v30 = vadd.f32 %v453_v28, %v1720_v32  ;;  %v455_v31 = vpop.f32.mrb[9].mxu0  ;;  %v1271_v34 = vpop.f32.mrb[9].mxu1  ;;  %v495_v49 = vadd.f32 %v494_v29, %v1732_v53 }
 0x305   :  { %v456_v35 = vadd.f32 %v455_v31, %v1722_v33  ;;  %v457_v36 = vpop.f32.mrb[10].mxu0  ;;  %v497_v37 = vpop.f32.mrb[10].mxu1 }
 0x306   :  { %v500_v38 = vadd.f32 %v1105_v27, %v454_v30  ;;  %v458_v40 = vpop.f32.mrb[11].mxu0  ;;  %v1272_v41 = vpop.f32.mrb[11].mxu1  ;;  %v1112_v36 = vld [vmem:[%s2116_s0 + $0x50] sm:$0xff] }
 0x307   :  { %v507_v43 = vadd.f32 %v1106_v39, %v456_v35 }
 0x308   :  { %v1108_v42 = vmul.f32 -1.442695, %v500_v38 }
 0x309   :  { %v1109_v44 = vmul.f32 -1.442695, %v507_v43 }
 0x30a   :  { %1429 = vpow2.f32 %v1108_v42 }
 0x30b   :  { %1431 = vpow2.f32 %v1109_v44 }
 0x314   :  { %v1430_v45 = vpop.eup %1429 }
 0x315   :  { %v504_v46 = vadd.f32 1.0, %v1430_v45  ;;  %v1432_v47 = vpop.eup %1431 }
 0x316   :  { %v511_v48 = vadd.f32 1.0, %v1432_v47 }
 0x317   :  { %1433 = vrcp.f32 %v504_v46 }
 0x318   :  { %1435 = vrcp.f32 %v511_v48  ;;  %v1113_v48 = vld [vmem:[%s2116_s0 + $0x58] sm:$0xff] }
 0x321   :  { %v1434_v50 = vpop.eup %1433 }
 0x322   :  { %v514_v52 = vmul.f32 %v1434_v50, %v495_v49  ;;  %v1436_v55 = vpop.eup %1435 }
 0x323   :  { %v517_v56 = vsub.f32 1.0, %v1436_v55  ;;  %v519_v59 = vmul.f32 %v1436_v55, %v1794_v63 }
 0x324   :  { %v515_v54 = vadd.f32 %v1107_v51, %v514_v52 }
 0x326   :  { %1437 = vtanh.f32 %v515_v54 }
 0x330   :  { %v1438_v57 = vpop.eup %1437 }
 0x331   :  { %v518_v58 = vmul.f32 %v1438_v57, %v517_v56 }
 0x333   :  { %v1850_v60 = vadd.f32 %v519_v59, %v518_v58  ;;  %v1117_v59 = vld [vmem:[%s2116_s0 + $0x60] sm:$0xff] }
 0x335   :  { %1110 = vst [vmem:[%s2117_s3 + $0x10] sm:$0xff] %v1850_v60  ;;  %v527_v61 = vpack.c.bf16 %v1850_v60, %v1850_v60 }
 0x337   :  { %561 = vmatmul.mubr.bf16.vlgmr.msra.gmra.mrb[12].mxu0 %v527_v61  ;;  %1290 = vmatmul.mubr.bf16.vlgmr.msra.gmra.mrb[12].mxu1 %v527_v61 }
 0x338   :  { %638 = vmatpush1.bf16.msra.mxu0 %v1535_v3  ;;  %1294 = vmatpush3.bf16.msra.mxu1 %v1572_v9 }
 0x339   :  { %639 = vmatprep.subr.bf16.mxu0 %v1543_v4  ;;  %1295 = vmatprep.subr.bf16.mxu1 %v1501_v1 }
 0x33a   :  { %669 = vmatprep.mubr.bf16.mxu0 %v1502_v2  ;;  %1309 = vmatprep.mubr.msk.bf16.mxu1 %vm1503_vm0, %v1501_v1 }
 0x33c   :  { %640 = vmatpush1.bf16.msra.mxu0 %v1549_v5  ;;  %1296 = vmatpush3.bf16.msra.mxu1 %v1590_v12 }
 0x33d   :  { %641 = vmatprep.subr.bf16.mxu0 %v1555_v6  ;;  %1297 = vmatprep.subr.bf16.mxu1 %v1501_v1 }
 0x340   :  { %642 = vmatpush1.bf16.msra.mxu0 %v1561_v7  ;;  %1298 = vmatpush3.bf16.msra.mxu1 %v1609_v15 }
 0x341   :  { %643 = vmatprep.subr.bf16.mxu0 %v1567_v8  ;;  %1299 = vmatprep.subr.bf16.mxu1 %v1501_v1 }
 0x344   :  { %644 = vmatpush1.bf16.msra.mxu0 %v1578_v10  ;;  %1300 = vmatpush3.bf16.msra.mxu1 %v1628_v18 }
 0x345   :  { %645 = vmatprep.subr.bf16.mxu0 %v1583_v11  ;;  %1301 = vmatprep.subr.bf16.mxu1 %v1501_v1 }
 0x348   :  { %646 = vmatpush1.bf16.msra.mxu0 %v1596_v13  ;;  %1302 = vmatpush3.bf16.msra.mxu1 %v1647_v21 }
 0x349   :  { %647 = vmatprep.subr.bf16.mxu0 %v1602_v14  ;;  %1303 = vmatprep.subr.bf16.mxu1 %v1501_v1 }
 0x34c   :  { %648 = vmatpush1.bf16.msra.mxu0 %v1616_v16  ;;  %1304 = vmatpush3.bf16.msra.mxu1 %v1661_v23 }
 0x34d   :  { %649 = vmatprep.subr.bf16.mxu0 %v1622_v17  ;;  %1305 = vmatprep.subr.bf16.mxu1 %v1501_v1 }
 0x350   :  { %650 = vmatpush1.bf16.msra.mxu0 %v1635_v19  ;;  %1306 = vmatpush3.bf16.msra.mxu1 %v1669_v24 }
 0x351   :  { %651 = vmatprep.subr.bf16.mxu0 %v1641_v20  ;;  %1307 = vmatprep.subr.bf16.mxu1 %v1501_v1 }
 0x354   :  { %652 = vmatpush1.bf16.msra.mxu0 %v1654_v22  ;;  %1308 = vmatpush3.bf16.msra.mxu1 %v1679_v26 }
 0x355   :  { %746 = vmatprep.subr.bf16.mxu0 %v1528_v0  ;;  %1313 = vmatprep.subr.bf16.mxu1 %v1501_v1 }
 0x40a   :  { %v562_v63 = vpop.f32.mrb[12].mxu0  ;;  %v603_v25 = vpop.f32.mrb[12].mxu1 }
 0x40b   :  { %v563_v27 = vadd.f32 %v562_v63, %v1720_v32  ;;  %v564_v28 = vpop.f32.mrb[13].mxu0  ;;  %v1291_v29 = vpop.f32.mrb[13].mxu1  ;;  %v604_v46 = vadd.f32 %v603_v25, %v1732_v53 }
 0x40c   :  { %v565_v30 = vadd.f32 %v564_v28, %v1722_v33  ;;  %v566_v31 = vpop.f32.mrb[14].mxu0  ;;  %v606_v34 = vpop.f32.mrb[14].mxu1 }
 0x40d   :  { %v609_v35 = vadd.f32 %v1111_v62, %v563_v27  ;;  %v567_v37 = vpop.f32.mrb[15].mxu0  ;;  %v1292_v38 = vpop.f32.mrb[15].mxu1  ;;  %v1118_v31 = vld [vmem:[%s2116_s0 + $0x68] sm:$0xff] }
 0x40e   :  { %v616_v40 = vadd.f32 %v1112_v36, %v565_v30 }
 0x40f   :  { %v1114_v39 = vmul.f32 -1.442695, %v609_v35 }
 0x410   :  { %v1115_v41 = vmul.f32 -1.442695, %v616_v40 }
 0x411   :  { %1439 = vpow2.f32 %v1114_v39 }
 0x412   :  { %1441 = vpow2.f32 %v1115_v41 }
 0x41b   :  { %v1440_v42 = vpop.eup %1439 }
 0x41c   :  { %v613_v43 = vadd.f32 1.0, %v1440_v42  ;;  %v1442_v44 = vpop.eup %1441 }
 0x41d   :  { %v620_v45 = vadd.f32 1.0, %v1442_v44 }
 0x41e   :  { %1443 = vrcp.f32 %v613_v43 }
 0x41f   :  { %1445 = vrcp.f32 %v620_v45  ;;  %v1119_v45 = vld [vmem:[%s2116_s0 + $0x70] sm:$0xff] }
 0x428   :  { %v1444_v47 = vpop.eup %1443 }
 0x429   :  { %v623_v49 = vmul.f32 %v1444_v47, %v604_v46  ;;  %v1446_v51 = vpop.eup %1445 }
 0x42a   :  { %v626_v52 = vsub.f32 1.0, %v1446_v51  ;;  %v628_v56 = vmul.f32 %v1446_v51, %v1850_v60 }
 0x42b   :  { %v624_v50 = vadd.f32 %v1113_v48, %v623_v49 }
 0x42d   :  { %1447 = vtanh.f32 %v624_v50 }
 0x437   :  { %v1448_v54 = vpop.eup %1447 }
 0x438   :  { %v627_v55 = vmul.f32 %v1448_v54, %v626_v52 }
 0x43a   :  { %v1906_v57 = vadd.f32 %v628_v56, %v627_v55 }
 0x43c   :  { %1116 = vst [vmem:[%s2117_s3 + $0x18] sm:$0xff] %v1906_v57  ;;  %v636_v58 = vpack.c.bf16 %v1906_v57, %v1906_v57 }
 0x43e   :  { %670 = vmatmul.mubr.bf16.vlgmr.msra.gmra.mrb[16].mxu0 %v636_v58  ;;  %1310 = vmatmul.mubr.bf16.vlgmr.msra.gmra.mrb[16].mxu1 %v636_v58 }
 0x43f   :  { %747 = vmatpush1.bf16.msra.mxu0 %v1535_v3  ;;  %1314 = vmatpush3.bf16.msra.mxu1 %v1572_v9 }
 0x440   :  { %748 = vmatprep.subr.bf16.mxu0 %v1543_v4  ;;  %1315 = vmatprep.subr.bf16.mxu1 %v1501_v1 }
 0x441   :  { %778 = vmatprep.mubr.bf16.mxu0 %v1502_v2  ;;  %1329 = vmatprep.mubr.msk.bf16.mxu1 %vm1503_vm0, %v1501_v1 }
 0x443   :  { %749 = vmatpush1.bf16.msra.mxu0 %v1549_v5  ;;  %1316 = vmatpush3.bf16.msra.mxu1 %v1590_v12 }
 0x444   :  { %750 = vmatprep.subr.bf16.mxu0 %v1555_v6  ;;  %1317 = vmatprep.subr.bf16.mxu1 %v1501_v1 }
 0x447   :  { %751 = vmatpush1.bf16.msra.mxu0 %v1561_v7  ;;  %1318 = vmatpush3.bf16.msra.mxu1 %v1609_v15 }
 0x448   :  { %752 = vmatprep.subr.bf16.mxu0 %v1567_v8  ;;  %1319 = vmatprep.subr.bf16.mxu1 %v1501_v1 }
 0x44b   :  { %753 = vmatpush1.bf16.msra.mxu0 %v1578_v10  ;;  %1320 = vmatpush3.bf16.msra.mxu1 %v1628_v18 }
 0x44c   :  { %754 = vmatprep.subr.bf16.mxu0 %v1583_v11  ;;  %1321 = vmatprep.subr.bf16.mxu1 %v1501_v1 }
 0x44f   :  { %755 = vmatpush1.bf16.msra.mxu0 %v1596_v13  ;;  %1322 = vmatpush3.bf16.msra.mxu1 %v1647_v21 }
 0x450   :  { %756 = vmatprep.subr.bf16.mxu0 %v1602_v14  ;;  %1323 = vmatprep.subr.bf16.mxu1 %v1501_v1 }
 0x453   :  { %757 = vmatpush1.bf16.msra.mxu0 %v1616_v16  ;;  %1324 = vmatpush3.bf16.msra.mxu1 %v1661_v23 }
 0x454   :  { %758 = vmatprep.subr.bf16.mxu0 %v1622_v17  ;;  %1325 = vmatprep.subr.bf16.mxu1 %v1501_v1 }
 0x457   :  { %759 = vmatpush1.bf16.msra.mxu0 %v1635_v19  ;;  %1326 = vmatpush3.bf16.msra.mxu1 %v1669_v24 }
 0x458   :  { %760 = vmatprep.subr.bf16.mxu0 %v1641_v20  ;;  %1327 = vmatprep.subr.bf16.mxu1 %v1501_v1 }
 0x45b   :  { %761 = vmatpush1.bf16.msra.mxu0 %v1654_v22  ;;  %1328 = vmatpush3.bf16.msra.mxu1 %v1679_v26 }
 0x45c   :  { %855 = vmatprep.subr.bf16.mxu0 %v1528_v0  ;;  %1333 = vmatprep.subr.bf16.mxu1 %v1501_v1 }
 0x511   :  { %v671_v60 = vpop.f32.mrb[16].mxu0  ;;  %v712_v61 = vpop.f32.mrb[16].mxu1 }
 0x512   :  { %v672_v62 = vadd.f32 %v671_v60, %v1720_v32  ;;  %v673_v63 = vpop.f32.mrb[17].mxu0  ;;  %v1311_v25 = vpop.f32.mrb[17].mxu1  ;;  %v713_v43 = vadd.f32 %v712_v61, %v1732_v53 }
 0x513   :  { %v674_v27 = vadd.f32 %v673_v63, %v1722_v33  ;;  %v675_v28 = vpop.f32.mrb[18].mxu0  ;;  %v715_v29 = vpop.f32.mrb[18].mxu1 }
 0x514   :  { %v718_v30 = vadd.f32 %v1117_v59, %v672_v62  ;;  %v676_v34 = vpop.f32.mrb[19].mxu0  ;;  %v1312_v35 = vpop.f32.mrb[19].mxu1 }
 0x515   :  { %v725_v37 = vadd.f32 %v1118_v31, %v674_v27  ;;  %v1125_v27 = vld [vmem:[%s2116_s0 + $0x88] sm:$0xff] }
 0x516   :  { %v1120_v36 = vmul.f32 -1.442695, %v718_v30 }
 0x517   :  { %v1121_v38 = vmul.f32 -1.442695, %v725_v37 }
 0x518   :  { %1449 = vpow2.f32 %v1120_v36 }
 0x519   :  { %1451 = vpow2.f32 %v1121_v38 }
 0x522   :  { %v1450_v39 = vpop.eup %1449 }
 0x523   :  { %v722_v40 = vadd.f32 1.0, %v1450_v39  ;;  %v1452_v41 = vpop.eup %1451  ;;  %v1489_v39 = vld [vmem:[%s2114_s1] ss:$12 sps:$4 sm:$0xff]  }
 0x524   :  { %v729_v42 = vadd.f32 1.0, %v1452_v41  ;;  %v1491_v41 = vld [vmem:[%s2114_s1 + $0x1c] ss:$12 sps:$4 sm:$0xff]  }
 0x525   :  { %1453 = vrcp.f32 %v722_v40  ;;  %v1490_v40 = vld [vmem:[%s2114_s1 + $0x8] ss:$12 sps:$4 sm:$0xff]  }
 0x526   :  { %1455 = vrcp.f32 %v729_v42  ;;  %v1492_v42 = vld [vmem:[%s2114_s1 + $0x18] ss:$12 sps:$4 sm:$0xff]  }
 0x52f   :  { %v1454_v44 = vpop.eup %1453 }
 0x530   :  { %v732_v46 = vmul.f32 %v1454_v44, %v713_v43  ;;  %v1456_v48 = vpop.eup %1455  ;;  %v1493_v43 = vld [vmem:[%s2114_s1 + $0x20] ss:$12 sps:$4 sm:$0xff]  }
 0x531   :  { %v735_v49 = vsub.f32 1.0, %v1456_v48  ;;  %v737_v52 = vmul.f32 %v1456_v48, %v1906_v57  ;;  %v1494_v44 = vld [vmem:[%s2114_s1 + $0x34] ss:$12 sps:$4 sm:$0xff]   ;;  %v1500_v48 = vld [vmem:[%s2114_s1 + $0x7c] ss:$12 sps:$4 sm:$0xff]  }
 0x532   :  { %v733_v47 = vadd.f32 %v1119_v45, %v732_v46  ;;  %v1496_v45 = vld [vmem:[%s2114_s1 + $0x4c] ss:$12 sps:$4 sm:$0xff]   ;;  %v1497_v46 = vld [vmem:[%s2114_s1 + $0x48] ss:$12 sps:$4 sm:$0xff]  }
 0x534   :  { %1457 = vtanh.f32 %v733_v47  ;;  %v1498_v47 = vld [vmem:[%s2114_s1 + $0x64] ss:$12 sps:$4 sm:$0xff]  }
 0x53e   :  { %v1458_v50 = vpop.eup %1457 }
 0x53f   :  { %v736_v51 = vmul.f32 %v1458_v50, %v735_v49 }
 0x541   :  { %v1962_v54 = vadd.f32 %v737_v52, %v736_v51 }
 0x543   :  { %1122 = vst [vmem:[%s2117_s3 + $0x20] sm:$0xff] %v1962_v54  ;;  %v745_v55 = vpack.c.bf16 %v1962_v54, %v1962_v54 }
 0x545   :  { %779 = vmatmul.mubr.bf16.vlgmr.msra.gmra.mrb[20].mxu0 %v745_v55  ;;  %1330 = vmatmul.mubr.bf16.vlgmr.msra.gmra.mrb[20].mxu1 %v745_v55 }
 0x546   :  { %856 = vmatpush1.bf16.msra.mxu0 %v1535_v3  ;;  %1334 = vmatpush3.bf16.msra.mxu1 %v1572_v9  ;;  %v1123_v3 = vld [vmem:[%s2116_s0 + $0x78] sm:$0xff] }
 0x547   :  { %857 = vmatprep.subr.bf16.mxu0 %v1543_v4  ;;  %1335 = vmatprep.subr.bf16.mxu1 %v1501_v1 }
 0x548   :  { %887 = vmatprep.mubr.bf16.mxu0 %v1502_v2  ;;  %1349 = vmatprep.mubr.msk.bf16.mxu1 %vm1503_vm0, %v1501_v1 }
 0x54a   :  { %858 = vmatpush1.bf16.msra.mxu0 %v1549_v5  ;;  %1336 = vmatpush3.bf16.msra.mxu1 %v1590_v12 }
 0x54b   :  { %859 = vmatprep.subr.bf16.mxu0 %v1555_v6  ;;  %1337 = vmatprep.subr.bf16.mxu1 %v1501_v1 }
 0x54e   :  { %860 = vmatpush1.bf16.msra.mxu0 %v1561_v7  ;;  %1338 = vmatpush3.bf16.msra.mxu1 %v1609_v15 }
 0x54f   :  { %861 = vmatprep.subr.bf16.mxu0 %v1567_v8  ;;  %1339 = vmatprep.subr.bf16.mxu1 %v1501_v1 }
 0x552   :  { %862 = vmatpush1.bf16.msra.mxu0 %v1578_v10  ;;  %1340 = vmatpush3.bf16.msra.mxu1 %v1628_v18 }
 0x553   :  { %863 = vmatprep.subr.bf16.mxu0 %v1583_v11  ;;  %1341 = vmatprep.subr.bf16.mxu1 %v1501_v1 }
 0x556   :  { %864 = vmatpush1.bf16.msra.mxu0 %v1596_v13  ;;  %1342 = vmatpush3.bf16.msra.mxu1 %v1647_v21 }
 0x557   :  { %865 = vmatprep.subr.bf16.mxu0 %v1602_v14  ;;  %1343 = vmatprep.subr.bf16.mxu1 %v1501_v1 }
 0x55a   :  { %866 = vmatpush1.bf16.msra.mxu0 %v1616_v16  ;;  %1344 = vmatpush3.bf16.msra.mxu1 %v1661_v23 }
 0x55b   :  { %867 = vmatprep.subr.bf16.mxu0 %v1622_v17  ;;  %1345 = vmatprep.subr.bf16.mxu1 %v1501_v1 }
 0x55e   :  { %868 = vmatpush1.bf16.msra.mxu0 %v1635_v19  ;;  %1346 = vmatpush3.bf16.msra.mxu1 %v1669_v24 }
 0x55f   :  { %869 = vmatprep.subr.bf16.mxu0 %v1641_v20  ;;  %1347 = vmatprep.subr.bf16.mxu1 %v1501_v1 }
 0x562   :  { %870 = vmatpush1.bf16.msra.mxu0 %v1654_v22  ;;  %1348 = vmatpush3.bf16.msra.mxu1 %v1679_v26 }
 0x563   :  { %964 = vmatprep.subr.bf16.mxu0 %v1528_v0  ;;  %1353 = vmatprep.subr.bf16.mxu1 %v1501_v1  ;;  %v1124_v0 = vld [vmem:[%s2116_s0 + $0x80] sm:$0xff] }
 0x618   :  { %v780_v4 = vpop.f32.mrb[20].mxu0  ;;  %v821_v5 = vpop.f32.mrb[20].mxu1 }
 0x619   :  { %v781_v6 = vadd.f32 %v780_v4, %v1720_v32  ;;  %v782_v7 = vpop.f32.mrb[21].mxu0  ;;  %v1331_v8 = vpop.f32.mrb[21].mxu1  ;;  %v822_v63 = vadd.f32 %v821_v5, %v1732_v53 }
 0x61a   :  { %v783_v9 = vadd.f32 %v782_v7, %v1722_v33  ;;  %v784_v10 = vpop.f32.mrb[22].mxu0  ;;  %v824_v11 = vpop.f32.mrb[22].mxu1  ;;  %v1131_v8 = vld [vmem:[%s2116_s0 + $0xa0] sm:$0xff] }
 0x61b   :  { %v827_v12 = vadd.f32 %v1123_v3, %v781_v6  ;;  %v785_v13 = vpop.f32.mrb[23].mxu0  ;;  %v1332_v14 = vpop.f32.mrb[23].mxu1 }
 0x61c   :  { %v834_v57 = vadd.f32 %v1124_v0, %v783_v9 }
 0x61d   :  { %v1126_v56 = vmul.f32 -1.442695, %v827_v12 }
 0x61e   :  { %v1127_v58 = vmul.f32 -1.442695, %v834_v57 }
 0x61f   :  { %1459 = vpow2.f32 %v1126_v56 }
 0x620   :  { %1461 = vpow2.f32 %v1127_v58  ;;  %v1135_v58 = vld [vmem:[%s2116_s0 + $0xa8] sm:$0xff] }
 0x629   :  { %v1460_v59 = vpop.eup %1459 }
 0x62a   :  { %v831_v60 = vadd.f32 1.0, %v1460_v59  ;;  %v1462_v61 = vpop.eup %1461 }
 0x62b   :  { %v838_v62 = vadd.f32 1.0, %v1462_v61 }
 0x62c   :  { %1463 = vrcp.f32 %v831_v60 }
 0x62d   :  { %1465 = vrcp.f32 %v838_v62 }
 0x636   :  { %v1464_v25 = vpop.eup %1463 }
 0x637   :  { %v841_v28 = vmul.f32 %v1464_v25, %v822_v63  ;;  %v1466_v30 = vpop.eup %1465 }
 0x638   :  { %v844_v31 = vsub.f32 1.0, %v1466_v30  ;;  %v846_v36 = vmul.f32 %v1466_v30, %v1962_v54  ;;  %v1136_v30 = vld [vmem:[%s2116_s0 + $0xb0] sm:$0xff] }
 0x639   :  { %v842_v29 = vadd.f32 %v1125_v27, %v841_v28 }
 0x63b   :  { %1467 = vtanh.f32 %v842_v29 }
 0x645   :  { %v1468_v34 = vpop.eup %1467 }
 0x646   :  { %v845_v35 = vmul.f32 %v1468_v34, %v844_v31 }
 0x648   :  { %v2018_v37 = vadd.f32 %v846_v36, %v845_v35 }
 0x64a   :  { %1128 = vst [vmem:[%s2117_s3 + $0x28] sm:$0xff] %v2018_v37  ;;  %v854_v38 = vpack.c.bf16 %v2018_v37, %v2018_v37 }
 0x64c   :  { %888 = vmatmul.mubr.bf16.vlgmr.msra.gmra.mrb[24].mxu0 %v854_v38  ;;  %1350 = vmatmul.mubr.bf16.vlgmr.msra.gmra.mrb[24].mxu1 %v854_v38 }
 0x64d   :  { %965 = vmatpush1.bf16.msra.mxu0 %v1489_v39  ;;  %1354 = vmatpush3.bf16.msra.mxu1 %v1490_v40 }
 0x64e   :  { %966 = vmatprep.subr.bf16.mxu0 %v1491_v41  ;;  %1355 = vmatprep.subr.bf16.mxu1 %v1501_v1 }
 0x64f   :  { %996 = vmatprep.mubr.bf16.mxu0 %v1502_v2  ;;  %1369 = vmatprep.mubr.msk.bf16.mxu1 %vm1503_vm0, %v1501_v1  ;;  %v1495_v2 = vld [vmem:[%s2114_s1 + $0x30] ss:$12 sps:$4 sm:$0xff]  }
 0x651   :  { %967 = vmatpush1.bf16.msra.mxu0 %v1492_v42  ;;  %1356 = vmatpush3.bf16.msra.mxu1 %v1493_v43  ;;  %v1137_v42 = vld [vmem:[%s2116_s0 + $0xb8] sm:$0xff] }
 0x652   :  { %968 = vmatprep.subr.bf16.mxu0 %v1494_v44  ;;  %1357 = vmatprep.subr.bf16.mxu1 %v1501_v1 }
 0x655   :  { %969 = vmatpush1.bf16.msra.mxu0 %v1495_v2  ;;  %1358 = vmatpush3.bf16.msra.mxu1 %v1609_v15  ;;  %v1499_v15 = vld [vmem:[%s2114_s1 + $0x60] ss:$12 sps:$4 sm:$0xff]  }
 0x656   :  { %970 = vmatprep.subr.bf16.mxu0 %v1496_v45  ;;  %1359 = vmatprep.subr.bf16.mxu1 %v1501_v1 }
 0x659   :  { %971 = vmatpush1.bf16.msra.mxu0 %v1497_v46  ;;  %1360 = vmatpush3.bf16.msra.mxu1 %v1628_v18 }
 0x65a   :  { %972 = vmatprep.subr.bf16.mxu0 %v1498_v47  ;;  %1361 = vmatprep.subr.bf16.mxu1 %v1501_v1 }
 0x65d   :  { %973 = vmatpush1.bf16.msra.mxu0 %v1499_v15  ;;  %1362 = vmatpush3.bf16.msra.mxu1 %v1647_v21 }
 0x65e   :  { %974 = vmatprep.subr.bf16.mxu0 %v1500_v48  ;;  %1363 = vmatprep.subr.bf16.mxu1 %v1501_v1 }
 0x661   :  { %975 = vmatpush1.bf16.msra.mxu0 %v1616_v16  ;;  %1364 = vmatpush3.bf16.msra.mxu1 %v1661_v23  ;;  %v1129_v16 = vld [vmem:[%s2116_s0 + $0x90] sm:$0xff] }
 0x662   :  { %976 = vmatprep.subr.bf16.mxu0 %v1622_v17  ;;  %1365 = vmatprep.subr.bf16.mxu1 %v1501_v1 }
 0x665   :  { %977 = vmatpush1.bf16.msra.mxu0 %v1635_v19  ;;  %1366 = vmatpush3.bf16.msra.mxu1 %v1669_v24 }
 0x666   :  { %978 = vmatprep.subr.bf16.mxu0 %v1641_v20  ;;  %1367 = vmatprep.subr.bf16.mxu1 %v1501_v1  ;;  %v1130_v1 = vld [vmem:[%s2116_s0 + $0x98] sm:$0xff] }
 0x669   :  { %979 = vmatpush1.bf16.msra.mxu0 %v1654_v22  ;;  %1368 = vmatpush3.bf16.msra.mxu1 %v1679_v26 }
 0x71f   :  { %v889_v18 = vpop.f32.mrb[24].mxu0  ;;  %v930_v17 = vpop.f32.mrb[24].mxu1 }
 0x720   :  { %v890_v21 = vadd.f32 %v889_v18, %v1720_v32  ;;  %v891_v23 = vpop.f32.mrb[25].mxu0  ;;  %v1351_v19 = vpop.f32.mrb[25].mxu1  ;;  %v931_v6 = vadd.f32 %v930_v17, %v1732_v53 }
 0x721   :  { %v892_v24 = vadd.f32 %v891_v23, %v1722_v33  ;;  %v893_v49 = vpop.f32.mrb[26].mxu0  ;;  %v933_v20 = vpop.f32.mrb[26].mxu1 }
 0x722   :  { %v936_v50 = vadd.f32 %v1129_v16, %v890_v21  ;;  %v894_v22 = vpop.f32.mrb[27].mxu0  ;;  %v1352_v26 = vpop.f32.mrb[27].mxu1 }
 0x723   :  { %v943_v52 = vadd.f32 %v1130_v1, %v892_v24 }
 0x724   :  { %v1132_v51 = vmul.f32 -1.442695, %v936_v50 }
 0x725   :  { %v1133_v54 = vmul.f32 -1.442695, %v943_v52 }
 0x726   :  { %1469 = vpow2.f32 %v1132_v51 }
 0x727   :  { %1471 = vpow2.f32 %v1133_v54 }
 0x730   :  { %v1470_v55 = vpop.eup %1469 }
 0x731   :  { %v940_v3 = vadd.f32 1.0, %v1470_v55  ;;  %v1472_v4 = vpop.eup %1471 }
 0x732   :  { %v947_v5 = vadd.f32 1.0, %v1472_v4 }
 0x733   :  { %1473 = vrcp.f32 %v940_v3 }
 0x734   :  { %1475 = vrcp.f32 %v947_v5 }
 0x73d   :  { %v1474_v7 = vpop.eup %1473 }
 0x73e   :  { %v950_v9 = vmul.f32 %v1474_v7, %v931_v6  ;;  %v1476_v11 = vpop.eup %1475 }
 0x73f   :  { %v953_v12 = vsub.f32 1.0, %v1476_v11  ;;  %v955_v14 = vmul.f32 %v1476_v11, %v2018_v37 }
 0x740   :  { %v951_v10 = vadd.f32 %v1131_v8, %v950_v9 }
 0x742   :  { %1477 = vtanh.f32 %v951_v10 }
 0x74c   :  { %v1478_v0 = vpop.eup %1477 }
 0x74d   :  { %v954_v13 = vmul.f32 %v1478_v0, %v953_v12 }
 0x74f   :  { %v956_v56 = vadd.f32 %v955_v14, %v954_v13 }
 0x751   :  { %1134 = vst [vmem:[%s2117_s3 + $0x30] sm:$0xff] %v956_v56  ;;  %v963_v57 = vpack.c.bf16 %v956_v56, %v956_v56 }
 0x753   :  { %997 = vmatmul.mubr.bf16.vlgmr.msra.gmra.mrb[28].mxu0 %v963_v57  ;;  %1370 = vmatmul.mubr.bf16.vlgmr.msra.gmra.mrb[28].mxu1 %v963_v57 }
 0x826   :  { %v998_v59 = vpop.f32.mrb[28].mxu0  ;;  %v1039_v60 = vpop.f32.mrb[28].mxu1 }
 0x827   :  { %v999_v61 = vadd.f32 %v998_v59, %v1720_v32  ;;  %v1000_v62 = vpop.f32.mrb[29].mxu0  ;;  %v1371_v63 = vpop.f32.mrb[29].mxu1 }
 0x828   :  { %v1001_v25 = vadd.f32 %v1000_v62, %v1722_v33  ;;  %v1002_v27 = vpop.f32.mrb[30].mxu0  ;;  %v1042_v28 = vpop.f32.mrb[30].mxu1  ;;  %v1040_v33 = vadd.f32 %v1039_v60, %v1732_v53 }
 0x829   :  { %v1045_v29 = vadd.f32 %v1135_v58, %v999_v61  ;;  %v1003_v31 = vpop.f32.mrb[31].mxu0  ;;  %v1372_v34 = vpop.f32.mrb[31].mxu1 }
 0x82a   :  { %v1052_v36 = vadd.f32 %v1136_v30, %v1001_v25 }
 0x82b   :  { %v1138_v35 = vmul.f32 -1.442695, %v1045_v29 }
 0x82c   :  { %v1139_v37 = vmul.f32 -1.442695, %v1052_v36 }
 0x82d   :  { %1479 = vpow2.f32 %v1138_v35 }
 0x82e   :  { %1481 = vpow2.f32 %v1139_v37 }
 0x837   :  { %v1480_v38 = vpop.eup %1479 }
 0x838   :  { %v1049_v32 = vadd.f32 1.0, %v1480_v38  ;;  %v1482_v39 = vpop.eup %1481 }
 0x839   :  { %v1056_v40 = vadd.f32 1.0, %v1482_v39 }
 0x83a   :  { %1483 = vrcp.f32 %v1049_v32 }
 0x83b   :  { %1485 = vrcp.f32 %v1056_v40 }
 0x844   :  { %v1484_v41 = vpop.eup %1483 }
 0x845   :  { %v1059_v43 = vmul.f32 %v1484_v41, %v1040_v33  ;;  %v1486_v2 = vpop.eup %1485 }
 0x846   :  { %v1062_v45 = vsub.f32 1.0, %v1486_v2  ;;  %v1064_v15 = vmul.f32 %v1486_v2, %v956_v56 }
 0x847   :  { %v1060_v44 = vadd.f32 %v1137_v42, %v1059_v43 }
 0x849   :  { %1487 = vtanh.f32 %v1060_v44 }
 0x853   :  { %v1488_v46 = vpop.eup %1487 }
 0x854   :  { %v1063_v47 = vmul.f32 %v1488_v46, %v1062_v45 }
 0x856   :  { %v1065_v48 = vadd.f32 %v1064_v15, %v1063_v47 }
 0x858   :  { %1140 = vst [vmem:[%s2117_s3 + $0x38] sm:$0xff] %v1065_v48 }

</bundles_post_ra>
